<compile_context>
chip_gen: v7x
topology: tpu7x:2x2x1
jax: 0.10.0
libtpu: 0.0.40
codegen_flags: <defaults>
</compile_context>

<pallas_src>
import functools
import math

import jax
import jax.numpy as jnp
from jax.experimental import pallas as pl
from jax.experimental.pallas import tpu as pltpu


def _round_up(x, m):
    return ((x + m - 1) // m) * m


# ----------------------------------------------------------------------------
# Fused DnCNN stack kernel: layer 0 + n_mid middle layers + last layer
# ----------------------------------------------------------------------------
def _dncnn_stack_kernel(x0_ref, w0_ref, wmid_ref, bmid_ref, wlast_ref,
                        o_ref, act_ref, *, hout, wout, wp, n_mid):
    # x0_ref   : (1, L, Cin0)      flat, zero-padded layer-0 input (bf16)
    # w0_ref   : (9*Cin0, C)       layer-0 packed weights (bf16)
    # wmid_ref : (n_mid, 9*C, C)   packed middle-layer weights, BN scale folded
    # bmid_ref : (n_mid, 1, C)     folded BN biases (f32)
    # wlast_ref: (9*C, Cl)         last-layer packed weights (bf16)
    # o_ref    : (1, hout, wout, Cl) f32 DnCNN output (NHWC)
    # act_ref  : (L, C) bf16 scratch; data pixel (r,c) lives at flat s + r*wp + c
    m = hout * wp
    s = wp + 8            # interior offset; multiple of 8 -> aligned stores
    base = s - wp - 1     # flat offset of tap (dy=0, dx=0) for output pixel 0
    cmid = act_ref.shape[-1]
    clast = o_ref.shape[-1]

    # Column-validity mask: output column c (= flat pos mod wp) is real iff c < wout.
    keep = jax.lax.broadcasted_iota(jnp.int32, (hout, wp, 1), 1) < wout

    def mask_interior(y):
        # Zero the pad columns so they keep serving as the zero halo, cast bf16.
        cout = y.shape[-1]
        y = jnp.where(keep, y.reshape(hout, wp, cout), 0.0)
        return y.reshape(m, cout).astype(jnp.bfloat16)

    def conv(flat, w):
        # flat: (L, Cin) zero-haloed activations; returns (m, Cout) f32.
        taps = [flat[base + dy * wp + dx: base + dy * wp + dx + m, :]
                for dy in range(3) for dx in range(3)]
        lhs = jnp.concatenate(taps, axis=-1)          # (m, 9*Cin) bf16
        return jnp.dot(lhs, w, preferred_element_type=jnp.float32)

    # Zero the activation scratch so every halo / pad position reads as 0.
    act_ref[...] = jnp.zeros(act_ref.shape, jnp.bfloat16)

    # ---- layer 0: conv(Cin0 -> C) + ReLU (no bias, no BN) -------------------
    y = jnp.maximum(conv(x0_ref[0], w0_ref[...]), 0.0)
    act_ref[s:s + m, :] = mask_interior(y)

    # ---- middle layers: conv(C -> C) + folded-BN bias + ReLU, in place ------
    def mid_body(l, carry):
        y = conv(act_ref[...], wmid_ref[l]) + bmid_ref[l]
        y = jnp.maximum(y, 0.0)
        act_ref[s:s + m, :] = mask_interior(y)
        return carry

    jax.lax.fori_loop(0, n_mid, mid_body, 0)

    # ---- last layer: conv(C -> Cl), no bias / BN / ReLU ---------------------
    y = conv(act_ref[...], wlast_ref[...])            # (m, Cl) f32
    y = y.reshape(hout, wp, clast)[:, :wout, :]       # drop pad columns
    o_ref[0] = y.astype(jnp.float32)


def dncnn_fused(h0_nhwc, params):
    """Run the whole DnCNN conv stack as one Pallas kernel.

    h0_nhwc: (N, hout, wout, Cin0_pad) bf16 layer-0 input (noise map +
             pixel-unshuffled image, channel-padded to a multiple of 8).
    Returns (N, hout, wout, Clast) float32.
    """
    w0, wmid, bmid, wlast = (params["w0"], params["w_mid"],
                             params["b_mid"], params["w_last"])
    n, hout, wout, cin0 = h0_nhwc.shape
    cmid = w0.shape[1]
    clast = wlast.shape[1]
    n_mid = wmid.shape[0]
    assert w0.shape[0] == 9 * cin0, (w0.shape, cin0)

    wp = _round_up(wout + 1, 8)       # >= 1 zero column between rows (halo)
    s = wp + 8                        # sublane-aligned interior offset
    m = hout * wp
    l_flat = (hout + 4) * wp          # interior + top/bottom halo + tap slack

    # Flat, zero-padded layer-0 input: data pixel (r, c) at flat s + r*wp + c.
    x0 = jnp.pad(h0_nhwc, ((0, 0), (0, 0), (0, wp - wout), (0, 0)))
    x0 = x0.reshape(n, m, cin0)
    x0 = jnp.pad(x0, ((0, 0), (s, l_flat - s - m), (0, 0)))

    # VMEM budget for whole-image-per-grid-step processing.
    bytes_needed = (
        w0.size * 2 + wmid.size * 2 + wlast.size * 2 + bmid.size * 4  # weights
        + 2 * l_flat * cmid * 2          # act scratch + one loaded copy
        + 2 * l_flat * cin0 * 2          # double-buffered input blocks
        + 2 * hout * wout * clast * 4    # double-buffered output blocks
        + 2 * m * 9 * cmid * 2)          # im2col lhs + tap temporaries
    vmem_limit = int(min(max(32 * 2 ** 20, 2 * bytes_needed), 56 * 2 ** 20))

    kernel = functools.partial(_dncnn_stack_kernel, hout=hout, wout=wout,
                               wp=wp, n_mid=n_mid)
    return pl.pallas_call(
        kernel,
        out_shape=jax.ShapeDtypeStruct((n, hout, wout, clast), jnp.float32),
        grid_spec=pltpu.PrefetchScalarGridSpec(
            num_scalar_prefetch=0,
            grid=(n,),
            in_specs=[
                pl.BlockSpec((1, l_flat, cin0), lambda i: (i, 0, 0)),
                # Grid-invariant weight blocks: fetched once, stay in VMEM.
                pl.BlockSpec(w0.shape, lambda i: (0, 0)),
                pl.BlockSpec(wmid.shape, lambda i: (0, 0, 0)),
                pl.BlockSpec(bmid.shape, lambda i: (0, 0, 0)),
                pl.BlockSpec(wlast.shape, lambda i: (0, 0)),
            ],
            out_specs=pl.BlockSpec((1, hout, wout, clast),
                                   lambda i: (i, 0, 0, 0)),
            scratch_shapes=[pltpu.VMEM((l_flat, cmid), jnp.bfloat16)],
        ),
        compiler_params=pltpu.CompilerParams(
            dimension_semantics=("parallel",),
            vmem_limit_bytes=vmem_limit,
        ),
    )(x0, w0, wmid, bmid, wlast)


# ----------------------------------------------------------------------------
# FFDNet glue (pixel unshuffle/shuffle) — thin one-pass XLA reshapes
# ----------------------------------------------------------------------------
def build_layer0_input_nhwc(x, noise_sigma):
    """NCHW (N,C,H,W) -> NHWC (N, H/2, W/2, C + 4C); noise-map channels first."""
    n, c, h, w = x.shape
    hout, wout = h // 2, w // 2
    ds = x.reshape(n, c, hout, 2, wout, 2)
    ds = ds.transpose(0, 2, 4, 1, 3, 5).reshape(n, hout, wout, 4 * c)
    nm = jnp.broadcast_to(noise_sigma.reshape(n, 1, 1, 1),
                          (n, hout, wout, c)).astype(x.dtype)
    return jnp.concatenate([nm, ds], axis=-1)


def upsample_features_nhwc(y):
    """NHWC (N, H/2, W/2, 4C) -> NCHW (N, C, H, W); inverse pixel shuffle."""
    n, ho, wo, c4 = y.shape
    c = c4 // 4
    y = y.reshape(n, ho, wo, c, 2, 2).transpose(0, 3, 1, 4, 2, 5)
    return y.reshape(n, c, 2 * ho, 2 * wo)


# ----------------------------------------------------------------------------
# Parameters (deterministic synthetic init; eval-mode BN folded into weights)
# ----------------------------------------------------------------------------
def init_ffdnet_params(key, num_input_channels=1):
    if num_input_channels == 1:
        cmid, nlayers, cin0, clast = 64, 15, 5, 4
    elif num_input_channels == 3:
        cmid, nlayers, cin0, clast = 96, 12, 15, 12
    else:
        raise ValueError("Invalid number of input channels")
    cin0_pad = _round_up(cin0, 8)
    keys = jax.random.split(key, nlayers)

    # (9, Cin, Cout): tap k = dy*3 + dx (== PyTorch weight[:, :, dy, dx].T).
    def kaiming(k, cin, cout):
        return jax.random.normal(k, (9, cin, cout), jnp.float32) * math.sqrt(
            2.0 / (9.0 * cin))

    w0 = kaiming(keys[0], cin0, cmid)
    w0 = jnp.pad(w0, ((0, 0), (0, cin0_pad - cin0), (0, 0)))
    w0 = w0.reshape(9 * cin0_pad, cmid).astype(jnp.bfloat16)

    wm, bm = [], []
    for i in range(1, nlayers - 1):
        k1, k2, k3, k4, k5 = jax.random.split(keys[i], 5)
        w = kaiming(k1, cmid, cmid)
        gamma = 1.0 + 0.1 * jax.random.normal(k2, (cmid,), jnp.float32)
        beta = 0.1 * jax.random.normal(k3, (cmid,), jnp.float32)
        mean = 0.05 * jax.random.normal(k4, (cmid,), jnp.float32)
        var = 1.0 + 0.1 * jax.random.uniform(k5, (cmid,), jnp.float32)
        scale = gamma / jnp.sqrt(var + 1e-5)
        bm.append((beta - mean * scale).reshape(1, cmid))
        wm.append((w * scale[None, None, :]).reshape(9 * cmid, cmid))
    w_mid = jnp.stack(wm).astype(jnp.bfloat16)        # (n_mid, 9*cmid, cmid)
    b_mid = jnp.stack(bm).astype(jnp.float32)         # (n_mid, 1, cmid)

    w_last = kaiming(keys[-1], cmid, clast).reshape(
        9 * cmid, clast).astype(jnp.bfloat16)
    return dict(w0=w0, w_mid=w_mid, b_mid=b_mid, w_last=w_last)


# ----------------------------------------------------------------------------
# FFDNet forward (Pallas) and f32 XLA reference
# ----------------------------------------------------------------------------
def ffdnet_forward(x, noise_sigma, params):
    # x: (N, C, H, W) float32 (even H, W); noise_sigma: (N,) float32
    h0 = build_layer0_input_nhwc(x, noise_sigma)
    cin0_pad = params["w0"].shape[0] // 9
    pad_c = cin0_pad - h0.shape[-1]
    if pad_c:
        h0 = jnp.pad(h0, ((0, 0), (0, 0), (0, 0), (0, pad_c)))
    y = dncnn_fused(h0.astype(jnp.bfloat16), params)
    pred_noise = upsample_features_nhwc(y)
    return x - pred_noise


def ffdnet_reference(x, noise_sigma, params):
    """f32 XLA reference (lax.conv) validating the fused Pallas kernel."""
    def conv3x3(h, w_packed, bias=None, relu=False):
        cin = w_packed.shape[0] // 9
        cout = w_packed.shape[1]
        w = w_packed.astype(jnp.float32).reshape(3, 3, cin, cout)   # HWIO
        y = jax.lax.conv_general_dilated(
            h, w, window_strides=(1, 1), padding="SAME",
            dimension_numbers=("NHWC", "HWIO", "NHWC"))
        if bias is not None:
            y = y + bias.astype(jnp.float32).reshape(1, 1, 1, cout)
        return jnp.maximum(y, 0.0) if relu else y

    h0 = build_layer0_input_nhwc(x, noise_sigma)
    cin0_pad = params["w0"].shape[0] // 9
    h0 = jnp.pad(h0, ((0, 0), (0, 0), (0, 0), (0, cin0_pad - h0.shape[-1])))
    h = h0.astype(jnp.bfloat16).astype(jnp.float32)   # match kernel rounding
    h = conv3x3(h, params["w0"], relu=True)
    for l in range(params["w_mid"].shape[0]):
        h = conv3x3(h, params["w_mid"][l], params["b_mid"][l], relu=True)
    y = conv3x3(h, params["w_last"])
    return x - upsample_features_nhwc(y)


if __name__ == "__main__":
    key = jax.random.PRNGKey(0)
    kx, kp = jax.random.split(key, 2)

    # grayscale FFDNet config: x is (N, 1, H, W) with even H, W
    x = jax.random.uniform(kx, (2, 1, 16, 16), jnp.float32)
    noise_sigma = jnp.full((2,), 25.0 / 255.0, jnp.float32)
    params = init_ffdnet_params(kp, num_input_channels=1)

    fwd = jax.jit(lambda xx, ss: ffdnet_forward(xx, ss, params))
    out = jax.block_until_ready(fwd(x, noise_sigma))

    assert out.shape == x.shape and out.dtype == x.dtype
    assert bool(jnp.all(jnp.isfinite(out)))

    # Validate against the f32 XLA reference (bf16 activations -> loose tol).
    ref = jax.jit(lambda xx, ss: ffdnet_reference(xx, ss, params))(x, noise_sigma)
    err = float(jnp.max(jnp.abs(out - ref)))
    assert err < 0.2, f"max abs error vs f32 reference: {err}"

    print("KERNEL_OK")
</pallas_src>

<mosaic_0001>
module attributes {stable_mosaic.version = 11 : i64} {
  func.func @_dncnn_stack_kernel(%arg0: i32, %arg1: memref<1x192x8xbf16, #tpu.memory_space<vmem>>, %arg2: memref<72x64xbf16, #tpu.memory_space<vmem>>, %arg3: memref<13x576x64xbf16, #tpu.memory_space<vmem>>, %arg4: memref<13x1x64xf32, #tpu.memory_space<vmem>>, %arg5: memref<576x4xbf16, #tpu.memory_space<vmem>>, %arg6: memref<1x8x8x4xf32, #tpu.memory_space<vmem>>, %arg7: memref<192x64xbf16, #tpu.memory_space<vmem>>) attributes {dimension_semantics = [#tpu.dimension_semantics<parallel>], iteration_bounds = array<i64: 2>, scalar_prefetch = 0 : i64, scratch_operands = 1 : i64, tpu.core_type = #tpu.core_type<tc>, window_params = [{transform_indices = @transform_0, window_bounds = array<i64: 1, 192, 8>}, {pipeline_mode = #tpu.pipeline_mode<synchronous>, transform_indices = @transform_1, window_bounds = array<i64: 72, 64>}, {pipeline_mode = #tpu.pipeline_mode<synchronous>, transform_indices = @transform_2, window_bounds = array<i64: 13, 576, 64>}, {pipeline_mode = #tpu.pipeline_mode<synchronous>, transform_indices = @transform_3, window_bounds = array<i64: 13, 1, 64>}, {pipeline_mode = #tpu.pipeline_mode<synchronous>, transform_indices = @transform_4, window_bounds = array<i64: 576, 4>}, {transform_indices = @transform_5, window_bounds = array<i64: 1, 8, 8, 4>}]} {
    %0 = tpu.iota {dimensions = array<i32: 1>} : vector<8x16x1xi32>
    %c8_i32 = arith.constant 8 : i32
    %1 = vector.broadcast %c8_i32 : i32 to vector<8x16x1xi32>
    %2 = arith.cmpi slt, %0, %1 : vector<8x16x1xi32>
    %cst = arith.constant 0.000000e+00 : bf16
    %3 = vector.broadcast %cst : bf16 to vector<192x64xbf16>
    %c0 = arith.constant 0 : index
    %c0_0 = arith.constant 0 : index
    %4 = vector.load %arg7[%c0, %c0_0] : memref<192x64xbf16, #tpu.memory_space<vmem>>, vector<192x64xbf16>
    tpu.vector_store %arg7[%c0, %c0_0], %3 {strides = array<i32>} : memref<192x64xbf16, #tpu.memory_space<vmem>>, vector<192x64xbf16>,
    %c0_1 = arith.constant 0 : index
    %c0_2 = arith.constant 0 : index
    %c0_3 = arith.constant 0 : index
    %5 = vector.load %arg1[%c0_1, %c0_2, %c0_3] : memref<1x192x8xbf16, #tpu.memory_space<vmem>>, vector<1x192x8xbf16>
    %6 = vector.shape_cast %5 : vector<1x192x8xbf16> to vector<192x8xbf16>
    %c0_4 = arith.constant 0 : index
    %c0_5 = arith.constant 0 : index
    %7 = vector.load %arg2[%c0_4, %c0_5] : memref<72x64xbf16, #tpu.memory_space<vmem>>, vector<72x64xbf16>
    %8 = vector.extract_strided_slice %6 {offsets = [7, 0], sizes = [128, 8], strides = [1, 1]} : vector<192x8xbf16> to vector<128x8xbf16>
    %9 = vector.extract_strided_slice %6 {offsets = [8, 0], sizes = [128, 8], strides = [1, 1]} : vector<192x8xbf16> to vector<128x8xbf16>
    %10 = vector.extract_strided_slice %6 {offsets = [9, 0], sizes = [128, 8], strides = [1, 1]} : vector<192x8xbf16> to vector<128x8xbf16>
    %11 = vector.extract_strided_slice %6 {offsets = [23, 0], sizes = [128, 8], strides = [1, 1]} : vector<192x8xbf16> to vector<128x8xbf16>
    %12 = vector.extract_strided_slice %6 {offsets = [24, 0], sizes = [128, 8], strides = [1, 1]} : vector<192x8xbf16> to vector<128x8xbf16>
    %13 = vector.extract_strided_slice %6 {offsets = [25, 0], sizes = [128, 8], strides = [1, 1]} : vector<192x8xbf16> to vector<128x8xbf16>
    %14 = vector.extract_strided_slice %6 {offsets = [39, 0], sizes = [128, 8], strides = [1, 1]} : vector<192x8xbf16> to vector<128x8xbf16>
    %15 = vector.extract_strided_slice %6 {offsets = [40, 0], sizes = [128, 8], strides = [1, 1]} : vector<192x8xbf16> to vector<128x8xbf16>
    %16 = vector.extract_strided_slice %6 {offsets = [41, 0], sizes = [128, 8], strides = [1, 1]} : vector<192x8xbf16> to vector<128x8xbf16>
    %17 = tpu.concatenate %8, %9, %10, %11, %12, %13, %14, %15, %16 in 1 : vector<128x8xbf16>, vector<128x8xbf16>, vector<128x8xbf16>, vector<128x8xbf16>, vector<128x8xbf16>, vector<128x8xbf16>, vector<128x8xbf16>, vector<128x8xbf16>, vector<128x8xbf16> -> vector<128x72xbf16>
    %cst_6 = arith.constant dense<0.000000e+00> : vector<128x64xf32>
    %18 = tpu.matmul %17, %7, %cst_6 {dimension_numbers = #tpu.dot_dimension_numbers<[1], [0], [0], [1], [0, 0, 1, 1], [], []>} : vector<128x72xbf16>, vector<72x64xbf16>, vector<128x64xf32> -> vector<128x64xf32>
    %cst_7 = arith.constant 0.000000e+00 : f32
    %19 = vector.broadcast %cst_7 : f32 to vector<128x64xf32>
    %20 = arith.maximumf %18, %19 : vector<128x64xf32>
    %21 = vector.shape_cast %20 : vector<128x64xf32> to vector<8x16x64xf32>
    %cst_8 = arith.constant 0.000000e+00 : f32
    %22 = vector.shape_cast %2 : vector<8x16x1xi1> to vector<8x16x1xi1>
    %23 = vector.broadcast %22 : vector<8x16x1xi1> to vector<8x16x64xi1>
    %24 = vector.broadcast %cst_8 : f32 to vector<8x16x64xf32>
    %25 = arith.select %23, %21, %24 : vector<8x16x64xi1>, vector<8x16x64xf32>
    %26 = vector.shape_cast %25 : vector<8x16x64xf32> to vector<128x64xf32>
    %27 = arith.truncf %26 : vector<128x64xf32> to vector<128x64xbf16>
    %c24 = arith.constant 24 : index
    %c0_9 = arith.constant 0 : index
    %28 = vector.load %arg7[%c24, %c0_9] : memref<192x64xbf16, #tpu.memory_space<vmem>>, vector<128x64xbf16>
    tpu.vector_store %arg7[%c24, %c0_9], %27 {strides = array<i32>} : memref<192x64xbf16, #tpu.memory_space<vmem>>, vector<128x64xbf16>,
    %c0_i32 = arith.constant 0 : i32
    %c13_i32 = arith.constant 13 : i32
    %29 = arith.addi %c0_i32, %c13_i32 : i32
    %c1_i32 = arith.constant 1 : i32
    scf.for %arg8 = %c0_i32 to %29 step %c1_i32  : i32 {
      %c0_20 = arith.constant 0 : index
      %c0_21 = arith.constant 0 : index
      %48 = vector.load %arg7[%c0_20, %c0_21] : memref<192x64xbf16, #tpu.memory_space<vmem>>, vector<192x64xbf16>
      %49 = arith.index_cast %arg8 : i32 to index
      %c0_22 = arith.constant 0 : index
      %c0_23 = arith.constant 0 : index
      %50 = vector.load %arg3[%49, %c0_22, %c0_23] : memref<13x576x64xbf16, #tpu.memory_space<vmem>>, vector<1x576x64xbf16>
      %51 = vector.shape_cast %50 : vector<1x576x64xbf16> to vector<576x64xbf16>
      %52 = vector.extract_strided_slice %48 {offsets = [7, 0], sizes = [128, 64], strides = [1, 1]} : vector<192x64xbf16> to vector<128x64xbf16>
      %53 = vector.extract_strided_slice %48 {offsets = [8, 0], sizes = [128, 64], strides = [1, 1]} : vector<192x64xbf16> to vector<128x64xbf16>
      %54 = vector.extract_strided_slice %48 {offsets = [9, 0], sizes = [128, 64], strides = [1, 1]} : vector<192x64xbf16> to vector<128x64xbf16>
      %55 = vector.extract_strided_slice %48 {offsets = [23, 0], sizes = [128, 64], strides = [1, 1]} : vector<192x64xbf16> to vector<128x64xbf16>
      %56 = vector.extract_strided_slice %48 {offsets = [24, 0], sizes = [128, 64], strides = [1, 1]} : vector<192x64xbf16> to vector<128x64xbf16>
      %57 = vector.extract_strided_slice %48 {offsets = [25, 0], sizes = [128, 64], strides = [1, 1]} : vector<192x64xbf16> to vector<128x64xbf16>
      %58 = vector.extract_strided_slice %48 {offsets = [39, 0], sizes = [128, 64], strides = [1, 1]} : vector<192x64xbf16> to vector<128x64xbf16>
      %59 = vector.extract_strided_slice %48 {offsets = [40, 0], sizes = [128, 64], strides = [1, 1]} : vector<192x64xbf16> to vector<128x64xbf16>
      %60 = vector.extract_strided_slice %48 {offsets = [41, 0], sizes = [128, 64], strides = [1, 1]} : vector<192x64xbf16> to vector<128x64xbf16>
      %61 = tpu.concatenate %52, %53, %54, %55, %56, %57, %58, %59, %60 in 1 : vector<128x64xbf16>, vector<128x64xbf16>, vector<128x64xbf16>, vector<128x64xbf16>, vector<128x64xbf16>, vector<128x64xbf16>, vector<128x64xbf16>, vector<128x64xbf16>, vector<128x64xbf16> -> vector<128x576xbf16>
      %cst_24 = arith.constant dense<0.000000e+00> : vector<128x64xf32>
      %62 = tpu.matmul %61, %51, %cst_24 {dimension_numbers = #tpu.dot_dimension_numbers<[1], [0], [0], [1], [0, 0, 1, 1], [], []>} : vector<128x576xbf16>, vector<576x64xbf16>, vector<128x64xf32> -> vector<128x64xf32>
      %63 = arith.index_cast %arg8 : i32 to index
      %c0_25 = arith.constant 0 : index
      %c0_26 = arith.constant 0 : index
      %64 = vector.load %arg4[%63, %c0_25, %c0_26] : memref<13x1x64xf32, #tpu.memory_space<vmem>>, vector<1x1x64xf32>
      %65 = vector.shape_cast %64 : vector<1x1x64xf32> to vector<1x64xf32>
      %66 = vector.broadcast %65 : vector<1x64xf32> to vector<128x64xf32>
      %67 = arith.addf %62, %66 : vector<128x64xf32>
      %cst_27 = arith.constant 0.000000e+00 : f32
      %68 = vector.broadcast %cst_27 : f32 to vector<128x64xf32>
      %69 = arith.maximumf %67, %68 : vector<128x64xf32>
      %70 = vector.shape_cast %69 : vector<128x64xf32> to vector<8x16x64xf32>
      %cst_28 = arith.constant 0.000000e+00 : f32
      %71 = vector.shape_cast %2 : vector<8x16x1xi1> to vector<8x16x1xi1>
      %72 = vector.broadcast %71 : vector<8x16x1xi1> to vector<8x16x64xi1>
      %73 = vector.broadcast %cst_28 : f32 to vector<8x16x64xf32>
      %74 = arith.select %72, %70, %73 : vector<8x16x64xi1>, vector<8x16x64xf32>
      %75 = vector.shape_cast %74 : vector<8x16x64xf32> to vector<128x64xf32>
      %76 = arith.truncf %75 : vector<128x64xf32> to vector<128x64xbf16>
      %c24_29 = arith.constant 24 : index
      %c0_30 = arith.constant 0 : index
      %77 = vector.load %arg7[%c24_29, %c0_30] : memref<192x64xbf16, #tpu.memory_space<vmem>>, vector<128x64xbf16>
      tpu.vector_store %arg7[%c24_29, %c0_30], %76 {strides = array<i32>} : memref<192x64xbf16, #tpu.memory_space<vmem>>, vector<128x64xbf16>,
    }
    %c13_i32_10 = arith.constant 13 : i32
    %c0_11 = arith.constant 0 : index
    %c0_12 = arith.constant 0 : index
    %30 = vector.load %arg7[%c0_11, %c0_12] : memref<192x64xbf16, #tpu.memory_space<vmem>>, vector<192x64xbf16>
    %c0_13 = arith.constant 0 : index
    %c0_14 = arith.constant 0 : index
    %31 = vector.load %arg5[%c0_13, %c0_14] : memref<576x4xbf16, #tpu.memory_space<vmem>>, vector<576x4xbf16>
    %32 = vector.extract_strided_slice %30 {offsets = [7, 0], sizes = [128, 64], strides = [1, 1]} : vector<192x64xbf16> to vector<128x64xbf16>
    %33 = vector.extract_strided_slice %30 {offsets = [8, 0], sizes = [128, 64], strides = [1, 1]} : vector<192x64xbf16> to vector<128x64xbf16>
    %34 = vector.extract_strided_slice %30 {offsets = [9, 0], sizes = [128, 64], strides = [1, 1]} : vector<192x64xbf16> to vector<128x64xbf16>
    %35 = vector.extract_strided_slice %30 {offsets = [23, 0], sizes = [128, 64], strides = [1, 1]} : vector<192x64xbf16> to vector<128x64xbf16>
    %36 = vector.extract_strided_slice %30 {offsets = [24, 0], sizes = [128, 64], strides = [1, 1]} : vector<192x64xbf16> to vector<128x64xbf16>
    %37 = vector.extract_strided_slice %30 {offsets = [25, 0], sizes = [128, 64], strides = [1, 1]} : vector<192x64xbf16> to vector<128x64xbf16>
    %38 = vector.extract_strided_slice %30 {offsets = [39, 0], sizes = [128, 64], strides = [1, 1]} : vector<192x64xbf16> to vector<128x64xbf16>
    %39 = vector.extract_strided_slice %30 {offsets = [40, 0], sizes = [128, 64], strides = [1, 1]} : vector<192x64xbf16> to vector<128x64xbf16>
    %40 = vector.extract_strided_slice %30 {offsets = [41, 0], sizes = [128, 64], strides = [1, 1]} : vector<192x64xbf16> to vector<128x64xbf16>
    %41 = tpu.concatenate %32, %33, %34, %35, %36, %37, %38, %39, %40 in 1 : vector<128x64xbf16>, vector<128x64xbf16>, vector<128x64xbf16>, vector<128x64xbf16>, vector<128x64xbf16>, vector<128x64xbf16>, vector<128x64xbf16>, vector<128x64xbf16>, vector<128x64xbf16> -> vector<128x576xbf16>
    %cst_15 = arith.constant dense<0.000000e+00> : vector<128x4xf32>
    %42 = tpu.matmul %41, %31, %cst_15 {dimension_numbers = #tpu.dot_dimension_numbers<[1], [0], [0], [1], [0, 0, 1, 1], [], []>} : vector<128x576xbf16>, vector<576x4xbf16>, vector<128x4xf32> -> vector<128x4xf32>
    %43 = vector.shape_cast %42 : vector<128x4xf32> to vector<8x16x4xf32>
    %44 = vector.extract_strided_slice %43 {offsets = [0, 0, 0], sizes = [8, 8, 4], strides = [1, 1, 1]} : vector<8x16x4xf32> to vector<8x8x4xf32>
    %c0_16 = arith.constant 0 : index
    %c0_17 = arith.constant 0 : index
    %c0_18 = arith.constant 0 : index
    %c0_19 = arith.constant 0 : index
    %45 = vector.load %arg6[%c0_16, %c0_17, %c0_18, %c0_19] : memref<1x8x8x4xf32, #tpu.memory_space<vmem>>, vector<1x8x8x4xf32>
    %46 = vector.shape_cast %45 : vector<1x8x8x4xf32> to vector<8x8x4xf32>
    %47 = vector.shape_cast %44 : vector<8x8x4xf32> to vector<1x8x8x4xf32>
    tpu.vector_store %arg6[%c0_16, %c0_17, %c0_18, %c0_19], %47 {strides = array<i32>} : memref<1x8x8x4xf32, #tpu.memory_space<vmem>>, vector<1x8x8x4xf32>,
    return
  }
  func.func @transform_0(%arg0: i32) -> (i32, i32, i32) {
    %c0_i32 = arith.constant 0 : i32
    %c0_i32_0 = arith.constant 0 : i32
    %c0_i32_1 = arith.constant 0 : i32
    return %arg0, %c0_i32, %c0_i32_0 : i32, i32, i32
  }
  func.func @transform_1(%arg0: i32) -> (i32, i32) {
    %c0_i32 = arith.constant 0 : i32
    %c0_i32_0 = arith.constant 0 : i32
    %c0_i32_1 = arith.constant 0 : i32
    return %c0_i32, %c0_i32_0 : i32, i32
  }
  func.func @transform_2(%arg0: i32) -> (i32, i32, i32) {
    %c0_i32 = arith.constant 0 : i32
    %c0_i32_0 = arith.constant 0 : i32
    %c0_i32_1 = arith.constant 0 : i32
    %c0_i32_2 = arith.constant 0 : i32
    return %c0_i32, %c0_i32_0, %c0_i32_1 : i32, i32, i32
  }
  func.func @transform_3(%arg0: i32) -> (i32, i32, i32) {
    %c0_i32 = arith.constant 0 : i32
    %c0_i32_0 = arith.constant 0 : i32
    %c0_i32_1 = arith.constant 0 : i32
    %c0_i32_2 = arith.constant 0 : i32
    return %c0_i32, %c0_i32_0, %c0_i32_1 : i32, i32, i32
  }
  func.func @transform_4(%arg0: i32) -> (i32, i32) {
    %c0_i32 = arith.constant 0 : i32
    %c0_i32_0 = arith.constant 0 : i32
    %c0_i32_1 = arith.constant 0 : i32
    return %c0_i32, %c0_i32_0 : i32, i32
  }
  func.func @transform_5(%arg0: i32) -> (i32, i32, i32, i32) {
    %c0_i32 = arith.constant 0 : i32
    %c0_i32_0 = arith.constant 0 : i32
    %c0_i32_1 = arith.constant 0 : i32
    %c0_i32_2 = arith.constant 0 : i32
    return %arg0, %c0_i32, %c0_i32_0, %c0_i32_1 : i32, i32, i32, i32
  }
}

</mosaic_0001>

<bundles_post_ra>
// kernel: _lambda_.1
= control target key start
LH: loop header
LB: loop body
LE: loop exit
PB: predicated region body
PF: predicated region fallthrough
CT: control target
= control target key end

     0   :  { %10 = vsyncpa [#allocation4], 0  ;;  %s6189_s0 = inlined_call_operand.vmem [shape: bf16[2,192,8], index: 0, kind: input, shape index: {}]   ;;  %s6190_s1 = inlined_call_operand.hbm [shape: bf16[72,64], index: 1, kind: input, shape index: {}]   ;;  %s6191_s2 = inlined_call_operand.hbm [shape: bf16[13,576,64], index: 2, kind: input, shape index: {}]   ;;  %s6192_s3 = inlined_call_operand.hbm [shape: f32[13,1,64], index: 3, kind: input, shape index: {}]   ;;  %s6193_s4 = inlined_call_operand.hbm [shape: bf16[576,4], index: 4, kind: input, shape index: {}]   ;;  %s6194_s5 = inlined_call_operand.vmem [shape: f32[2,8,8,4], index: 5, kind: output, shape index: {}]  }
   0x1   :  { %11 = vsyncpa [#allocation6], 0 }
   0x2   :  { %12 = vsyncpa [#allocation9], 0  ;;  %s4657_s18 = smov 0  }
   0x3 LB: > { %s4663_s19 = sadd.s32 4294967295, %s4601_s18   ;;  %p3748_p0 = scmp.ge.s32.totalorder %s4601_s18, 1  ;;  %s4601_s18 = sphi %s4657_s18, %s18_s18  }
   0x4   : > { %p159_p1 = scmp.lt.s32.totalorder %s4601_s18, 3  ;;  %p6195_p2 = scmp.eq.s32.totalorder %s4663_s19, 0 }
   0x5   : > { %s4607_s21 = smov [#allocation5]   ;;  %s4608_s23 = smov [#allocation3]  }
   0x6   : > { %p4668_p3 = pnand %p3748_p0, %p159_p1  ;;  %s184_s22 = sshll.u32 %s4607_s21, 4  ;;  %s4672_s22 = int_to_ptr.vmem [resolvable:$true] %s184_s22 }
   0x7   : > { %s171_s24 = sshll.u32 %s4608_s23, 4  ;;  %s4609_s26 = smov [#allocation7]   ;;  %s4676_s24 = int_to_ptr.vmem [resolvable:$true] %s171_s24 }
   0x8   : > { %s6197_s20 = scalar_select %p4668_p3, 1, 0 }
   0x9   : > { %p4307_p4 = pneg %p4668_p3  ;;  %s197_s27 = sshll.u32 %s4609_s26, 4  ;;  %s4684_s27 = int_to_ptr.vmem [resolvable:$true] %s197_s27 }
   0xa   : > { %s4467_s30 = scalar_lea.hbm %s6191_s2, 59904 }
   0xb   : > { %p4680_p5 = pnand %p6195_p2, %p4307_p4  ;;  %p4468_p6 = scmp.ne.s32.totalorder %s6191_s2, %s4467_s30 }
   0xc   : > { %p4474_p10 = scmp.lt.u32.totalorder %s4467_s30, %s6191_s2 }
   0xd   : > { %p4694_p7 = pneg %p4680_p5 }
   0xf   : > { %p4470_p8 = pnand %p4694_p7, %p4468_p6 }
  0x11   : > { %p4471_p9 = pneg %p4470_p8 }
  0x13   : > { %p4476_p11 = pnand %p4474_p10, %p4471_p9 }
  0x15   : > { %4479 = shalt.err (!%p4476_p11)
}
  0x16   : > { %s4480_s11 = scalar_lea.vmem %s4672_s22, 59904  ;;  %p4488_p1 = scmp.lt.s32.totalorder %s4672_s22, %s4672_s22 }
  0x17   : > { %p4481_p12 = scmp.ne.s32.totalorder %s4672_s22, %s4480_s11  ;;  %p4489_p4 = scmp.lt.s32.totalorder %s4480_s11, %s4480_s11 }
  0x19   : > { %p4483_p13 = pnand %p4481_p12, %p4694_p7  ;;  %p4490_p6 = por %p4489_p4, %p4488_p1 }
  0x1b   : > { %p4484_p0 = pneg %p4483_p13 }
  0x1d   : > { %p4491_p8 = pnand %p4490_p6, %p4484_p0 }
  0x1f   : > { %4494 = shalt.err (!%p4491_p8)
}
  0x20   : > { %s4610_s12 = smov 64   ;;  %s4611_s13 = smov 4  }
  0x21   : > { %4313 = dma.hbm_to_vmem [thread:$0]  (!%p4680_p5), %s6191_s2, 59904, %s4672_s22, [#allocation6], %s4610_s12, %s4610_s12, %s4611_s13  }
  0x22   : > { %s4495_s21 = scalar_lea.hbm %s6190_s1, 576 }
  0x23   : > { %p4496_p9 = scmp.ne.s32.totalorder %s6190_s1, %s4495_s21  ;;  %p4502_p12 = scmp.lt.u32.totalorder %s4495_s21, %s6190_s1 }
  0x25   : > { %p4498_p10 = pnand %p4496_p9, %p4694_p7 }
  0x27   : > { %p4499_p11 = pneg %p4498_p10 }
  0x29   : > { %p4504_p13 = pnand %p4502_p12, %p4499_p11 }
  0x2b   : > { %4507 = shalt.err (!%p4504_p13)
}
  0x2c   : > { %s4508_s22 = scalar_lea.vmem %s4676_s24, 576  ;;  %p4516_p6 = scmp.lt.s32.totalorder %s4676_s24, %s4676_s24 }
  0x2d   : > { %p4509_p0 = scmp.ne.s32.totalorder %s4676_s24, %s4508_s22  ;;  %p4517_p8 = scmp.lt.s32.totalorder %s4508_s22, %s4508_s22 }
  0x2f   : > { %p4511_p1 = pnand %p4509_p0, %p4694_p7  ;;  %p4518_p9 = por %p4517_p8, %p4516_p6 }
  0x31   : > { %p4512_p4 = pneg %p4511_p1 }
  0x33   : > { %p4519_p10 = pnand %p4518_p9, %p4512_p4 }
  0x35   : > { %4522 = shalt.err (!%p4519_p10)
}
  0x36   : > { %4310 = dma.hbm_to_vmem [thread:$0]  (!%p4680_p5), %s6190_s1, 576, %s4676_s24, [#allocation4], %s4610_s12, %s4610_s12, %s4611_s13  }
  0x37   : > { %s4523_s10 = scalar_lea.hbm %s6192_s3, 208 }
  0x38   : > { %p4524_p11 = scmp.ne.s32.totalorder %s6192_s3, %s4523_s10  ;;  %p4530_p0 = scmp.lt.u32.totalorder %s4523_s10, %s6192_s3 }
  0x3a   : > { %p4526_p12 = pnand %p4524_p11, %p4694_p7 }
  0x3c   : > { %p4527_p13 = pneg %p4526_p12 }
  0x3e   : > { %p4532_p1 = pnand %p4530_p0, %p4527_p13 }
  0x40   : > { %4535 = shalt.err (!%p4532_p1)
}
  0x41   : > { %s4536_s24 = scalar_lea.vmem %s4684_s27, 208  ;;  %s4543_s17 = scalar_lea.vmem %s4684_s27, 224 }
  0x42   : > { %p4537_p4 = scmp.ne.s32.totalorder %s4684_s27, %s4536_s24  ;;  %p4544_p9 = scmp.lt.s32.totalorder %s4684_s27, %s4684_s27 }
  0x43   : > { %p4545_p10 = scmp.lt.s32.totalorder %s4543_s17, %s4536_s24 }
  0x44   : > { %p4539_p6 = pnand %p4537_p4, %p4694_p7 }
  0x45   : > { %p4546_p11 = por %p4545_p10, %p4544_p9 }
  0x46   : > { %p4540_p8 = pneg %p4539_p6 }
  0x48   : > { %p4547_p12 = pnand %p4546_p11, %p4540_p8 }
  0x4a   : > { %4550 = shalt.err (!%p4547_p12)
}
  0x4b   : > { %s4612_s21 = smov 16   ;;  %s4613_s23 = smov 1  }
  0x4c   : > { %4316 = dma.hbm_to_vmem [thread:$0]  (!%p4680_p5), %s6192_s3, 208, %s4684_s27, [#allocation6], %s4612_s21, %s4612_s21, %s4613_s23  }
  0x4d   : > { %s4614_s29 = smov [#allocation8]   ;;  %s4551_s7 = scalar_lea.hbm %s6193_s4, 4608 }
  0x4e   : > { %s210_s22 = sshll.u32 %s4614_s29, 4  ;;  %p4552_p13 = scmp.ne.s32.totalorder %s6193_s4, %s4551_s7  ;;  %s211_s22 = int_to_ptr.vmem [resolvable:$true] %s210_s22 }
  0x4f   : > { %p4558_p4 = scmp.lt.u32.totalorder %s4551_s7, %s6193_s4 }
  0x50   : > { %p4554_p0 = pnand %p4552_p13, %p4694_p7 }
  0x52   : > { %p4555_p1 = pneg %p4554_p0 }
  0x54   : > { %p4560_p6 = pnand %p4558_p4, %p4555_p1 }
  0x56   : > { %4563 = shalt.err (!%p4560_p6)
}
  0x57   : > { %s4564_s27 = scalar_lea.vmem %s211_s22, 4608  ;;  %p4572_p11 = scmp.lt.s32.totalorder %s211_s22, %s211_s22 }
  0x58   : > { %p4565_p8 = scmp.ne.s32.totalorder %s211_s22, %s4564_s27  ;;  %p4573_p12 = scmp.lt.s32.totalorder %s4564_s27, %s4564_s27 }
  0x5a   : > { %p4567_p9 = pnand %p4565_p8, %p4694_p7  ;;  %p4574_p2 = por %p4573_p12, %p4572_p11 }
  0x5c   : > { %p4568_p10 = pneg %p4567_p9 }
  0x5e   : > { %p4575_p3 = pnand %p4574_p2, %p4568_p10 }
  0x60   : > { %4578 = shalt.err (!%p4575_p3)
}
  0x61   : > { %4319 = dma.hbm_to_vmem [thread:$0]  (!%p4680_p5), %s6193_s4, 4608, %s211_s22, [#allocation9], %s4610_s12, %s4610_s12, %s4611_s13  }
  0x62   : > { %p6200_p13 = scmp.ne.s32.totalorder %s6197_s20, 0 }
  0x63   : > { %p6201_p7 = scmp.eq.s32.totalorder (!%p6200_p13), %s4663_s19, 0 }
  0x64   : > { %234 = sbr.rel (%p6200_p13) target bundleno = 1483 (0x5cb), region = 40 }
  0x6b   : > { %4588 = dma.done.wait (%p6201_p7), [#allocation4], 576   ;;  %p6202_p0 = pmov %p6201_p7 }
  0x6d   : > { %4590 = vsyncadd (%p6202_p0), [#allocation4], 4294966720  ;;  %p6203_p2 = pmov %p6202_p0 }
  0x6e   : > { %p6204_p3 = pmov %p6202_p0 }
  0x6f   : > { %4592 = dma.done.wait (%p6203_p2), [#allocation6], 60112  }
  0x70   : > { %4594 = vsyncadd (%p6204_p3), [#allocation6], 4294907184  ;;  %p6205_p1 = pmov %p6202_p0 }
  0x71   : > { %p6206_p5 = pmov %p6202_p0 }
  0x72   : > { %4596 = dma.done.wait (%p6205_p1), [#allocation9], 4608  }
  0x73   : > { %4598 = vsyncadd (%p6206_p5), [#allocation9], 4294962688  ;;  %p274_p4 = scmp.lt.s32.totalorder %s4663_s19, 1  ;;  %vm478_vm0 = vcmask 1042432   ;;  %vm385_vm1 = vsmask.f32 3328 }
  0x74   : > { %s4616_s23 = smov 8   ;;  %s4617_s26 = smov 24   ;;  %vm948_vm2 = vcmask 1043456   ;;  %vm664_vm3 = vcmask 64512   ;;  %vm692_vm4 = vcmask 130048   ;;  %vm711_vm5 = vcmask 195584  }
  0x75   : > { %s6208_s19 = smov (!%p274_p4, %s4663_s19), 1  ;;  %s4618_s28 = smov 32   ;;  %vm730_vm6 = vcmask 261120   ;;  %vm749_vm7 = vcmask 326656   ;;  %vm768_vm8 = vcmask 392192   ;;  %vm787_vm9 = vcmask 457728  }
  0x76   : > { %s4290_s20 = smul.u32 96, %s6208_s19  ;;  %s3893_s25 = sshll.u32 %s6208_s19, 6  ;;  %vm290_vm10 = vcmask 523264   ;;  %vm824_vm11 = vsmask.f32 4352  ;;  %vm923_vm12 = vcmask 588800  }
  0x77   : > { %s4808_s13 = scalar_lea.vmem %s6194_s5, %s3893_s25  ;;  %s4615_s19 = smov 16   ;;  %vm1126_vm13 = vcmask 523268   ;;  %vm1135_vm14 = vcmask 519168  }
  0x78   : > { %s4813_s21 = scalar_lea.vmem %s6189_s0, %s4290_s20  ;;  %s4619_s29 = smov 40  }
  0x79   : > { %v4816_v0 = vld [vmem:[%s4813_s21 + $0x4] sm:$0xf]  ;;  %v4819_v1 = vld [vmem:[%s4813_s21 + $0x8] sm:$0xf]  ;;  %v4822_v2 = vld [vmem:[%s4813_s21 + $0xc] sm:$0xf] }
  0x7a   : > { %v3771_v3 = vcombine.low %v4816_v0, %v4819_v1  ;;  %v4827_v4 = vld [vmem:[%s4813_s21 + $0x10] sm:$0xf]  ;;  %v4830_v5 = vld [vmem:[%s4813_s21 + $0x1c] sm:$0xf]  ;;  %v4833_v6 = vld [vmem:[%s4813_s21 + $0x20] sm:$0xf] }
  0x7b   : > { %v3772_v7 = vcombine.low %v4822_v2, %v4827_v4  ;;  %v4838_v8 = vld [vmem:[%s4813_s21 + $0x24] sm:$0xf]  ;;  %v4841_v9 = vld [vmem:[%s4813_s21 + $0x28] sm:$0xf]  ;;  %v4845_v10 = vcombine.low %v4830_v5, %v4833_v6  ;;  %v4848_v11 = vld [vmem:[%s4813_s21 + $0x2c] sm:$0xf] }
  0x7c   : > { %v479_v12 = vrot.slane %v3771_v3, 5  ;;  %v3775_v13 = vcombine.low %v4838_v8, %v4841_v9  ;;  %v4853_v14 = vld [vmem:[%s4813_s21 + $0x30] sm:$0xf]  ;;  %v387_v15 = vshrl.u32 %v3771_v3, 16  ;;  %v390_v16 = vshll.u32 %v3771_v3, 16  ;;  %s4620_s22 = smov 48  }
  0x7d   : > { %v4855_v17 = vrot.slane %v3772_v7, 5  ;;  %v484_v18 = vrot.slane %v4845_v10, 5  ;;  %v4860_v19 = vcombine.low %v4848_v11, %v4853_v14  ;;  %v413_v20 = vshrl.u32 %v4845_v10, 16  ;;  %v4866_v25 = vld [vmem:[%s4813_s21 + $0x14] sm:$0xf]  ;;  %s4621_s30 = smov 56  }
  0x7e   : > { %496 = vrot.lane.b32.xlu0 %v479_v12, %s4615_s19  ;;  %v486_v21 = vrot.slane %v3775_v13, 5  ;;  %v389_v22 = vrot.slane %v387_v15, 4  ;;  %v392_v23 = vrot.slane %v390_v16, 5  ;;  %v416_v24 = vshll.u32 %v4845_v10, 16  ;;  %v4872_v30 = vld [vmem:[%s4813_s21 + $0x18] sm:$0xf] }
  0x7f   : > { %v481_v26 = vsel %vm478_vm0, %v479_v12, %v4855_v17  ;;  %v488_v27 = vrot.slane %v4860_v19, 5  ;;  %v415_v28 = vrot.slane %v413_v20, 4  ;;  %v422_v29 = vshrl.u32 %v3775_v13, 16  ;;  %v4881_v35 = vld [vmem:[%s4813_s21 + $0x34] sm:$0xf]  ;;  %s4622_s6 = smov 64  }
  0x80   : > { %498 = vrot.lane.b32.xlu1 %v481_v26, %s4615_s19  ;;  %v4878_v31 = vsel %vm478_vm0, %v484_v18, %v486_v21  ;;  %v393_v32 = vor.u32 %v392_v23, %v389_v22  ;;  %v418_v33 = vrot.slane %v416_v24, 5  ;;  %v425_v34 = vshll.u32 %v3775_v13, 16  ;;  %v4884_v36 = vld [vmem:[%s4813_s21 + $0x38] sm:$0xf]  ;;  %v4917_v63 = vld [vmem:[%s4813_s21 + $0x3c] sm:$0xf] }
  0x81   : > { %v4889_v37 = vsel %vm478_vm0, %v486_v21, %v488_v27  ;;  %v424_v38 = vrot.slane %v422_v29, 4  ;;  %v395_v39 = vshrl.u32 %v3772_v7, 16  ;;  %v398_v40 = vshll.u32 %v3772_v7, 16  ;;  %v4920_v3 = vld [vmem:[%s4813_s21 + $0x40] sm:$0xf]  ;;  %s5358_s7 = smov 0  }
  0x82   : > { %504 = vrot.lane.b32.xlu0 %v4878_v31, %s4615_s19  ;;  %v4893_v41 = vor.u32 %v418_v33, %v415_v28  ;;  %v427_v42 = vrot.slane %v425_v34, 5  ;;  %v431_v43 = vshrl.u32 %v4860_v19, 16  ;;  %v434_v44 = vshll.u32 %v4860_v19, 16  ;;  %v4937_v21 = vld [vmem:[%s4813_s21 + $0x48] sm:$0xf] }
  0x83   : > { %v397_v45 = vrot.slane %v395_v39, 4  ;;  %v400_v46 = vrot.slane %v398_v40, 5  ;;  %v3773_v47 = vcombine.low %v4866_v25, %v4872_v30  ;;  %v4901_v48 = vcombine.low %v4881_v35, %v4884_v36  ;;  %v4949_v24 = vld [vmem:[%s4813_s21] sm:$0xf] }
  0x84   : > { %506 = vrot.lane.b32.xlu1 %v4889_v37, %s4615_s19  ;;  %v428_v49 = vor.u32 %v427_v42, %v424_v38  ;;  %v433_v50 = vrot.slane %v431_v43, 4  ;;  %v436_v51 = vrot.slane %v434_v44, 5  ;;  %v3778_v20 = vcombine.low %v4917_v63, %v4920_v3  ;;  %v4971_v38 = vld [vmem:[%s4813_s21 + $0x4c] sm:$0xf]  ;;  %v4978_v44 = vld [vmem:[%s4813_s21 + $0x50] sm:$0xf] }
  0x85   : > { %v4905_v52 = vor.u32 %v400_v46, %v397_v45  ;;  %v404_v53 = vshrl.u32 %v3773_v47, 16  ;;  %v407_v54 = vshll.u32 %v3773_v47, 16  ;;  %v440_v55 = vshrl.u32 %v4901_v48, 16 }
  0x86   : > { %457 = vrot.lane.b32.xlu0 %v393_v32, %s4616_s23  ;;  %v4911_v56 = vsel %vm385_vm1, %v4893_v41, %v428_v49  ;;  %v437_v57 = vor.u32 %v436_v51, %v433_v50  ;;  %v443_v58 = vshll.u32 %v4901_v48, 16  ;;  %v4924_v12 = vrot.slane %v3773_v47, 5  ;;  %v4388_v50 = vld [vmem:[%s4813_s21 + $0x54] ss:$0 sps:$4 sm:$0xff]  }
  0x87   : > { %v402_v59 = vsel %vm385_vm1, %v393_v32, %v4905_v52  ;;  %v406_v60 = vrot.slane %v404_v53, 4  ;;  %v409_v61 = vrot.slane %v407_v54, 5  ;;  %v442_v62 = vrot.slane %v440_v55, 4  ;;  %v4955_v32 = vld [vmem:[%s4813_s21 + $0x44] sm:$0xf] }
  0x88   : > { %465 = vrot.lane.b32.xlu1 %v4911_v56, %s4616_s23  ;;  %v445_v7 = vrot.slane %v443_v58, 5  ;;  %v4927_v13 = vsel %vm385_vm1, %v428_v49, %v437_v57  ;;  %v4946_v23 = vcombine.low %v4833_v6, %v4838_v8  ;;  %v490_v26 = vrot.slane %v4901_v48, 5  ;;  %v4392_v48 = vld [vmem:[#allocation3 + $0x18] sm:$0xff]  }
  0x89   : > { %v4929_v15 = vor.u32 %v409_v61, %v406_v60  ;;  %v449_v28 = vshrl.u32 %v3778_v20, 16  ;;  %v452_v29 = vshll.u32 %v3778_v20, 16  ;;  %v4964_v6 = vsel %vm478_vm0, %v4855_v17, %v4924_v12 }
  0x8a   : > { %459 = vrot.lane.b32.xlu0 %v402_v59, %s4616_s23  ;;  %v4932_v16 = vor.u32 %v445_v7, %v442_v62  ;;  %v3782_v8 = vcombine.low %v4955_v32, %v4937_v21  ;;  %v3779_v34 = vcombine.low %v4955_v32, %v4955_v32  ;;  %v492_v42 = vrot.slane %v3778_v20, 5 }
  0x8b   : > { %v4942_v22 = vsel %vm385_vm1, %v4905_v52, %v4929_v15  ;;  %v451_v39 = vrot.slane %v449_v28, 4  ;;  %v454_v40 = vrot.slane %v452_v29, 5  ;;  %v3762_v43 = vcombine.low %v4949_v24, %v4816_v0 }
  0x8c   : > { %467 = vrot.lane.b32.xlu1 %v4927_v13, %s4616_s23  ;;  %v4959_v33 = vsel %vm385_vm1, %v437_v57, %v4932_v16  ;;  %v538_v45 = vshrl.u32 %v3782_v8, 16  ;;  %v541_v46 = vshll.u32 %v3782_v8, 16  ;;  %v567_v47 = vrot.slane %v3782_v8, 5 }
  0x8d   : > { %v494_v49 = vrot.slane %v3779_v34, 5  ;;  %v4988_v51 = vsel %vm478_vm0, %v488_v27, %v490_v26  ;;  %v3783_v53 = vcombine.low %v4971_v38, %v4971_v38  ;;  %v5002_v19 = vcombine.low %v4819_v1, %v4822_v2 }
  0x8e   : > { %461 = vrot.lane.b32.xlu0 %v4942_v22, %s4616_s23  ;;  %v540_v54 = vrot.slane %v538_v45, 4  ;;  %v543_v55 = vrot.slane %v541_v46, 5  ;;  %v4993_v57 = vsel %vm478_vm0, %v492_v42, %v567_v47  ;;  %v3786_v59 = vcombine.low %v4971_v38, %v4978_v44 }
  0x8f   : > { %v4996_v58 = vsel %vm478_vm0, %v492_v42, %v494_v49  ;;  %v569_v27 = vrot.slane %v3783_v53, 5  ;;  %v5008_v60 = vcombine.low %v4827_v4, %v4866_v25  ;;  %v5010_v61 = vor.u32 %v454_v40, %v451_v39 }
  0x90   : > { %469 = vrot.lane.b32.xlu1 %v4959_v33, %s4616_s23  ;;  %v5012_v62 = vor.u32 %v543_v55, %v540_v54  ;;  %v644_v7 = vrot.slane %v4388_v50, 5  ;;  %v613_v1 = vshrl.u32 %v3786_v59, 16  ;;  %v616_v2 = vshll.u32 %v3786_v59, 16 }
  0x91   : > { %v5017_v20 = vsel %vm478_vm0, %v567_v47, %v569_v27  ;;  %v642_v28 = vrot.slane %v3786_v59, 5  ;;  %v5021_v29 = vcombine.low %v4841_v9, %v4848_v11  ;;  %v5040_v9 = vcombine.low %v4853_v14, %v4881_v35 }
  0x92   : > { %500 = vrot.lane.b32.xlu0 %v4964_v6, %s4615_s19  ;;  %v5026_v4 = vsel %vm385_vm1, %v5010_v61, %v5012_v62  ;;  %v615_v25 = vrot.slane %v613_v1, 4  ;;  %v618_v8 = vrot.slane %v616_v2, 5  ;;  %v5048_v40 = vcombine.low %v4872_v30, %v4830_v5 }
  0x93   : > { %v5031_v34 = vsel %vm478_vm0, %v567_v47, %v642_v28  ;;  %v5034_v39 = vsel %vm478_vm0, %v642_v28, %v644_v7  ;;  %v5059_v14 = vcombine.low %v4884_v36, %v4917_v63  ;;  %v420_v5 = vsel %vm385_vm1, %v4929_v15, %v4893_v41  ;;  %v4391_v41 = vld [vmem:[#allocation3 + $0x10] sm:$0xff]  }
  0x94   : > { %508 = vrot.lane.b32.xlu1 %v4988_v51, %s4615_s19  ;;  %v5042_v11 = vor.u32 %v618_v8, %v615_v25  ;;  %v456_v30 = vsel %vm385_vm1, %v4932_v16, %v5010_v61  ;;  %v485_v35 = vsel %vm478_vm0, %v4924_v12, %v484_v18  ;;  %v493_v36 = vsel %vm478_vm0, %v490_v26, %v492_v42  ;;  %v4390_v18 = vld [vmem:[#allocation3 + $0x8] sm:$0xff]  }
  0x95   : > { %v3780_v10 = vcombine.low %v4920_v3, %v4955_v32  ;;  %v3785_v0 = vcombine.low %v4978_v44, %v4978_v44 }
  0x96   : > { %518 = vrot.lane.b32.xlu0 %v5002_v19, %s4617_s26  ;;  %v5053_v45 = vsel %vm385_vm1, %v5012_v62, %v5042_v11 }
  0x98   : > { %520 = vrot.lane.b32.xlu1 %v5008_v60, %s4617_s26 }
  0x9a   : > { %526 = vrot.lane.b32.xlu0 %v5021_v29, %s4617_s26 }
  0x9c   : > { %528 = vrot.lane.b32.xlu1 %v5040_v9, %s4617_s26 }
  0x9e   : > { %522 = vrot.lane.b32.xlu0 %v5048_v40, %s4617_s26 }
  0xa0   : > { %530 = vrot.lane.b32.xlu1 %v5059_v14, %s4617_s26 }
  0xa2   : > { %546 = vrot.lane.b32.xlu0 %v4905_v52, %s4618_s28  ;;  %v4394_v52 = vld [vmem:[#allocation3 + $0x20] ss:$0 sps:$4 sm:$0xff]  }
  0xa3   : > { %v950_v63 = vsel %vm948_vm2, %v4394_v52, 0 }
  0xa4   : > { %548 = vrot.lane.b32.xlu1 %v4942_v22, %s4618_s28 }
  0xa6   : > { %554 = vrot.lane.b32.xlu0 %v4927_v13, %s4618_s28 }
  0xa8   : > { %556 = vrot.lane.b32.xlu1 %v4959_v33, %s4618_s28 }
  0xaa   : > { %550 = vrot.lane.b32.xlu0 %v420_v5, %s4618_s28 }
  0xac   : > { %558 = vrot.lane.b32.xlu1 %v456_v30, %s4618_s28 }
  0xae   : > { %571 = vrot.lane.b32.xlu0 %v4855_v17, %s4619_s29  ;;  %v4389_v17 = vld [vmem:[#allocation3] sm:$0xff]  }
  0xaf   : > { %4188 = vmatprep.subr.bf16.mxu0 %v4389_v17  ;;  %4262 = vmatprep.subr.bf16.mxu1 %v4389_v17 }
  0xb0   : > { %573 = vrot.lane.b32.xlu1 %v4964_v6, %s4619_s29  ;;  %4189 = vmatpush3.bf16.msra.mxu0 %v4389_v17  ;;  %v3784_v6 = vcombine.low %v4937_v21, %v4971_v38 }
  0xb1   : > { %4267 = vmatpush3.bf16.msra.mxu1 %v4389_v17  ;;  %4190 = vmatprep.subr.bf16.mxu0 %v4390_v18 }
  0xb2   : > { %579 = vrot.lane.b32.xlu0 %v4889_v37, %s4619_s29  ;;  %4263 = vmatprep.subr.bf16.mxu1 %v4390_v18 }
  0xb4   : > { %581 = vrot.lane.b32.xlu1 %v4988_v51, %s4619_s29  ;;  %4191 = vmatpush3.bf16.msra.mxu0 %v4390_v18 }
  0xb5   : > { %4268 = vmatpush3.bf16.msra.mxu1 %v4390_v18  ;;  %4192 = vmatprep.subr.bf16.mxu0 %v4391_v41 }
  0xb6   : > { %575 = vrot.lane.b32.xlu0 %v485_v35, %s4619_s29  ;;  %4264 = vmatprep.subr.bf16.mxu1 %v4391_v41 }
  0xb8   : > { %583 = vrot.lane.b32.xlu1 %v493_v36, %s4619_s29  ;;  %4193 = vmatpush3.bf16.msra.mxu0 %v4391_v41 }
  0xb9   : > { %4269 = vmatpush3.bf16.msra.mxu1 %v4391_v41  ;;  %4194 = vmatprep.subr.bf16.mxu0 %v4392_v48 }
  0xba   : > { %593 = vrot.lane.b32.xlu0 %v5008_v60, %s4620_s22  ;;  %4265 = vmatprep.subr.bf16.mxu1 %v4392_v48 }
  0xbc   : > { %595 = vrot.lane.b32.xlu1 %v5048_v40, %s4620_s22  ;;  %4195 = vmatpush3.bf16.msra.mxu0 %v4392_v48 }
  0xbd   : > { %4270 = vmatpush3.bf16.msra.mxu1 %v4392_v48  ;;  %4288 = vmatprep.subr.msk.bf16.mxu0 %vm948_vm2, %v4394_v52 }
  0xbe   : > { %601 = vrot.lane.b32.xlu0 %v5040_v9, %s4620_s22  ;;  %4289 = vmatprep.subr.msk.bf16.mxu1 %vm948_vm2, %v4394_v52 }
  0xc0   : > { %603 = vrot.lane.b32.xlu1 %v5059_v14, %s4620_s22  ;;  %4197 = vmatpush3.bf16.msra.mxu0 %v950_v63 }
  0xc1   : > { %4271 = vmatpush3.bf16.msra.mxu1 %v950_v63 }
  0xc2   : > { %597 = vrot.lane.b32.xlu0 %v4946_v23, %s4620_s22 }
  0xc4   : > { %605 = vrot.lane.b32.xlu1 %v3780_v10, %s4620_s22 }
  0xc6   : > { %621 = vrot.lane.b32.xlu0 %v4929_v15, %s4621_s30 }
  0xc8   : > { %623 = vrot.lane.b32.xlu1 %v420_v5, %s4621_s30 }
  0xca   : > { %629 = vrot.lane.b32.xlu0 %v4959_v33, %s4621_s30 }
  0xcc   : > { %631 = vrot.lane.b32.xlu1 %v456_v30, %s4621_s30 }
  0xce   : > { %625 = vrot.lane.b32.xlu0 %v4911_v56, %s4621_s30 }
  0xd0   : > { %633 = vrot.lane.b32.xlu1 %v5026_v4, %s4621_s30 }
  0xd2   : > { %646 = vrot.lane.b32.xlu0 %v4924_v12, %s4622_s6  ;;  %v3781_v12 = vcombine.low %v4937_v21, %v4937_v21 }
  0xd4   : > { %648 = vrot.lane.b32.xlu1 %v485_v35, %s4622_s6 }
  0xd6   : > { %654 = vrot.lane.b32.xlu0 %v4988_v51, %s4622_s6 }
  0xd8   : > { %656 = vrot.lane.b32.xlu1 %v493_v36, %s4622_s6 }
  0xda   : > { %463 = vrot.lane.b32.xlu0 %v420_v5, %s4616_s23 }
  0xdc   : > { %471 = vrot.lane.b32.xlu1 %v456_v30, %s4616_s23 }
  0xde   : > { %650 = vrot.lane.b32.xlu0 %v4878_v31, %s4622_s6 }
  0xe0   : > { %658 = vrot.lane.b32.xlu1 %v4993_v57, %s4622_s6 }
  0xe2   : > { %473 = vrot.lane.b32.xlu0 %v5010_v61, %s4616_s23 }
  0xe4   : > { %502 = vrot.lane.b32.xlu1 %v485_v35, %s4615_s19 }
  0xe6   : > { %510 = vrot.lane.b32.xlu0 %v493_v36, %s4615_s19 }
  0xe8   : > { %512 = vrot.lane.b32.xlu1 %v4996_v58, %s4615_s19 }
  0xea   : > { %524 = vrot.lane.b32.xlu0 %v4946_v23, %s4617_s26 }
  0xec   : > { %532 = vrot.lane.b32.xlu1 %v3780_v10, %s4617_s26 }
  0xee   : > { %534 = vrot.lane.b32.xlu0 %v3781_v12, %s4617_s26 }
  0xf0   : > { %552 = vrot.lane.b32.xlu1 %v4911_v56, %s4618_s28  ;;  %v497_v15 = vpop.permute.xlu0 %496 }
  0xf2   : > { %v499_v16 = vpop.permute.xlu1 %498  ;;  %560 = vrot.lane.b32.xlu0 %v5026_v4, %s4618_s28 }
  0xf4   : > { %562 = vrot.lane.b32.xlu1 %v5012_v62, %s4618_s28  ;;  %v505_v22 = vpop.permute.xlu0 %504 }
  0xf6   : > { %v507_v26 = vpop.permute.xlu1 %506  ;;  %577 = vrot.lane.b32.xlu0 %v4878_v31, %s4619_s29 }
  0xf8   : > { %585 = vrot.lane.b32.xlu1 %v4993_v57, %s4619_s29  ;;  %v458_v32 = vpop.permute.xlu0 %457 }
  0xf9   : > { %v667_v56 = vsel %vm664_vm3, %v3762_v43, %v458_v32 }
  0xfa   : > { %v466_v33 = vpop.permute.xlu1 %465  ;;  %587 = vrot.lane.b32.xlu0 %v5017_v20, %s4619_s29  ;;  %v694_v31 = vsel %vm692_vm4, %v667_v56, %v497_v15 }
  0xfb   : > { %v679_v42 = vsel %vm664_vm3, %v4946_v23, %v466_v33 }
  0xfc   : > { %599 = vrot.lane.b32.xlu1 %v5021_v29, %s4620_s22  ;;  %v460_v46 = vpop.permute.xlu0 %459  ;;  %v5174_v24 = vsel %vm692_vm4, %v679_v42, %v505_v22 }
  0xfd   : > { %v670_v43 = vsel %vm664_vm3, %v5002_v19, %v460_v46 }
  0xfe   : > { %v468_v47 = vpop.permute.xlu1 %467  ;;  %607 = vrot.lane.b32.xlu0 %v3784_v6, %s4620_s22  ;;  %v696_v21 = vsel %vm692_vm4, %v670_v43, %v499_v16 }
  0xff   : > { %v682_v23 = vsel %vm664_vm3, %v5021_v29, %v468_v47 }
 0x100   : > { %609 = vrot.lane.b32.xlu1 %v3785_v0, %s4620_s22  ;;  %v462_v38 = vpop.permute.xlu0 %461  ;;  %v704_v49 = vsel %vm692_vm4, %v682_v23, %v507_v26 }
 0x101   : > { %v673_v50 = vsel %vm664_vm3, %v5008_v60, %v462_v38 }
 0x102   : > { %v470_v44 = vpop.permute.xlu1 %469  ;;  %627 = vrot.lane.b32.xlu0 %v4927_v13, %s4621_s30 }
 0x103   : > { %v685_v54 = vsel %vm664_vm3, %v5040_v9, %v470_v44 }
 0x104   : > { %635 = vrot.lane.b32.xlu1 %v5053_v45, %s4621_s30  ;;  %v501_v51 = vpop.permute.xlu0 %500 }
 0x105   : > { %v5191_v53 = vsel %vm692_vm4, %v673_v50, %v501_v51 }
 0x106   : > { %v509_v55 = vpop.permute.xlu1 %508  ;;  %637 = vrot.lane.b32.xlu0 %v5042_v11, %s4621_s30 }
 0x107   : > { %v5198_v57 = vsel %vm692_vm4, %v685_v54, %v509_v55 }
 0x108   : > { %652 = vrot.lane.b32.xlu1 %v4889_v37, %s4622_s6  ;;  %v519_v13 = vpop.permute.xlu0 %518 }
 0x109   : > { %v713_v17 = vsel %vm711_vm5, %v694_v31, %v519_v13 }
 0x10a   : > { %v521_v58 = vpop.permute.xlu1 %520  ;;  %660 = vrot.lane.b32.xlu0 %v5031_v34, %s4622_s6 }
 0x10b   : > { %v715_v48 = vsel %vm711_vm5, %v696_v21, %v521_v58 }
 0x10c   : > { %662 = vrot.lane.b32.xlu1 %v5034_v39, %s4622_s6  ;;  %v527_v19 = vpop.permute.xlu0 %526 }
 0x10d   : > { %v721_v12 = vsel %vm711_vm5, %v5174_v24, %v527_v19 }
 0x10e   : > { %v529_v27 = vpop.permute.xlu1 %528 }
 0x10f   : > { %v723_v15 = vsel %vm711_vm5, %v704_v49, %v529_v27 }
 0x110   : > { %v5206_v59 = vpop.permute.xlu0 %522 }
 0x112   : > { %v5208_v60 = vpop.permute.xlu1 %530 }
 0x114   : > { %v547_v61 = vpop.permute.xlu0 %546 }
 0x115   : > { %v732_v41 = vsel %vm730_vm6, %v713_v17, %v547_v61 }
 0x116   : > { %v549_v62 = vpop.permute.xlu1 %548 }
 0x117   : > { %v734_v16 = vsel %vm730_vm6, %v715_v48, %v549_v62 }
 0x118   : > { %v555_v7 = vpop.permute.xlu0 %554 }
 0x119   : > { %v740_v26 = vsel %vm730_vm6, %v721_v12, %v555_v7 }
 0x11a   : > { %v557_v20 = vpop.permute.xlu1 %556 }
 0x11b   : > { %v742_v32 = vsel %vm730_vm6, %v723_v15, %v557_v20 }
 0x11c   : > { %v5210_v1 = vpop.permute.xlu0 %550 }
 0x11e   : > { %v5212_v37 = vpop.permute.xlu1 %558 }
 0x120   : > { %v572_v2 = vpop.permute.xlu0 %571 }
 0x121   : > { %v751_v52 = vsel %vm749_vm7, %v732_v41, %v572_v2  ;;  %v717_v2 = vsel %vm711_vm5, %v5191_v53, %v5206_v59 }
 0x122   : > { %v574_v28 = vpop.permute.xlu1 %573 }
 0x123   : > { %v753_v56 = vsel %vm749_vm7, %v734_v16, %v574_v28 }
 0x124   : > { %v580_v29 = vpop.permute.xlu0 %579 }
 0x125   : > { %v759_v31 = vsel %vm749_vm7, %v740_v26, %v580_v29 }
 0x126   : > { %v582_v4 = vpop.permute.xlu1 %581 }
 0x127   : > { %v761_v42 = vsel %vm749_vm7, %v742_v32, %v582_v4 }
 0x128   : > { %v5214_v25 = vpop.permute.xlu0 %575 }
 0x12a   : > { %v5216_v8 = vpop.permute.xlu1 %583 }
 0x12c   : > { %v594_v34 = vpop.permute.xlu0 %593 }
 0x12d   : > { %v770_v22 = vsel %vm768_vm8, %v751_v52, %v594_v34 }
 0x12e   : > { %v596_v39 = vpop.permute.xlu1 %595 }
 0x12f   : > { %v772_v46 = vsel %vm768_vm8, %v753_v56, %v596_v39 }
 0x130   : > { %v602_v9 = vpop.permute.xlu0 %601 }
 0x131   : > { %v778_v24 = vsel %vm768_vm8, %v759_v31, %v602_v9 }
 0x132   : > { %v604_v11 = vpop.permute.xlu1 %603 }
 0x133   : > { %v780_v38 = vsel %vm768_vm8, %v761_v42, %v604_v11 }
 0x134   : > { %v5218_v45 = vpop.permute.xlu0 %597 }
 0x136   : > { %v5220_v5 = vpop.permute.xlu1 %605 }
 0x138   : > { %v622_v30 = vpop.permute.xlu0 %621 }
 0x139   : > { %v789_v33 = vsel %vm787_vm9, %v770_v22, %v622_v30  ;;  %v725_v30 = vsel %vm711_vm5, %v5198_v57, %v5208_v60 }
 0x13a   : > { %v624_v35 = vpop.permute.xlu1 %623  ;;  %v744_v48 = vsel %vm730_vm6, %v725_v30, %v5212_v37 }
 0x13b   : > { %v791_v43 = vsel %vm787_vm9, %v772_v46, %v624_v35  ;;  %v736_v35 = vsel %vm730_vm6, %v717_v2, %v5210_v1  ;;  %v763_v60 = vsel %vm749_vm7, %v744_v48, %v5216_v8 }
 0x13c   : > { %v630_v36 = vpop.permute.xlu0 %629  ;;  %v755_v53 = vsel %vm749_vm7, %v736_v35, %v5214_v25  ;;  %v782_v15 = vsel %vm768_vm8, %v763_v60, %v5220_v5 }
 0x13d   : > { %v797_v49 = vsel %vm787_vm9, %v778_v24, %v630_v36  ;;  %v774_v52 = vsel %vm768_vm8, %v755_v53, %v5218_v45 }
 0x13e   : > { %v632_v10 = vpop.permute.xlu1 %631 }
 0x13f   : > { %v799_v58 = vsel %vm787_vm9, %v780_v38, %v632_v10 }
 0x140   : > { %v5223_v18 = vpop.permute.xlu0 %625 }
 0x141   : > { %v793_v1 = vsel %vm787_vm9, %v774_v52, %v5223_v18 }
 0x142   : > { %v5228_v63 = vpop.permute.xlu1 %633 }
 0x143   : > { %v801_v45 = vsel %vm787_vm9, %v782_v15, %v5228_v63 }
 0x144   : > { %v647_v6 = vpop.permute.xlu0 %646 }
 0x145   : > { %v807_v0 = vsel %vm290_vm10, %v789_v33, %v647_v6 }
 0x146   : > { %v825_v47 = vshrl.u32 %v807_v0, 16  ;;  %v828_v21 = vshll.u32 %v807_v0, 16  ;;  %v649_v23 = vpop.permute.xlu1 %648 }
 0x147   : > { %v809_v44 = vsel %vm290_vm10, %v791_v43, %v649_v23 }
 0x148   : > { %v827_v50 = vrot.slane %v825_v47, 3  ;;  %v830_v51 = vrot.slane %v828_v21, 4  ;;  %v832_v54 = vshrl.u32 %v809_v44, 16  ;;  %v835_v55 = vshll.u32 %v809_v44, 16  ;;  %v655_v13 = vpop.permute.xlu0 %654 }
 0x149   : > { %v815_v19 = vsel %vm290_vm10, %v797_v49, %v655_v13 }
 0x14a   : > { %v834_v27 = vrot.slane %v832_v54, 3  ;;  %v837_v61 = vrot.slane %v835_v55, 4  ;;  %v856_v62 = vshrl.u32 %v815_v19, 16  ;;  %v859_v7 = vshll.u32 %v815_v19, 16  ;;  %v657_v20 = vpop.permute.xlu1 %656 }
 0x14b   : > { %v817_v28 = vsel %vm290_vm10, %v799_v58, %v657_v20  ;;  %v831_v29 = vor.u32 %v830_v51, %v827_v50 }
 0x14c   : > { %v858_v4 = vrot.slane %v856_v62, 3  ;;  %v861_v34 = vrot.slane %v859_v7, 4  ;;  %v864_v39 = vshrl.u32 %v817_v28, 16  ;;  %v867_v9 = vshll.u32 %v817_v28, 16  ;;  %v464_v11 = vpop.permute.xlu0 %463 }
 0x14d   : > { %v838_v36 = vor.u32 %v837_v61, %v834_v27  ;;  %v3770_v61 = vcombine.low %v4920_v3, %v4920_v3  ;;  %v676_v62 = vsel %vm664_vm3, %v5048_v40, %v464_v11 }
 0x14e   : > { %v866_v59 = vrot.slane %v864_v39, 3  ;;  %v869_v10 = vrot.slane %v867_v9, 4  ;;  %v472_v17 = vpop.permute.xlu1 %471  ;;  %v5261_v41 = vor.u32 %v861_v34, %v858_v4 }
 0x14f   : > { %v839_v57 = vsel %vm824_vm11, %v831_v29, %v838_v36  ;;  %v688_v2 = vsel %vm664_vm3, %v5059_v14, %v472_v17 }
 0x150   : > { %4198 = vmatprep.mubr.msk.bf16.mxu0 %vm923_vm12, %v839_v57  ;;  %v651_v25 = vpop.permute.xlu0 %650  ;;  %v870_v12 = vor.u32 %v869_v10, %v866_v59 }
 0x151   : > { %v811_v37 = vsel %vm290_vm10, %v793_v1, %v651_v25 }
 0x152   : > { %v840_v16 = vshrl.u32 %v811_v37, 16  ;;  %v843_v22 = vshll.u32 %v811_v37, 16  ;;  %v659_v26 = vpop.permute.xlu1 %658  ;;  %v871_v8 = vsel %vm824_vm11, %v5261_v41, %v870_v12 }
 0x153   : > { %v819_v18 = vsel %vm290_vm10, %v801_v45, %v659_v26  ;;  %4206 = vmatprep.mubr.msk.bf16.mxu1 %vm923_vm12, %v871_v8 }
 0x154   : > { %v842_v32 = vrot.slane %v840_v16, 3  ;;  %v845_v56 = vrot.slane %v843_v22, 4  ;;  %v872_v33 = vshrl.u32 %v819_v18, 16  ;;  %v875_v6 = vshll.u32 %v819_v18, 16  ;;  %v474_v5 = vpop.permute.xlu0 %473 }
 0x155   : > { %v691_v4 = vsel %vm664_vm3, %v3770_v61, %v474_v5 }
 0x156   : > { %v5282_v31 = vor.u32 %v845_v56, %v842_v32  ;;  %v874_v42 = vrot.slane %v872_v33, 3  ;;  %v877_v46 = vrot.slane %v875_v6, 4  ;;  %v503_v63 = vpop.permute.xlu1 %502 }
 0x157   : > { %v700_v20 = vsel %vm692_vm4, %v676_v62, %v503_v63 }
 0x158   : > { %v5284_v0 = vor.u32 %v877_v46, %v874_v42  ;;  %v511_v24 = vpop.permute.xlu0 %510  ;;  %v847_v43 = vsel %vm824_vm11, %v838_v36, %v5282_v31 }
 0x159   : > { %4199 = vmatmul.mubr.msk.bf16.vlgmr.msra.gmra.mrb[0].mxu0 %vm923_vm12, %v847_v43  ;;  %v708_v34 = vsel %vm692_vm4, %v688_v2, %v511_v24 }
 0x15a   : > { %v513_v47 = vpop.permute.xlu1 %512  ;;  %v879_v21 = vsel %vm824_vm11, %v870_v12, %v5284_v0 }
 0x15b   : > { %4207 = vmatmul.mubr.msk.bf16.vlgmr.msra.gmra.mrb[0].mxu1 %vm923_vm12, %v879_v21  ;;  %v710_v3 = vsel %vm692_vm4, %v691_v4, %v513_v47 }
 0x15c   : > { %v525_v23 = vpop.permute.xlu0 %524 }
 0x15d   : > { %v719_v28 = vsel %vm711_vm5, %v700_v20, %v525_v23 }
 0x15e   : > { %v533_v38 = vpop.permute.xlu1 %532 }
 0x15f   : > { %v727_v9 = vsel %vm711_vm5, %v708_v34, %v533_v38  ;;  %v4623_v38 = vmov 0  }
 0x160   : > { %v535_v49 = vpop.permute.xlu0 %534  ;;  %291 = vst.msk [vmem:[#allocation2] sm:$0xff] %vm290_vm10, %v4623_v38  ;;  %292 = vst.msk [vmem:[#allocation2 + $0x8] sm:$0xff] %vm290_vm10, %v4623_v38 }
 0x161   : > { %v729_v30 = vsel %vm711_vm5, %v710_v3, %v535_v49  ;;  %293 = vst.msk [vmem:[#allocation2 + $0x10] sm:$0xff] %vm290_vm10, %v4623_v38  ;;  %301 = vst.msk [vmem:[#allocation2 + $0x50] sm:$0xff] %vm290_vm10, %v4623_v38 }
 0x162   : > { %v553_v44 = vpop.permute.xlu1 %552  ;;  %294 = vst.msk [vmem:[#allocation2 + $0x18] sm:$0xff] %vm290_vm10, %v4623_v38  ;;  %295 = vst.msk [vmem:[#allocation2 + $0x20] sm:$0xff] %vm290_vm10, %v4623_v38 }
 0x163   : > { %v738_v39 = vsel %vm730_vm6, %v719_v28, %v553_v44  ;;  %296 = vst.msk [vmem:[#allocation2 + $0x28] sm:$0xff] %vm290_vm10, %v4623_v38  ;;  %297 = vst.msk [vmem:[#allocation2 + $0x30] sm:$0xff] %vm290_vm10, %v4623_v38 }
 0x164   : > { %v561_v50 = vpop.permute.xlu0 %560  ;;  %298 = vst.msk [vmem:[#allocation2 + $0x38] sm:$0xff] %vm290_vm10, %v4623_v38  ;;  %299 = vst.msk [vmem:[#allocation2 + $0x40] sm:$0xff] %vm290_vm10, %v4623_v38 }
 0x165   : > { %v746_v14 = vsel %vm730_vm6, %v727_v9, %v561_v50  ;;  %300 = vst.msk [vmem:[#allocation2 + $0x48] sm:$0xff] %vm290_vm10, %v4623_v38 }
 0x166   : > { %v563_v51 = vpop.permute.xlu1 %562 }
 0x167   : > { %v748_v36 = vsel %vm730_vm6, %v729_v30, %v563_v51  ;;  %v4624_v51 = vmov 0.0  }
 0x168   : > { %v578_v54 = vpop.permute.xlu0 %577 }
 0x169   : > { %v757_v40 = vsel %vm749_vm7, %v738_v39, %v578_v54 }
 0x16a   : > { %v586_v55 = vpop.permute.xlu1 %585 }
 0x16b   : > { %v765_v53 = vsel %vm749_vm7, %v746_v14, %v586_v55 }
 0x16c   : > { %v588_v13 = vpop.permute.xlu0 %587 }
 0x16d   : > { %v767_v17 = vsel %vm749_vm7, %v748_v36, %v588_v13 }
 0x16e   : > { %v600_v58 = vpop.permute.xlu1 %599 }
 0x16f   : > { %v776_v35 = vsel %vm768_vm8, %v757_v40, %v600_v58 }
 0x170   : > { %v608_v19 = vpop.permute.xlu0 %607 }
 0x171   : > { %v784_v48 = vsel %vm768_vm8, %v765_v53, %v608_v19 }
 0x172   : > { %v610_v27 = vpop.permute.xlu1 %609 }
 0x173   : > { %v786_v57 = vsel %vm768_vm8, %v767_v17, %v610_v27 }
 0x174   : > { %v628_v7 = vpop.permute.xlu0 %627 }
 0x175   : > { %v795_v59 = vsel %vm787_vm9, %v776_v35, %v628_v7 }
 0x176   : > { %v636_v29 = vpop.permute.xlu1 %635 }
 0x177   : > { %v803_v60 = vsel %vm787_vm9, %v784_v48, %v636_v29 }
 0x178   : > { %v638_v11 = vpop.permute.xlu0 %637 }
 0x179   : > { %v805_v15 = vsel %vm787_vm9, %v786_v57, %v638_v11 }
 0x17a   : > { %v653_v10 = vpop.permute.xlu1 %652 }
 0x17b   : > { %v813_v52 = vsel %vm290_vm10, %v795_v59, %v653_v10 }
 0x17c   : > { %v848_v1 = vshrl.u32 %v813_v52, 16  ;;  %v851_v25 = vshll.u32 %v813_v52, 16  ;;  %v661_v12 = vpop.permute.xlu0 %660 }
 0x17d   : > { %v821_v37 = vsel %vm290_vm10, %v803_v60, %v661_v12 }
 0x17e   : > { %v850_v45 = vrot.slane %v848_v1, 3  ;;  %v853_v16 = vrot.slane %v851_v25, 4  ;;  %v880_v22 = vshrl.u32 %v821_v37, 16  ;;  %v883_v26 = vshll.u32 %v821_v37, 16  ;;  %v663_v8 = vpop.permute.xlu1 %662 }
 0x17f   : > { %v823_v18 = vsel %vm290_vm10, %v805_v15, %v663_v8 }
 0x180   : > { %v854_v32 = vor.u32 %v853_v16, %v850_v45  ;;  %v882_v56 = vrot.slane %v880_v22, 3  ;;  %v885_v33 = vrot.slane %v883_v26, 4  ;;  %v888_v6 = vshrl.u32 %v823_v18, 16 }
 0x181   : > { %v891_v5 = vshll.u32 %v823_v18, 16 }
 0x182   : > { %v886_v42 = vor.u32 %v885_v33, %v882_v56  ;;  %v890_v46 = vrot.slane %v888_v6, 3  ;;  %v855_v63 = vsel %vm824_vm11, %v5282_v31, %v854_v32  ;;  %v863_v24 = vsel %vm824_vm11, %v854_v32, %v5261_v41 }
 0x183   : > { %v893_v43 = vrot.slane %v891_v5, 4  ;;  %4202 = vmatprep.mubr.msk.bf16.mxu0 %vm923_vm12, %v855_v63 }
 0x184   : > { %4203 = vmatmul.mubr.msk.bf16.gmra.mrb[4].mxu0 %vm923_vm12, %v863_v24  ;;  %v887_v47 = vsel %vm824_vm11, %v5284_v0, %v886_v42 }
 0x185   : > { %v894_v21 = vor.u32 %v893_v43, %v890_v46  ;;  %4210 = vmatprep.mubr.msk.bf16.mxu1 %vm923_vm12, %v887_v47 }
 0x187   : > { %v895_v23 = vsel %vm824_vm11, %v886_v42, %v894_v21 }
 0x188   : > { %4211 = vmatmul.mubr.msk.bf16.gmra.mrb[4].mxu1 %vm923_vm12, %v895_v23 }
 0x22c   : > { %v4200_v41 = vpop.f32.mrb[0].mxu0 }
 0x22d   : > { %v1051_v31 = vmax.f32 %v4200_v41, 0.0  ;;  %v986_v0 = vpop.f32.mrb[1].mxu0 }
 0x22e   : > { %v1049_v49 = vmax.f32 %v986_v0, 0.0  ;;  %v4208_v44 = vpop.f32.mrb[0].mxu1  ;;  %v4201_v50 = vpop.f32.mrb[2].mxu0 }
 0x22f   : > { %v1086_v54 = vpack.c.bf16 %v4624_v51, %v1051_v31  ;;  %v1059_v55 = vmax.f32 %v4208_v44, 0.0  ;;  %v1018_v13 = vpop.f32.mrb[1].mxu1  ;;  %v989_v58 = vpop.f32.mrb[3].mxu0 }
 0x230   : > { %v1085_v19 = vpack.c.bf16 %v4624_v51, %v1049_v49  ;;  %v1057_v27 = vmax.f32 %v1018_v13, 0.0  ;;  %v4209_v61 = vpop.f32.mrb[2].mxu1 }
 0x231   : > { %v1103_v62 = vrot.slane %v1086_v54, 4  ;;  %v1090_v7 = vpack.c.bf16 %v4624_v51, %v1059_v55  ;;  %v1021_v20 = vpop.f32.mrb[3].mxu1 }
 0x232   : > { %v1102_v2 = vrot.slane %v1085_v19, 4  ;;  %v1089_v28 = vpack.c.bf16 %v4624_v51, %v1057_v27 }
 0x233   : > { %v1111_v29 = vrot.slane %v1090_v7, 4 }
 0x234   : > { %v1104_v4 = vsel %vm948_vm2, %v1102_v2, %v1103_v62  ;;  %1127 = vst.msk [vmem:[#allocation2 + $0x8] sm:$0xf0] %vm1126_vm13, %v1102_v2  ;;  %v1109_v34 = vrot.slane %v1089_v28, 4 }
 0x235   : > { %1128 = vst.msk [vmem:[#allocation2 + $0x10] sm:$0xff] %vm290_vm10, %v1104_v4 }
 0x236   : > { %v1112_v39 = vsel %vm948_vm2, %v1109_v34, %v1111_v29 }
 0x237   : > { %1132 = vst.msk [vmem:[#allocation2 + $0x30] sm:$0xff] %vm290_vm10, %v1112_v39 }
 0x257   : > { %v4204_v3 = vpop.f32.mrb[4].mxu0 }
 0x258   : > { %v1055_v9 = vmax.f32 %v4204_v3, 0.0  ;;  %v1002_v40 = vpop.f32.mrb[5].mxu0 }
 0x259   : > { %v1053_v11 = vmax.f32 %v1002_v40, 0.0  ;;  %v4205_v30 = vpop.f32.mrb[6].mxu0 }
 0x25a   : > { %v1088_v14 = vpack.c.bf16 %v4624_v51, %v1055_v9  ;;  %v1005_v35 = vpop.f32.mrb[7].mxu0 }
 0x25b   : > { %v1087_v36 = vpack.c.bf16 %v4624_v51, %v1053_v11  ;;  %v4212_v53 = vpop.f32.mrb[4].mxu1 }
 0x25c   : > { %v1107_v59 = vrot.slane %v1088_v14, 4  ;;  %v1063_v10 = vmax.f32 %v4212_v53, 0.0  ;;  %v1034_v17 = vpop.f32.mrb[5].mxu1 }
 0x25d   : > { %v1105_v48 = vrot.slane %v1087_v36, 4  ;;  %v1061_v52 = vmax.f32 %v1034_v17, 0.0  ;;  %v4213_v57 = vpop.f32.mrb[6].mxu1 }
 0x25e   : > { %v1110_v60 = vsel %vm948_vm2, %v1107_v59, %v1109_v34  ;;  %v1092_v1 = vpack.c.bf16 %v4624_v51, %v1063_v10  ;;  %v1037_v25 = vpop.f32.mrb[7].mxu1 }
 0x25f   : > { %1131 = vst.msk [vmem:[#allocation2 + $0x28] sm:$0xff] %vm290_vm10, %v1110_v60  ;;  %v1106_v12 = vsel %vm948_vm2, %v1103_v62, %v1105_v48  ;;  %v1108_v15 = vsel %vm948_vm2, %v1105_v48, %v1107_v59  ;;  %v1091_v37 = vpack.c.bf16 %v4624_v51, %v1061_v52 }
 0x260   : > { %1129 = vst.msk [vmem:[#allocation2 + $0x18] sm:$0xff] %vm290_vm10, %v1106_v12  ;;  %1130 = vst.msk [vmem:[#allocation2 + $0x20] sm:$0xff] %vm290_vm10, %v1108_v15  ;;  %v1115_v45 = vrot.slane %v1092_v1, 4 }
 0x261   : > { %v1113_v16 = vrot.slane %v1091_v37, 4 }
 0x262   : > { %1136 = vst.msk [vmem:[#allocation2 + $0x48] sm:$0xf] %vm1135_vm14, %v1115_v45 }
 0x263   : > { %v1114_v22 = vsel %vm948_vm2, %v1111_v29, %v1113_v16  ;;  %v1116_v26 = vsel %vm948_vm2, %v1113_v16, %v1115_v45 }
 0x264   : > { %1133 = vst.msk [vmem:[#allocation2 + $0x38] sm:$0xff] %vm290_vm10, %v1114_v22  ;;  %1134 = vst.msk [vmem:[#allocation2 + $0x40] sm:$0xff] %vm290_vm10, %v1116_v26 }
 0x265 LB: >> { %v5363_v8 = vld [vmem:[#allocation2 + $0x8] sm:$0xff]  ;;  %v5365_v18 = vld [vmem:[#allocation2 + $0x10] sm:$0xff]  ;;  %s4625_s9 = smov 64   ;;  %v5377_v46 = vld [vmem:[#allocation2] sm:$0xff]  ;;  %vm1229_vm15 = vsmask.f32 7424  ;;  %s4605_s7 = sphi %s5358_s7, %s1142_s7  }
 0x266   : >> { %1347 = vrot.lane.b32.xlu1 %v5363_v8, %s4625_s9  ;;  %v1246_v56 = vshll.u32 %v5365_v18, 16  ;;  %v1250_v33 = vshrl.u32 %v5365_v18, 16  ;;  %v1238_v5 = vshll.u32 %v5363_v8, 16  ;;  %v1242_v63 = vshrl.u32 %v5363_v8, 16  ;;  %v5382_v38 = vld [vmem:[#allocation2 + $0x28] sm:$0xff]  ;;  %s3894_s10 = smul.u32 288, %s4605_s7 }
 0x267   : >> { %v5367_v32 = vld [vmem:[#allocation2 + $0x18] sm:$0xff]  ;;  %v5375_v42 = vld [vmem:[#allocation2 + $0x20] sm:$0xff]  ;;  %v1233_v31 = vshll.u32 %v5377_v46, 16  ;;  %v1231_v50 = vshrl.u32 %v5377_v46, 16  ;;  %v1332_v51 = vrot.slane %v5365_v18, 1  ;;  %v1270_v13 = vshll.u32 %v5382_v38, 16 }
 0x268   : >> { %v1254_v6 = vshll.u32 %v5367_v32, 16  ;;  %v1258_v24 = vshrl.u32 %v5367_v32, 16  ;;  %v1262_v43 = vshll.u32 %v5375_v42, 16  ;;  %v1248_v47 = vrot.slane %v1246_v56, 1  ;;  %v5398_v27 = vld [vmem:[#allocation2 + $0x30] sm:$0xff]  ;;  %s5402_s11 = scalar_lea.vmem [#allocation5], %s3894_s10 }
 0x269   : >> { %v1240_v23 = vrot.slane %v1238_v5, 1  ;;  %v1334_v54 = vrot.slane %v5367_v32, 1  ;;  %v1235_v55 = vrot.slane %v1233_v31, 1  ;;  %vm1328_vm0 = vcmask 1046528   ;;  %v4395_v61 = vld [vmem:[%s5402_s11 + $0x40] sm:$0xff]   ;;  %v4398_v39 = vld [vmem:[%s5402_s11 + $0x48] sm:$0xff]  }
 0x26a   : >> { %v1256_v21 = vrot.slane %v1254_v6, 1  ;;  %v1264_v41 = vrot.slane %v1262_v43, 1  ;;  %1349 = vrot.lane.b32.xlu1 %v5365_v18, %s4625_s9  ;;  %v1252_v0 = vor.u32 %v1250_v33, %v1248_v47  ;;  %v1272_v20 = vrot.slane %v1270_v13, 1  ;;  %3908 = vmatprep.subr.bf16.mxu0 %v4395_v61  ;;  %v4396_v4 = vld [vmem:[%s5402_s11] sm:$0xff]   ;;  %v4400_v35 = vld [vmem:[%s5402_s11 + $0x8] sm:$0xff]   ;;  %v4402_v60 = vld [vmem:[%s5402_s11 + $0x50] sm:$0xff]  }
 0x26b   : >> { %v1244_v49 = vor.u32 %v1242_v63, %v1240_v23  ;;  %v1236_v7 = vor.u32 %v1235_v55, %v1231_v50  ;;  %v1274_v2 = vshrl.u32 %v5382_v38, 16  ;;  %v5414_v28 = vsel %vm1328_vm0, %v1332_v51, %v1334_v54  ;;  %3909 = vmatpush3.bf16.msra.mxu0 %v4396_v4  ;;  %v4397_v34 = vld [vmem:[%s5402_s11 + $0xc0] sm:$0xff]   ;;  %v4401_v36 = vld [vmem:[%s5402_s11 + $0xc8] sm:$0xff]   ;;  %v5438_v10 = vld [vmem:[#allocation2 + $0x38] sm:$0xff]  ;;  %s1488_s14 = scalar_lea.vmem [#allocation7], %s4605_s7  ;;  %s1142_s7 = sadd.s32 1, %s4605_s7  }
 0x26c   : >> { %v1260_v44 = vor.u32 %v1258_v24, %v1256_v21  ;;  %v5393_v58 = vsel %vm1229_vm15, %v1252_v0, %v1256_v21  ;;  %v1278_v29 = vshll.u32 %v5398_v27, 16  ;;  %v1330_v9 = vrot.slane %v5363_v8, 1  ;;  %3972 = vmatprep.subr.bf16.mxu1 %v4397_v34  ;;  %3910 = vmatprep.subr.bf16.mxu0 %v4398_v39  ;;  %v4399_v14 = vld [vmem:[%s5402_s11 + $0x80] sm:$0xff]   ;;  %v4403_v25 = vld [vmem:[%s5402_s11 + $0x88] sm:$0xff]   ;;  %v4404_v12 = vld [vmem:[%s5402_s11 + $0x10] sm:$0xff]   ;;  %p1139_p6 = scmp.ge.s32.totalorder %s1142_s7, 13  }
 0x26d   : >> { %v5396_v19 = vsel %vm1229_vm15, %v1244_v49, %v1248_v47  ;;  %1305 = vrot.lane.b32.xlu0 %v5393_v58, %s4625_s9  ;;  %v1241_v3 = vsel %vm1229_vm15, %v1236_v7, %v1240_v23  ;;  %v1266_v40 = vshrl.u32 %v5375_v42, 16  ;;  %v1276_v11 = vor.u32 %v1274_v2, %v1272_v20  ;;  %3973 = vmatpush3.bf16.msra.mxu1 %v4399_v14  ;;  %v5445_v57 = vld [vmem:[#allocation2 + $0x40] sm:$0xff]  ;;  %v4405_v22 = vld [vmem:[%s5402_s11 + $0xd0] sm:$0xff]   ;;  %v4406_v26 = vld [vmem:[%s5402_s11 + $0x58] sm:$0xff]  }
 0x26e   : >> { %1303 = vrot.lane.b32.xlu1 %v5396_v19, %s4625_s9  ;;  %v5408_v62 = vsel %vm1229_vm15, %v1260_v44, %v1264_v41  ;;  %v1280_v30 = vrot.slane %v1278_v29, 1  ;;  %v5436_v53 = vsel %vm1328_vm0, %v1330_v9, %v1332_v51  ;;  %v1336_v48 = vrot.slane %v5375_v42, 1  ;;  %3974 = vmatprep.subr.bf16.mxu1 %v4401_v36  ;;  %v4407_v33 = vld [vmem:[%s5402_s11 + $0x90] sm:$0xff]   ;;  %v5478_v63 = vld [vmem:[#allocation2 + $0x48] sm:$0xff]  ;;  %v4408_v24 = vld [vmem:[%s5402_s11 + $0x18] sm:$0xff]  }
 0x26f   : >> { %v1268_v59 = vor.u32 %v1266_v40, %v1264_v41  ;;  %v1338_v52 = vrot.slane %v5382_v38, 1  ;;  %3911 = vmatpush3.bf16.msra.mxu0 %v4400_v35  ;;  %v1286_v1 = vshll.u32 %v5438_v10, 16  ;;  %v1290_v45 = vshrl.u32 %v5438_v10, 16  ;;  %v4409_v21 = vld [vmem:[%s5402_s11 + $0xd8] sm:$0xff]   ;;  %v4410_v23 = vld [vmem:[%s5402_s11 + $0x60] sm:$0xff]   ;;  %v4414_v55 = vld [vmem:[%s5402_s11 + $0x68] sm:$0xff]  }
 0x270   : >> { %v5441_v17 = vsel %vm1229_vm15, %v1276_v11, %v1280_v30  ;;  %3912 = vmatprep.subr.bf16.mxu0 %v4402_v60  ;;  %v1294_v16 = vshll.u32 %v5445_v57, 16  ;;  %v5475_v6 = vsel %vm1328_vm0, %v1334_v54, %v1336_v48  ;;  %v1282_v5 = vshrl.u32 %v5398_v27, 16  ;;  %v4411_v31 = vld [vmem:[%s5402_s11 + $0x98] sm:$0xff]   ;;  %v4412_v44 = vld [vmem:[%s5402_s11 + $0x20] sm:$0xff]   ;;  %v4417_v34 = vld [vmem:[%s5402_s11 + $0xe8] sm:$0xff]  }
 0x271   : >> { %1307 = vrot.lane.b32.xlu0 %v5408_v62, %s4625_s9  ;;  %v5456_v15 = vsel %vm1229_vm15, %v1268_v59, %v1272_v20  ;;  %v5461_v37 = vsel %vm1328_vm0, %v1336_v48, %v1338_v52  ;;  %3975 = vmatpush3.bf16.msra.mxu1 %v4403_v25  ;;  %v1288_v56 = vrot.slane %v1286_v1, 1  ;;  %v1342_v41 = vrot.slane %v5438_v10, 1  ;;  %v4413_v54 = vld [vmem:[%s5402_s11 + $0xe0] sm:$0xff]   ;;  %v4416_v20 = vld [vmem:[%s5402_s11 + $0x28] sm:$0xff]   ;;  %v4418_v39 = vld [vmem:[%s5402_s11 + $0x70] sm:$0xff]  }
 0x272   : >> { %1377 = vrot.lane.b32.xlu1 %v5414_v28, %s4625_s9  ;;  %3976 = vmatprep.subr.bf16.mxu1 %v4405_v22  ;;  %v1296_v47 = vrot.slane %v1294_v16, 1  ;;  %v1284_v0 = vor.u32 %v1282_v5, %v1280_v30  ;;  %v1298_v49 = vshrl.u32 %v5445_v57, 16  ;;  %v1366_v51 = vshll.u32 %v5478_v63, 16  ;;  %v4415_v61 = vld [vmem:[%s5402_s11 + $0xa0] sm:$0xff]   ;;  %v4420_v11 = vld [vmem:[%s5402_s11 + $0x30] sm:$0xff]   ;;  %v4422_v36 = vld [vmem:[%s5402_s11 + $0x78] sm:$0xff]  }
 0x273   : >> { %3913 = vmatpush3.bf16.msra.mxu0 %v4404_v12  ;;  %v1292_v43 = vor.u32 %v1290_v45, %v1288_v56  ;;  %v1340_v13 = vrot.slane %v5398_v27, 1  ;;  %v5528_v14 = vld [vmem:[#allocation2 + $0x50] sm:$0xff]  ;;  %v4424_v48 = vld [vmem:[%s5402_s11 + $0x38] sm:$0xff]   ;;  %v5545_v12 = vrot.slane %v5445_v57, 1  ;;  %v5548_v45 = vld [vmem:[%s5402_s11 + $0x100] sm:$0xff]   ;;  %v1370_v16 = vshrl.u32 %v5478_v63, 16 }
 0x274   : >> { %3914 = vmatprep.subr.bf16.mxu0 %v4406_v26  ;;  %v5502_v7 = vsel %vm1229_vm15, %v1284_v0, %v1288_v56  ;;  %v1300_v29 = vor.u32 %v1298_v49, %v1296_v47  ;;  %v1368_v4 = vrot.slane %v1366_v51, 1  ;;  %v4421_v35 = vld [vmem:[%s5402_s11 + $0xf0] sm:$0xff]   ;;  %v4425_v60 = vld [vmem:[%s5402_s11 + $0xf8] sm:$0xff]   ;;  %v1394_v1 = vshll.u32 %v5528_v14, 16 }
 0x275   : >> { %1301 = vrot.lane.b32.xlu0 %v1241_v3, %s4625_s9  ;;  %3977 = vmatpush3.bf16.msra.mxu1 %v4407_v33  ;;  %v5492_v50 = vsel %vm1229_vm15, %v1292_v43, %v1296_v47  ;;  %v5510_v2 = vsel %vm1328_vm0, %v1340_v13, %v1342_v41  ;;  %v4419_v3 = vld [vmem:[%s5402_s11 + $0xa8] sm:$0xff]   ;;  %v5520_v40 = vsel %vm1328_vm0, %v1338_v52, %v1340_v13  ;;  %v4423_v59 = vld [vmem:[%s5402_s11 + $0xb0] sm:$0xff]   ;;  %v1373_v52 = vrot.slane %v5478_v63, 1  ;;  %v4426_v25 = vld [vmem:[%s5402_s11 + $0xb8] sm:$0xff]  }
 0x276   : >> { %1351 = vrot.lane.b32.xlu1 %v5367_v32, %s4625_s9  ;;  %3978 = vmatprep.subr.bf16.mxu1 %v4409_v21  ;;  %v5526_v30 = vsel %vm1229_vm15, %v1300_v29, %v1368_v4  ;;  %v1398_v22 = vshrl.u32 %v5528_v14, 16  ;;  %v1396_v56 = vrot.slane %v1394_v1, 1  ;;  %v5564_v33 = vsel %vm1328_vm0, %v1342_v41, %v5545_v12 }
 0x277   : >> { %3915 = vmatpush3.bf16.msra.mxu0 %v4408_v24  ;;  %v1374_v26 = vsel %vm1328_vm0, %v5545_v12, %v1373_v52  ;;  %v5566_v5 = vor.u32 %v1370_v16, %v1368_v4  ;;  %vm3633_vm1 = vcmask (%p1139_p6), 31744  }
 0x278   : >> { %3916 = vmatprep.subr.bf16.mxu0 %v4410_v23  ;;  %v1400_v24 = vor.u32 %v1398_v22, %v1396_v56  ;;  %v1725_v47 = vshrl.u32 %v1374_v26, 16  ;;  %v1728_v21 = vshll.u32 %v1374_v26, 16  ;;  %v5580_v23 = vrot.slane %v5528_v14, 1 }
 0x279   : >> { %1375 = vrot.lane.b32.xlu0 %v5436_v53, %s4625_s9  ;;  %3979 = vmatpush3.bf16.msra.mxu1 %v4411_v31  ;;  %v1397_v43 = vsel %vm1229_vm15, %v5566_v5, %v1396_v56 }
 0x27a   : >> { %1311 = vrot.lane.b32.xlu1 %v5441_v17, %s4625_s9  ;;  %3980 = vmatprep.subr.bf16.mxu1 %v4413_v54  ;;  %v1409_v41 = vsel %vm1328_vm0, %v1373_v52, %v5580_v23  ;;  %v1727_v31 = vrot.slane %v1725_v47, 3  ;;  %v1730_v0 = vrot.slane %v1728_v21, 4 }
 0x27b   : >> { %3917 = vmatpush3.bf16.msra.mxu0 %v4412_v44  ;;  %v1758_v49 = vshrl.u32 %v1409_v41, 16  ;;  %v1761_v44 = vshll.u32 %v1409_v41, 16 }
 0x27c   : >> { %3918 = vmatprep.subr.bf16.mxu0 %v4414_v55  ;;  %v5584_v55 = vor.u32 %v1730_v0, %v1727_v31 }
 0x27d   : >> { %1309 = vrot.lane.b32.xlu0 %v5456_v15, %s4625_s9  ;;  %3981 = vmatpush3.bf16.msra.mxu1 %v4415_v61  ;;  %v1760_v51 = vrot.slane %v1758_v49, 3  ;;  %v1763_v54 = vrot.slane %v1761_v44, 4 }
 0x27e   : >> { %1381 = vrot.lane.b32.xlu1 %v5461_v37, %s4625_s9  ;;  %3982 = vmatprep.subr.bf16.mxu1 %v4417_v34 }
 0x27f   : >> { %3919 = vmatpush3.bf16.msra.mxu0 %v4416_v20  ;;  %v5586_v13 = vor.u32 %v1763_v54, %v1760_v51  ;;  %v1329_v20 = vrot.slane %v5377_v46, 1 }
 0x280   : >> { %3920 = vmatprep.subr.bf16.mxu0 %v4418_v39 }
 0x281   : >> { %1379 = vrot.lane.b32.xlu0 %v5475_v6, %s4625_s9  ;;  %3983 = vmatpush3.bf16.msra.mxu1 %v4419_v3  ;;  %v5591_v61 = vsel %vm824_vm11, %v5584_v55, %v5586_v13 }
 0x282   : >> { %1355 = vrot.lane.b32.xlu1 %v5382_v38, %s4625_s9  ;;  %3984 = vmatprep.subr.bf16.mxu1 %v4421_v35 }
 0x283   : >> { %3921 = vmatpush3.bf16.msra.mxu0 %v4420_v11 }
 0x284   : >> { %3922 = vmatprep.subr.bf16.mxu0 %v4422_v36 }
 0x285   : >> { %1353 = vrot.lane.b32.xlu0 %v5375_v42, %s4625_s9  ;;  %3985 = vmatpush3.bf16.msra.mxu1 %v4423_v59 }
 0x286   : >> { %1315 = vrot.lane.b32.xlu1 %v5492_v50, %s4625_s9  ;;  %3986 = vmatprep.subr.bf16.mxu1 %v4425_v60 }
 0x287   : >> { %3923 = vmatpush3.bf16.msra.mxu0 %v4424_v48 }
 0x288   : >> { %4214 = vmatprep.subr.bf16.mxu0 %v5548_v45 }
 0x289   : >> { %1313 = vrot.lane.b32.xlu0 %v5502_v7, %s4625_s9  ;;  %3987 = vmatpush3.bf16.msra.mxu1 %v4426_v25 }
 0x28a   : >> { %1385 = vrot.lane.b32.xlu1 %v5510_v2, %s4625_s9  ;;  %4272 = vmatprep.subr.bf16.mxu1 %v5548_v45 }
 0x28d   : >> { %1383 = vrot.lane.b32.xlu0 %v5520_v40, %s4625_s9 }
 0x28e   : >> { %1401 = vrot.lane.b32.xlu1 %v5526_v30, %s4625_s9 }
 0x291   : >> { %1357 = vrot.lane.b32.xlu0 %v5398_v27, %s4625_s9 }
 0x292   : >> { %1361 = vrot.lane.b32.xlu1 %v5445_v57, %s4625_s9 }
 0x295   : >> { %1359 = vrot.lane.b32.xlu0 %v5438_v10, %s4625_s9 }
 0x296   : >> { %1389 = vrot.lane.b32.xlu1 %v1374_v26, %s4625_s9 }
 0x299   : >> { %1387 = vrot.lane.b32.xlu0 %v5564_v33, %s4625_s9 }
 0x29a   : >> { %1405 = vrot.lane.b32.xlu1 %v1400_v24, %s4625_s9 }
 0x29d   : >> { %1403 = vrot.lane.b32.xlu0 %v1397_v43, %s4625_s9 }
 0x29e   : >> { %1391 = vrot.lane.b32.xlu1 %v1373_v52, %s4625_s9 }
 0x2a1   : >> { %1363 = vrot.lane.b32.xlu0 %v5478_v63, %s4625_s9 }
 0x2a5   : >> { %1317 = vrot.lane.b32.xlu0 %v1300_v29, %s4625_s9  ;;  %v1331_v29 = vsel %vm1328_vm0, %v1329_v20, %v1330_v9 }
 0x2d8   : >> { %v1348_v4 = vpop.permute.xlu1 %1347 }
 0x2d9   : >> { %v1430_v34 = vsel %vm290_vm10, %v1331_v29, %v1348_v4 }
 0x2da   : >> { %v1511_v39 = vshrl.u32 %v1430_v34, 16  ;;  %v1514_v3 = vshll.u32 %v1430_v34, 16 }
 0x2dc   : >> { %v1513_v11 = vrot.slane %v1511_v39, 3  ;;  %v1516_v35 = vrot.slane %v1514_v3, 4  ;;  %v1350_v36 = vpop.permute.xlu1 %1349 }
 0x2dd   : >> { %v1433_v59 = vsel %vm290_vm10, %v5436_v53, %v1350_v36 }
 0x2de   : >> { %v1518_v48 = vshrl.u32 %v1433_v59, 16  ;;  %v1521_v52 = vshll.u32 %v1433_v59, 16  ;;  %v1517_v22 = vor.u32 %v1516_v35, %v1513_v11 }
 0x2df   : >> { %v1306_v60 = vpop.permute.xlu0 %1305 }
 0x2e0   : >> { %v1520_v1 = vrot.slane %v1518_v48, 3  ;;  %v1523_v25 = vrot.slane %v1521_v52, 4  ;;  %v1415_v16 = vsel %vm290_vm10, %v5365_v18, %v1306_v60  ;;  %v1304_v9 = vpop.permute.xlu1 %1303 }
 0x2e1   : >> { %v1541_v26 = vshrl.u32 %v1415_v16, 16  ;;  %v1544_v56 = vshll.u32 %v1415_v16, 16  ;;  %v1413_v24 = vsel %vm290_vm10, %v5363_v8, %v1304_v9 }
 0x2e2   : >> { %v1524_v43 = vor.u32 %v1523_v25, %v1520_v1  ;;  %v1503_v47 = vshrl.u32 %v1413_v24, 16  ;;  %v1506_v21 = vshll.u32 %v1413_v24, 16 }
 0x2e3   : >> { %v1308_v41 = vpop.permute.xlu0 %1307  ;;  %v1543_v53 = vrot.slane %v1541_v26, 3  ;;  %v1546_v31 = vrot.slane %v1544_v56, 4 }
 0x2e4   : >> { %v1417_v0 = vsel %vm290_vm10, %v5367_v32, %v1308_v41  ;;  %v1378_v49 = vpop.permute.xlu1 %1377  ;;  %v1525_v44 = vsel %vm824_vm11, %v1517_v22, %v1524_v43  ;;  %v1505_v39 = vrot.slane %v1503_v47, 3  ;;  %v1508_v3 = vrot.slane %v1506_v21, 4 }
 0x2e5   : >> { %v1548_v18 = vshrl.u32 %v1417_v0, 16  ;;  %v1551_v51 = vshll.u32 %v1417_v0, 16  ;;  %v1460_v54 = vsel %vm290_vm10, %v5393_v58, %v1378_v49  ;;  %2106 = vmatprep.mubr.bf16.mxu0 %v1525_v44  ;;  %v5611_v35 = vor.u32 %v1546_v31, %v1543_v53  ;;  %v4428_v44 = vld [vmem:[%s5402_s11 + $0x108] sm:$0xff]  }
 0x2e6   : >> { %v1533_v20 = vshrl.u32 %v1460_v54, 16  ;;  %v1536_v4 = vshll.u32 %v1460_v54, 16  ;;  %v1509_v21 = vor.u32 %v1508_v3, %v1505_v39 }
 0x2e7   : >> { %v1550_v8 = vrot.slane %v1548_v18, 3  ;;  %v1553_v29 = vrot.slane %v1551_v51, 4  ;;  %v1302_v34 = vpop.permute.xlu0 %1301 }
 0x2e8   : >> { %v1411_v11 = vsel %vm290_vm10, %v5377_v46, %v1302_v34  ;;  %v1352_v32 = vpop.permute.xlu1 %1351  ;;  %v1535_v52 = vrot.slane %v1533_v20, 3  ;;  %v1538_v25 = vrot.slane %v1536_v4, 4 }
 0x2e9   : >> { %v1496_v36 = vshrl.u32 %v1411_v11, 16  ;;  %v1499_v59 = vshll.u32 %v1411_v11, 16  ;;  %v1436_v48 = vsel %vm290_vm10, %v5414_v28, %v1352_v32  ;;  %v5615_v58 = vor.u32 %v1553_v29, %v1550_v8  ;;  %v4429_v32 = vld [vmem:[%s5402_s11 + $0x110] sm:$0xff]  }
 0x2ea   : >> { %v1572_v60 = vshrl.u32 %v1436_v48, 16  ;;  %v1575_v1 = vshll.u32 %v1436_v48, 16 }
 0x2eb   : >> { %v1498_v16 = vrot.slane %v1496_v36, 3  ;;  %v1501_v9 = vrot.slane %v1499_v59, 4  ;;  %v1376_v22 = vpop.permute.xlu0 %1375  ;;  %v5620_v46 = vsel %vm824_vm11, %v5611_v35, %v5615_v58 }
 0x2ec   : >> { %v1574_v26 = vrot.slane %v1572_v60, 3  ;;  %v1577_v56 = vrot.slane %v1575_v1, 4  ;;  %v1457_v24 = vsel %vm290_vm10, %v5396_v19, %v1376_v22  ;;  %2203 = vmatprep.mubr.bf16.mxu1 %v5620_v46  ;;  %v1312_v47 = vpop.permute.xlu1 %1311  ;;  %v1539_v19 = vor.u32 %v1538_v25, %v1535_v52 }
 0x2ed   : >> { %v1526_v41 = vshrl.u32 %v1457_v24, 16  ;;  %v1529_v53 = vshll.u32 %v1457_v24, 16  ;;  %v1421_v31 = vsel %vm290_vm10, %v5382_v38, %v1312_v47  ;;  %v1502_v0 = vor.u32 %v1501_v9, %v1498_v16 }
 0x2ee   : >> { %v5627_v49 = vor.u32 %v1577_v56, %v1574_v26  ;;  %v1620_v8 = vshrl.u32 %v1421_v31, 16  ;;  %v1623_v29 = vshll.u32 %v1421_v31, 16 }
 0x2ef   : >> { %v1528_v18 = vrot.slane %v1526_v41, 3  ;;  %v1531_v51 = vrot.slane %v1529_v53, 4  ;;  %v1310_v54 = vpop.permute.xlu0 %1309  ;;  %v1510_v20 = vsel %vm824_vm11, %v1502_v0, %v1509_v21  ;;  %v4430_v41 = vld [vmem:[%s5402_s11 + $0x118] sm:$0xff]   ;;  %v1571_v0 = vsel %vm824_vm11, %v1509_v21, %v5611_v35 }
 0x2f0   : >> { %v1419_v4 = vsel %vm290_vm10, %v5375_v42, %v1310_v54  ;;  %2107 = vmatmul.mubr.bf16.vlgmr.msra.gmra.mrb[0].mxu0 %v1510_v20  ;;  %v1579_v38 = vsel %vm824_vm11, %v1524_v43, %v5627_v49  ;;  %v1382_v34 = vpop.permute.xlu1 %1381  ;;  %v1622_v60 = vrot.slane %v1620_v8, 3  ;;  %v1625_v1 = vrot.slane %v1623_v29, 4 }
 0x2f1   : >> { %v1588_v39 = vshrl.u32 %v1419_v4, 16  ;;  %v1591_v3 = vshll.u32 %v1419_v4, 16  ;;  %2114 = vmatprep.mubr.bf16.mxu0 %v1579_v38  ;;  %v1532_v11 = vor.u32 %v1531_v51, %v1528_v18  ;;  %4215 = vmatpush3.bf16.msra.mxu0 %v5548_v45  ;;  %v1466_v48 = vsel %vm290_vm10, %v5456_v15, %v1382_v34 }
 0x2f2   : >> { %4216 = vmatprep.subr.bf16.mxu0 %v4428_v44  ;;  %v1612_v15 = vshrl.u32 %v1466_v48, 16  ;;  %v1615_v56 = vshll.u32 %v1466_v48, 16  ;;  %v1626_v20 = vor.u32 %v1625_v1, %v1622_v60 }
 0x2f3   : >> { %v1590_v36 = vrot.slane %v1588_v39, 3  ;;  %v1593_v59 = vrot.slane %v1591_v3, 4  ;;  %v1380_v52 = vpop.permute.xlu0 %1379  ;;  %v1540_v42 = vsel %vm824_vm11, %v1532_v11, %v1539_v19 }
 0x2f4   : >> { %v1463_v43 = vsel %vm290_vm10, %v5408_v62, %v1380_v52  ;;  %2204 = vmatmul.mubr.bf16.vlgmr.msra.gmra.mrb[0].mxu1 %v1540_v42  ;;  %v1356_v25 = vpop.permute.xlu1 %1355  ;;  %v1614_v35 = vrot.slane %v1612_v15, 3  ;;  %v1617_v21 = vrot.slane %v1615_v56, 4 }
 0x2f5   : >> { %v1580_v16 = vshrl.u32 %v1463_v43, 16  ;;  %v1583_v9 = vshll.u32 %v1463_v43, 16  ;;  %4276 = vmatpush3.bf16.msra.mxu1 %v5548_v45  ;;  %v1594_v22 = vor.u32 %v1593_v59, %v1590_v36  ;;  %v1442_v26 = vsel %vm290_vm10, %v5461_v37, %v1356_v25  ;;  %4217 = vmatpush3.bf16.msra.mxu0 %v4428_v44 }
 0x2f6   : >> { %v1636_v24 = vshrl.u32 %v1442_v26, 16  ;;  %v1639_v47 = vshll.u32 %v1442_v26, 16  ;;  %4273 = vmatprep.subr.bf16.mxu1 %v4428_v44  ;;  %4218 = vmatprep.subr.bf16.mxu0 %v4429_v32 }
 0x2f7   : >> { %v1582_v53 = vrot.slane %v1580_v16, 3  ;;  %v1585_v62 = vrot.slane %v1583_v9, 4  ;;  %v1354_v31 = vpop.permute.xlu0 %1353  ;;  %v5650_v45 = vsel %vm824_vm11, %v5615_v58, %v1594_v22  ;;  %v5661_v59 = vsel %vm824_vm11, %v1594_v22, %v1626_v20 }
 0x2f8   : >> { %v1439_v18 = vsel %vm290_vm10, %v5475_v6, %v1354_v31  ;;  %2115 = vmatmul.mubr.bf16.gmra.mrb[4].mxu0 %v1571_v0  ;;  %2211 = vmatprep.mubr.bf16.mxu1 %v5650_v45  ;;  %v1638_v51 = vrot.slane %v1636_v24, 3  ;;  %v1641_v54 = vrot.slane %v1639_v47, 4  ;;  %v1316_v8 = vpop.permute.xlu1 %1315 }
 0x2f9   : >> { %v1604_v29 = vshrl.u32 %v1439_v18, 16  ;;  %v1607_v4 = vshll.u32 %v1439_v18, 16  ;;  %v1586_v38 = vor.u32 %v1585_v62, %v1582_v53  ;;  %4277 = vmatpush3.bf16.msra.mxu1 %v4428_v44  ;;  %4219 = vmatpush3.bf16.msra.mxu0 %v4429_v32  ;;  %v1425_v42 = vsel %vm290_vm10, %v5438_v10, %v1316_v8 }
 0x2fa   : >> { %4274 = vmatprep.subr.bf16.mxu1 %v4429_v32  ;;  %4220 = vmatprep.subr.bf16.mxu0 %v4430_v41  ;;  %v5656_v11 = vor.u32 %v1641_v54, %v1638_v51  ;;  %v1684_v9 = vshrl.u32 %v1425_v42, 16  ;;  %v1687_v22 = vshll.u32 %v1425_v42, 16 }
 0x2fb   : >> { %v1606_v58 = vrot.slane %v1604_v29, 3  ;;  %v1609_v34 = vrot.slane %v1607_v4, 4  ;;  %v1314_v39 = vpop.permute.xlu0 %1313  ;;  %v1587_v3 = vsel %vm824_vm11, %v1539_v19, %v1586_v38  ;;  %v1618_v19 = vor.u32 %v1617_v21, %v1614_v35 }
 0x2fc   : >> { %v1423_v36 = vsel %vm290_vm10, %v5398_v27, %v1314_v39  ;;  %2212 = vmatmul.mubr.bf16.gmra.mrb[4].mxu1 %v1587_v3  ;;  %v1386_v44 = vpop.permute.xlu1 %1385  ;;  %v1686_v0 = vrot.slane %v1684_v9, 3  ;;  %v1689_v18 = vrot.slane %v1687_v22, 4 }
 0x2fd   : >> { %v1652_v48 = vshrl.u32 %v1423_v36, 16  ;;  %v1655_v52 = vshll.u32 %v1423_v36, 16  ;;  %2219 = vmatprep.mubr.bf16.mxu1 %v5661_v59  ;;  %v1610_v60 = vor.u32 %v1609_v34, %v1606_v58  ;;  %4278 = vmatpush3.bf16.msra.mxu1 %v4429_v32  ;;  %v1472_v24 = vsel %vm290_vm10, %v5502_v7, %v1386_v44 }
 0x2fe   : >> { %4275 = vmatprep.subr.bf16.mxu1 %v4430_v41  ;;  %4221 = vmatpush3.bf16.msra.mxu0 %v4430_v41  ;;  %v1679_v54 = vshll.u32 %v1472_v24, 16  ;;  %v5684_v58 = vor.u32 %v1689_v18, %v1686_v0 }
 0x2ff   : >> { %v1654_v1 = vrot.slane %v1652_v48, 3  ;;  %v1657_v43 = vrot.slane %v1655_v52, 4  ;;  %v1384_v27 = vpop.permute.xlu0 %1383  ;;  %v1611_v25 = vsel %vm824_vm11, %v5627_v49, %v1610_v60  ;;  %v1643_v16 = vsel %vm824_vm11, %v1610_v60, %v5656_v11 }
 0x300   : >> { %v1469_v26 = vsel %vm290_vm10, %v5441_v17, %v1384_v27  ;;  %2122 = vmatprep.mubr.bf16.mxu0 %v1611_v25  ;;  %v1402_v10 = vpop.permute.xlu1 %1401  ;;  %v1619_v49 = vsel %vm824_vm11, %v1586_v38, %v1618_v19  ;;  %v1681_v48 = vrot.slane %v1679_v54, 4 }
 0x301   : >> { %v1644_v32 = vshrl.u32 %v1469_v26, 16  ;;  %v1647_v15 = vshll.u32 %v1469_v26, 16  ;;  %2123 = vmatmul.mubr.bf16.gmra.mrb[8].mxu0 %v5620_v46  ;;  %v1658_v56 = vor.u32 %v1657_v43, %v1654_v1  ;;  %4279 = vmatpush3.bf16.msra.mxu1 %v4430_v41  ;;  %v1483_v17 = vsel %vm290_vm10, %v5445_v57, %v1402_v10 }
 0x302   : >> { %2130 = vmatprep.mubr.bf16.mxu0 %v1643_v16  ;;  %v1676_v41 = vshrl.u32 %v1472_v24, 16  ;;  %v1716_v8 = vshrl.u32 %v1483_v17, 16  ;;  %v1719_v29 = vshll.u32 %v1483_v17, 16 }
 0x303   : >> { %v1646_v47 = vrot.slane %v1644_v32, 3  ;;  %v1649_v53 = vrot.slane %v1647_v15, 4  ;;  %v1358_v62 = vpop.permute.xlu0 %1357  ;;  %v5677_v31 = vsel %vm824_vm11, %v1626_v20, %v1658_v56 }
 0x304   : >> { %v1445_v46 = vsel %vm290_vm10, %v5520_v40, %v1358_v62  ;;  %2220 = vmatmul.mubr.bf16.gmra.mrb[8].mxu1 %v1619_v49  ;;  %v1362_v21 = vpop.permute.xlu1 %1361  ;;  %v1678_v39 = vrot.slane %v1676_v41, 3  ;;  %v1718_v52 = vrot.slane %v1716_v8, 3  ;;  %v1721_v42 = vrot.slane %v1719_v29, 4 }
 0x305   : >> { %v1668_v7 = vshrl.u32 %v1445_v46, 16  ;;  %v1671_v51 = vshll.u32 %v1445_v46, 16  ;;  %2227 = vmatprep.mubr.bf16.mxu1 %v5677_v31  ;;  %v1650_v35 = vor.u32 %v1649_v53, %v1646_v47  ;;  %v1451_v60 = vsel %vm290_vm10, %v5564_v33, %v1362_v21 }
 0x306   : >> { %v1733_v22 = vshrl.u32 %v1451_v60, 16  ;;  %v1736_v26 = vshll.u32 %v1451_v60, 16  ;;  %v1682_v15 = vor.u32 %v1681_v48, %v1678_v39  ;;  %v1722_v47 = vor.u32 %v1721_v42, %v1718_v52 }
 0x307   : >> { %v1670_v4 = vrot.slane %v1668_v7, 3  ;;  %v1673_v20 = vrot.slane %v1671_v51, 4  ;;  %v1360_v38 = vpop.permute.xlu0 %1359  ;;  %v1651_v16 = vsel %vm824_vm11, %v1618_v19, %v1650_v35  ;;  %v1559_v21 = vshll.u32 %v5414_v28, 16 }
 0x308   : >> { %v1448_v34 = vsel %vm290_vm10, %v5510_v2, %v1360_v38  ;;  %v1390_v10 = vpop.permute.xlu1 %1389  ;;  %v1735_v53 = vrot.slane %v1733_v22, 3  ;;  %v1738_v62 = vrot.slane %v1736_v26, 4  ;;  %v1683_v0 = vsel %vm824_vm11, %v1650_v35, %v1682_v15 }
 0x309   : >> { %v1700_v3 = vshrl.u32 %v1448_v34, 16  ;;  %v1703_v36 = vshll.u32 %v1448_v34, 16  ;;  %2131 = vmatmul.mubr.bf16.gmra.mrb[12].mxu0 %v5650_v45  ;;  %v1674_v44 = vor.u32 %v1673_v20, %v1670_v4  ;;  %v5698_v45 = vsel %vm824_vm11, %v1658_v56, %v5684_v58 }
 0x30a   : >> { %v1478_v41 = vsel %vm290_vm10, %v5526_v30, %v1390_v10  ;;  %v1723_v51 = vsel %vm824_vm11, %v5684_v58, %v1722_v47  ;;  %v1739_v38 = vor.u32 %v1738_v62, %v1735_v53  ;;  %v1556_v30 = vshrl.u32 %v5414_v28, 16 }
 0x30b   : >> { %v1702_v1 = vrot.slane %v1700_v3, 3  ;;  %v1705_v43 = vrot.slane %v1703_v36, 4  ;;  %v1388_v27 = vpop.permute.xlu0 %1387  ;;  %v1675_v25 = vsel %vm824_vm11, %v5656_v11, %v1674_v44  ;;  %v1741_v35 = vshrl.u32 %v1478_v41, 16 }
 0x30c   : >> { %v1475_v9 = vsel %vm290_vm10, %v5492_v50, %v1388_v27  ;;  %2138 = vmatprep.mubr.bf16.mxu0 %v1675_v25  ;;  %2228 = vmatmul.mubr.bf16.gmra.mrb[12].mxu1 %v1651_v16  ;;  %v1406_v54 = vpop.permute.xlu1 %1405  ;;  %v1744_v34 = vshll.u32 %v1478_v41, 16  ;;  %v1566_v52 = vshll.u32 %v5475_v6, 16  ;;  %v1558_v27 = vrot.slane %v1556_v30, 3 }
 0x30d   : >> { %2235 = vmatprep.mubr.bf16.mxu1 %v5698_v45  ;;  %v1706_v32 = vor.u32 %v1705_v43, %v1702_v1  ;;  %v1708_v24 = vshrl.u32 %v1475_v9, 16  ;;  %v1711_v11 = vshll.u32 %v1475_v9, 16  ;;  %v1743_v43 = vrot.slane %v1741_v35, 3 }
 0x30e   : >> { %v1561_v25 = vrot.slane %v1559_v21, 4  ;;  %v1746_v16 = vrot.slane %v1744_v34, 4  ;;  %v1596_v53 = vshrl.u32 %v5461_v37, 16 }
 0x30f   : >> { %v1404_v49 = vpop.permute.xlu0 %1403  ;;  %v1707_v19 = vsel %vm824_vm11, %v1674_v44, %v1706_v32  ;;  %v1710_v18 = vrot.slane %v1708_v24, 3  ;;  %v1713_v46 = vrot.slane %v1711_v11, 4  ;;  %v1740_v1 = vsel %vm824_vm11, %v1706_v32, %v1739_v38 }
 0x310   : >> { %v1485_v50 = vsel %vm290_vm10, %v5478_v63, %v1404_v49  ;;  %v1392_v28 = vpop.permute.xlu1 %1391  ;;  %v1568_v11 = vrot.slane %v1566_v52, 4  ;;  %v1660_v49 = vshrl.u32 %v5510_v2, 16  ;;  %v1562_v41 = vor.u32 %v1561_v25, %v1558_v27 }
 0x311   : >> { %v1749_v56 = vshrl.u32 %v1485_v50, 16  ;;  %v1752_v17 = vshll.u32 %v1485_v50, 16  ;;  %2139 = vmatmul.mubr.bf16.gmra.mrb[16].mxu0 %v5661_v59  ;;  %v1487_v59 = vsel %vm290_vm10, %v5528_v14, %v1406_v54  ;;  %v1714_v44 = vor.u32 %v1713_v46, %v1710_v18 }
 0x312   : >> { %2146 = vmatprep.mubr.bf16.mxu0 %v1707_v19  ;;  %v1790_v39 = vshrl.u32 %v1487_v59, 16  ;;  %v1793_v3 = vshll.u32 %v1487_v59, 16  ;;  %v1481_v24 = vsel %vm290_vm10, %v5566_v5, %v1392_v28  ;;  %v1663_v19 = vshll.u32 %v5510_v2, 16 }
 0x313   : >> { %v1364_v7 = vpop.permute.xlu0 %1363  ;;  %v1751_v63 = vrot.slane %v1749_v56, 3  ;;  %v1754_v8 = vrot.slane %v1752_v17, 4  ;;  %v1715_v26 = vsel %vm824_vm11, %v1682_v15, %v1714_v44  ;;  %v1692_v50 = vshrl.u32 %v5564_v33, 16 }
 0x314   : >> { %v1454_v29 = vsel %vm290_vm10, %v5545_v12, %v1364_v7  ;;  %2236 = vmatmul.mubr.bf16.gmra.mrb[16].mxu1 %v1683_v0  ;;  %v1563_v12 = vshrl.u32 %v5475_v6, 16  ;;  %v1792_v9 = vrot.slane %v1790_v39, 3  ;;  %v1795_v22 = vrot.slane %v1793_v3, 4 }
 0x315   : >> { %v1774_v4 = vshrl.u32 %v1454_v29, 16  ;;  %v1777_v20 = vshll.u32 %v1454_v29, 16  ;;  %2243 = vmatprep.mubr.bf16.mxu1 %v1723_v51  ;;  %v1755_v48 = vor.u32 %v1754_v8, %v1751_v63  ;;  %v1695_v15 = vshll.u32 %v5564_v33, 16 }
 0x316   : >> { %v1565_v32 = vrot.slane %v1563_v12, 3  ;;  %v1782_v62 = vshrl.u32 %v1481_v24, 16  ;;  %v1785_v56 = vshll.u32 %v1481_v24, 16  ;;  %v1747_v5 = vor.u32 %v1746_v16, %v1743_v43 }
 0x317   : >> { %v1318_v36 = vpop.permute.xlu0 %1317  ;;  %v1776_v14 = vrot.slane %v1774_v4, 3  ;;  %v1779_v42 = vrot.slane %v1777_v20, 4  ;;  %v1599_v17 = vshll.u32 %v5461_v37, 16  ;;  %v1796_v18 = vor.u32 %v1795_v22, %v1792_v9  ;;  %v5762_v22 = vld [vmem:[%s1488_s14] ss:$0 sm:$0xff] }
 0x318   : >> { %v1427_v60 = vsel %vm290_vm10, %v5445_v57, %v1318_v36  ;;  %v1756_v57 = vsel %vm824_vm11, %v1722_v47, %v1755_v48  ;;  %v1569_v2 = vor.u32 %v1568_v11, %v1565_v32  ;;  %v1662_v7 = vrot.slane %v1660_v49, 3 }
 0x319   : >> { %2147 = vmatmul.mubr.bf16.gmra.mrb[20].mxu0 %v5677_v31  ;;  %v1766_v6 = vshrl.u32 %v1427_v60, 16  ;;  %v1769_v10 = vshll.u32 %v1427_v60, 16  ;;  %v1780_v31 = vor.u32 %v1779_v42, %v1776_v14  ;;  %v1665_v51 = vrot.slane %v1663_v19, 4 }
 0x31a   : >> { %2154 = vmatprep.mubr.bf16.mxu0 %v1740_v1  ;;  %v1694_v33 = vrot.slane %v1692_v50, 3  ;;  %v1697_v54 = vrot.slane %v1695_v15, 4  ;;  %v1628_v63 = vshrl.u32 %v5520_v40, 16  ;;  %v1784_v8 = vrot.slane %v1782_v62, 3 }
 0x31b   : >> { %v1768_v47 = vrot.slane %v1766_v6, 3  ;;  %v1771_v0 = vrot.slane %v1769_v10, 4  ;;  %v1781_v46 = vsel %vm824_vm11, %v1739_v38, %v1780_v31  ;;  %v1787_v29 = vrot.slane %v1785_v56, 4 }
 0x31c   : >> { %2244 = vmatmul.mubr.bf16.gmra.mrb[20].mxu1 %v1715_v26  ;;  %v1748_v37 = vsel %vm824_vm11, %v1714_v44, %v1747_v5  ;;  %v1631_v59 = vshll.u32 %v5520_v40, 16  ;;  %v1598_v20 = vrot.slane %v1596_v53, 3  ;;  %v1601_v38 = vrot.slane %v1599_v17, 4 }
 0x31d   : >> { %2251 = vmatprep.mubr.bf16.mxu1 %v1756_v57  ;;  %v1772_v4 = vor.u32 %v1771_v0, %v1768_v47  ;;  %v1666_v35 = vor.u32 %v1665_v51, %v1662_v7  ;;  %v1698_v30 = vor.u32 %v1697_v54, %v1694_v33  ;;  %v1788_v21 = vor.u32 %v1787_v29, %v1784_v8 }
 0x31e   : >> { %v1570_v34 = vsel %vm824_vm11, %v1562_v41, %v1569_v2  ;;  %v1630_v39 = vrot.slane %v1628_v63, 3  ;;  %v1633_v3 = vrot.slane %v1631_v59, 4  ;;  %v1602_v40 = vor.u32 %v1601_v38, %v1598_v20 }
 0x31f   : >> { %v1773_v36 = vsel %vm824_vm11, %v5684_v58, %v1772_v4  ;;  %v1699_v44 = vsel %vm824_vm11, %v1666_v35, %v1698_v30  ;;  %v1799_v52 = vshrl.u32 %v5580_v23, 16  ;;  %v1802_v14 = vshll.u32 %v5580_v23, 16 }
 0x320   : >> { %v1634_v12 = vor.u32 %v1633_v3, %v1630_v39  ;;  %v1603_v42 = vsel %vm824_vm11, %v1569_v2, %v1602_v40  ;;  %v1732_v60 = vsel %vm824_vm11, %v1698_v30, %v5584_v55 }
 0x321   : >> { %2155 = vmatmul.mubr.bf16.gmra.mrb[24].mxu0 %v5698_v45  ;;  %v1797_v45 = vsel %vm824_vm11, %v1755_v48, %v1796_v18  ;;  %v1789_v48 = vsel %vm824_vm11, %v1747_v5, %v1788_v21  ;;  %v1801_v1 = vrot.slane %v1799_v52, 3  ;;  %v1804_v28 = vrot.slane %v1802_v14, 4 }
 0x322   : >> { %2162 = vmatprep.mubr.bf16.mxu0 %v1781_v46  ;;  %v1635_v58 = vsel %vm824_vm11, %v1602_v40, %v1634_v12  ;;  %v1667_v43 = vsel %vm824_vm11, %v1634_v12, %v1666_v35 }
 0x323   : >> { %v1805_v23 = vor.u32 %v1804_v28, %v1801_v1 }
 0x324   : >> { %2252 = vmatmul.mubr.bf16.gmra.mrb[24].mxu1 %v1748_v37 }
 0x325   : >> { %2259 = vmatprep.mubr.bf16.mxu1 %v1797_v45  ;;  %v1806_v27 = vsel %vm824_vm11, %v5586_v13, %v1805_v23 }
 0x329   : >> { %2163 = vmatmul.mubr.bf16.gmra.mrb[28].mxu0 %v1773_v36 }
 0x32a   : >> { %4222 = vmatprep.mubr.msk.bf16.mxu0 %vm290_vm10, %v1570_v34 }
 0x32c   : >> { %2260 = vmatmul.mubr.bf16.gmra.mrb[28].mxu1 %v1789_v48 }
 0x32d   : >> { %4230 = vmatprep.mubr.msk.bf16.mxu1 %vm290_vm10, %v1699_v44 }
 0x331   : >> { %4223 = vmatmul.mubr.msk.bf16.vlgmr.msra.gmra.mrb[32].mxu0 %vm290_vm10, %v1603_v42 }
 0x332   : >> { %4226 = vmatprep.mubr.msk.bf16.mxu0 %vm290_vm10, %v1635_v58 }
 0x334   : >> { %4231 = vmatmul.mubr.msk.bf16.vlgmr.msra.gmra.mrb[32].mxu1 %vm290_vm10, %v1732_v60 }
 0x335   : >> { %4234 = vmatprep.mubr.msk.bf16.mxu1 %vm290_vm10, %v5591_v61 }
 0x339   : >> { %4227 = vmatmul.mubr.msk.bf16.gmra.mrb[36].mxu0 %vm290_vm10, %v1667_v43 }
 0x33c   : >> { %4235 = vmatmul.mubr.msk.bf16.gmra.mrb[36].mxu1 %vm290_vm10, %v1806_v27 }
 0x3c3   : >> { %v3924_v55 = vpop.f32.mrb[0].mxu0 }
 0x3c4   : >> { %v3925_v25 = vpop.f32.mrb[1].mxu0 }
 0x3c5   : >> { %v3926_v16 = vadd.f32 %v3925_v25, %v3924_v55  ;;  %v3927_v9 = vpop.f32.mrb[2].mxu0 }
 0x3c6   : >> { %v3928_v26 = vpop.f32.mrb[3].mxu0 }
 0x3c7   : >> { %v3988_v6 = vpop.f32.mrb[0].mxu1  ;;  %v2109_v10 = vadd.f32 %v3926_v16, %v5762_v22 }
 0x3c8   : >> { %v3989_v61 = vpop.f32.mrb[1].mxu1 }
 0x3c9   : >> { %v3990_v24 = vadd.f32 %v3989_v61, %v3988_v6  ;;  %v3991_v57 = vpop.f32.mrb[2].mxu1 }
 0x3ca   : >> { %v3992_v31 = vpop.f32.mrb[3].mxu1 }
 0x3cb   : >> { %v3930_v32 = vpop.f32.mrb[4].mxu0  ;;  %v5765_v11 = vadd.f32 %v3990_v24, %v2109_v10 }
 0x3cc   : >> { %v3931_v13 = vpop.f32.mrb[5].mxu0 }
 0x3cd   : >> { %v3932_v49 = vadd.f32 %v3931_v13, %v3930_v32  ;;  %v3933_v19 = vpop.f32.mrb[6].mxu0 }
 0x3ce   : >> { %v3934_v50 = vpop.f32.mrb[7].mxu0 }
 0x3cf   : >> { %v3994_v15 = vpop.f32.mrb[4].mxu1  ;;  %v2117_v62 = vadd.f32 %v3932_v49, %v5762_v22 }
 0x3d0   : >> { %v3995_v53 = vpop.f32.mrb[5].mxu1 }
 0x3d1   : >> { %v3996_v56 = vadd.f32 %v3995_v53, %v3994_v15  ;;  %v3997_v5 = vpop.f32.mrb[6].mxu1 }
 0x3d2   : >> { %v3998_v17 = vpop.f32.mrb[7].mxu1 }
 0x3d3   : >> { %v5768_v47 = vadd.f32 %v3996_v56, %v2117_v62 }
 0x3d4   : >> { %v3936_v0 = vpop.f32.mrb[8].mxu0 }
 0x3d5   : >> { %v3937_v18 = vpop.f32.mrb[9].mxu0 }
 0x3d6   : >> { %v3938_v46 = vadd.f32 %v3937_v18, %v3936_v0  ;;  %v3939_v41 = vpop.f32.mrb[10].mxu0 }
 0x3d7   : >> { %v3940_v2 = vpop.f32.mrb[11].mxu0  ;;  %v4000_v7 = vpop.f32.mrb[8].mxu1 }
 0x3d8   : >> { %v2125_v51 = vadd.f32 %v3938_v46, %v5762_v22  ;;  %v4001_v33 = vpop.f32.mrb[9].mxu1 }
 0x3d9   : >> { %v4002_v54 = vadd.f32 %v4001_v33, %v4000_v7  ;;  %v4003_v63 = vpop.f32.mrb[10].mxu1 }
 0x3da   : >> { %v4004_v8 = vpop.f32.mrb[11].mxu1 }
 0x3db   : >> { %v5771_v29 = vadd.f32 %v4002_v54, %v2125_v51 }
 0x3dc   : >> { %v3942_v37 = vpop.f32.mrb[12].mxu0 }
 0x3dd   : >> { %v3943_v59 = vpop.f32.mrb[13].mxu0 }
 0x3de   : >> { %v3944_v45 = vadd.f32 %v3943_v59, %v3942_v37  ;;  %v3945_v4 = vpop.f32.mrb[14].mxu0 }
 0x3df   : >> { %v3946_v20 = vpop.f32.mrb[15].mxu0  ;;  %v4006_v38 = vpop.f32.mrb[12].mxu1 }
 0x3e0   : >> { %v2133_v35 = vadd.f32 %v3944_v45, %v5762_v22  ;;  %v4007_v30 = vpop.f32.mrb[13].mxu1 }
 0x3e1   : >> { %v4008_v21 = vadd.f32 %v4007_v30, %v4006_v38  ;;  %v4009_v34 = vpop.f32.mrb[14].mxu1 }
 0x3e2   : >> { %v4010_v39 = vpop.f32.mrb[15].mxu1 }
 0x3e3   : >> { %v5774_v3 = vadd.f32 %v4008_v21, %v2133_v35 }
 0x3e4   : >> { %v3948_v36 = vpop.f32.mrb[16].mxu0 }
 0x3e5   : >> { %v3949_v40 = vpop.f32.mrb[17].mxu0 }
 0x3e6   : >> { %v3950_v44 = vadd.f32 %v3949_v40, %v3948_v36  ;;  %v3951_v48 = vpop.f32.mrb[18].mxu0  ;;  %v4626_v36 = vmov 0.0  }
 0x3e7   : >> { %v3952_v12 = vpop.f32.mrb[19].mxu0  ;;  %v4012_v52 = vpop.f32.mrb[16].mxu1 }
 0x3e8   : >> { %v2141_v14 = vadd.f32 %v3950_v44, %v5762_v22  ;;  %v4013_v42 = vpop.f32.mrb[17].mxu1 }
 0x3e9   : >> { %v4014_v58 = vadd.f32 %v4013_v42, %v4012_v52  ;;  %v4015_v60 = vpop.f32.mrb[18].mxu1 }
 0x3ea   : >> { %v4016_v1 = vpop.f32.mrb[19].mxu1 }
 0x3eb   : >> { %v2238_v28 = vadd.f32 %v4014_v58, %v2141_v14 }
 0x3ec   : >> { %v3954_v23 = vpop.f32.mrb[20].mxu0 }
 0x3ed   : >> { %v3955_v43 = vpop.f32.mrb[21].mxu0 }
 0x3ee   : >> { %v3956_v27 = vadd.f32 %v3955_v43, %v3954_v23  ;;  %v3957_v55 = vpop.f32.mrb[22].mxu0 }
 0x3ef   : >> { %v3958_v25 = vpop.f32.mrb[23].mxu0  ;;  %v4018_v16 = vpop.f32.mrb[20].mxu1 }
 0x3f0   : >> { %v2149_v9 = vadd.f32 %v3956_v27, %v5762_v22  ;;  %v4019_v26 = vpop.f32.mrb[21].mxu1 }
 0x3f1   : >> { %v4020_v6 = vadd.f32 %v4019_v26, %v4018_v16  ;;  %v4021_v61 = vpop.f32.mrb[22].mxu1 }
 0x3f2   : >> { %v4022_v10 = vpop.f32.mrb[23].mxu1 }
 0x3f3   : >> { %v2246_v24 = vadd.f32 %v4020_v6, %v2149_v9 }
 0x3f4   : >> { %v3960_v57 = vpop.f32.mrb[24].mxu0 }
 0x3f5   : >> { %v3961_v31 = vpop.f32.mrb[25].mxu0 }
 0x3f6   : >> { %v3962_v32 = vadd.f32 %v3961_v31, %v3960_v57  ;;  %v3963_v13 = vpop.f32.mrb[26].mxu0 }
 0x3f7   : >> { %v3964_v49 = vpop.f32.mrb[27].mxu0  ;;  %v4024_v19 = vpop.f32.mrb[24].mxu1 }
 0x3f8   : >> { %v2157_v50 = vadd.f32 %v3962_v32, %v5762_v22  ;;  %v4025_v15 = vpop.f32.mrb[25].mxu1 }
 0x3f9   : >> { %v4026_v53 = vadd.f32 %v4025_v15, %v4024_v19  ;;  %v4027_v62 = vpop.f32.mrb[26].mxu1 }
 0x3fa   : >> { %v4028_v56 = vpop.f32.mrb[27].mxu1 }
 0x3fb   : >> { %v2254_v5 = vadd.f32 %v4026_v53, %v2157_v50 }
 0x3fc   : >> { %v3966_v17 = vpop.f32.mrb[28].mxu0 }
 0x3fd   : >> { %v3967_v0 = vpop.f32.mrb[29].mxu0 }
 0x3fe   : >> { %v3968_v18 = vadd.f32 %v3967_v0, %v3966_v17  ;;  %v3969_v46 = vpop.f32.mrb[30].mxu0 }
 0x3ff   : >> { %v3970_v41 = vpop.f32.mrb[31].mxu0  ;;  %v4030_v2 = vpop.f32.mrb[28].mxu1 }
 0x400   : >> { %v2165_v7 = vadd.f32 %v3968_v18, %v5762_v22  ;;  %v4031_v51 = vpop.f32.mrb[29].mxu1 }
 0x401   : >> { %v4032_v33 = vadd.f32 %v4031_v51, %v4030_v2  ;;  %v4033_v54 = vpop.f32.mrb[30].mxu1 }
 0x402   : >> { %v4034_v63 = vpop.f32.mrb[31].mxu1 }
 0x403   : >> { %v2262_v8 = vadd.f32 %v4032_v33, %v2165_v7 }
 0x404   : >> { %v4224_v37 = vpop.f32.mrb[32].mxu0 }
 0x405   : >> { %v2311_v59 = vadd.f32 %v4224_v37, %v5768_v47  ;;  %v2302_v45 = vpop.f32.mrb[33].mxu0  ;;  %v5817_v37 = vld [vmem:[#allocation2] sm:$0xff] (%p1139_p6) }
 0x406   : >> { %v2303_v4 = vadd.f32 %v2302_v45, %v5765_v11  ;;  %v4225_v20 = vpop.f32.mrb[34].mxu0 }
 0x407   : >> { %v2367_v38 = vmax.f32 %v2311_v59, 0.0  ;;  %v2305_v35 = vpop.f32.mrb[35].mxu0  ;;  %v4232_v30 = vpop.f32.mrb[32].mxu1 }
 0x408   : >> { %v2365_v21 = vmax.f32 %v2303_v4, 0.0  ;;  %v2343_v34 = vadd.f32 %v4232_v30, %v2246_v24  ;;  %v2334_v39 = vpop.f32.mrb[33].mxu1 }
 0x409   : >> { %v2398_v22 = vpack.c.bf16 %v4626_v36, %v2367_v38  ;;  %v2335_v40 = vadd.f32 %v2334_v39, %v2238_v28  ;;  %v4233_v44 = vpop.f32.mrb[34].mxu1  ;;  %v2533_v39 = vshll.u32 (%p1139_p6), %v5817_v37, 16 }
 0x40a   : >> { %v2397_v48 = vpack.c.bf16 %v4626_v36, %v2365_v21  ;;  %v2375_v12 = vmax.f32 %v2343_v34, 0.0  ;;  %v2337_v52 = vpop.f32.mrb[35].mxu1 }
 0x40b   : >> { %v2414_v14 = vrot.slane %v2398_v22, 4  ;;  %v2373_v42 = vmax.f32 %v2335_v40, 0.0 }
 0x40c   : >> { %v2413_v47 = vrot.slane %v2397_v48, 4  ;;  %v2402_v58 = vpack.c.bf16 %v4626_v36, %v2375_v12  ;;  %v4228_v60 = vpop.f32.mrb[36].mxu0  ;;  %v2531_v48 = vshrl.u32 (%p1139_p6), %v5817_v37, 16  ;;  %v4431_v12 = vld [vmem:[#allocation8 + $0x40] sm:$0xff] (%p1139_p6)  }
 0x40d   : >> { %v2401_v11 = vpack.c.bf16 %v4626_v36, %v2373_v42  ;;  %v2327_v1 = vadd.f32 %v4228_v60, %v5774_v3  ;;  %v2318_v23 = vpop.f32.mrb[37].mxu0  ;;  %4048 = vmatprep.subr.bf16.mxu0 (%p1139_p6), %v4431_v12  ;;  %v4451_v12 = vld [vmem:[#allocation8 + $0xa0] sm:$0xff] (%p1139_p6)  }
 0x40e   : >> { %v2415_v43 = vsel %vm948_vm2, %v2413_v47, %v2414_v14  ;;  %2437 = vst.msk [vmem:[#allocation2 + $0x8] sm:$0xf0] %vm1126_vm13, %v2413_v47  ;;  %v2422_v27 = vrot.slane %v2402_v58, 4  ;;  %v2319_v28 = vadd.f32 %v2318_v23, %v5771_v29  ;;  %v4229_v55 = vpop.f32.mrb[38].mxu0  ;;  %v4432_v47 = vld [vmem:[#allocation8] sm:$0xff] (%p1139_p6)   ;;  %v4434_v23 = vld [vmem:[#allocation8 + $0x48] sm:$0xff] (%p1139_p6)  }
 0x40f   : >> { %2438 = vst.msk [vmem:[#allocation2 + $0x10] sm:$0xff] %vm290_vm10, %v2415_v43  ;;  %v2420_v25 = vrot.slane %v2401_v11, 4  ;;  %v2371_v16 = vmax.f32 %v2327_v1, 0.0  ;;  %v2321_v9 = vpop.f32.mrb[39].mxu0  ;;  %v4236_v26 = vpop.f32.mrb[36].mxu1  ;;  %v4433_v11 = vld [vmem:[#allocation8 + $0xc0] sm:$0xff] (%p1139_p6)   ;;  %4049 = vmatpush3.bf16.msra.mxu0 (%p1139_p6), %v4432_v47 }
 0x410   : >> { %v2369_v6 = vmax.f32 %v2319_v28, 0.0  ;;  %v2359_v61 = vadd.f32 %v4236_v26, %v2262_v8  ;;  %v2350_v10 = vpop.f32.mrb[37].mxu1  ;;  %4112 = vmatprep.subr.bf16.mxu1 (%p1139_p6), %v4433_v11  ;;  %4050 = vmatprep.subr.bf16.mxu0 (%p1139_p6), %v4434_v23  ;;  %v4436_v9 = vld [vmem:[#allocation8 + $0x8] sm:$0xff] (%p1139_p6)  }
 0x411   : >> { %v2423_v3 = vsel %vm948_vm2, %v2420_v25, %v2422_v27  ;;  %v2400_v24 = vpack.c.bf16 %v4626_v36, %v2371_v16  ;;  %v2351_v57 = vadd.f32 %v2350_v10, %v2254_v5  ;;  %v4237_v31 = vpop.f32.mrb[38].mxu1  ;;  %v4435_v16 = vld [vmem:[#allocation8 + $0x80] sm:$0xff] (%p1139_p6)   ;;  %v4437_v10 = vld [vmem:[#allocation8 + $0xc8] sm:$0xff] (%p1139_p6)  }
 0x412   : >> { %2442 = vst.msk [vmem:[#allocation2 + $0x30] sm:$0xff] %vm290_vm10, %v2423_v3  ;;  %v2399_v32 = vpack.c.bf16 %v4626_v36, %v2369_v6  ;;  %v2379_v13 = vmax.f32 %v2359_v61, 0.0  ;;  %v2353_v29 = vpop.f32.mrb[39].mxu1  ;;  %4113 = vmatpush3.bf16.msra.mxu1 (%p1139_p6), %v4435_v16  ;;  %v4438_v3 = vld [vmem:[#allocation8 + $0x50] sm:$0xff] (%p1139_p6)   ;;  %v4453_v47 = vld [vmem:[#allocation8 + $0xe8] sm:$0xff] (%p1139_p6)  }
 0x413   : >> { %v2418_v49 = vrot.slane %v2400_v24, 4  ;;  %v2377_v19 = vmax.f32 %v2351_v57, 0.0  ;;  %4051 = vmatpush3.bf16.msra.mxu0 (%p1139_p6), %v4436_v9  ;;  %4114 = vmatprep.subr.bf16.mxu1 (%p1139_p6), %v4437_v10  ;;  %v4456_v9 = vld [vmem:[#allocation8 + $0x30] sm:$0xff] (%p1139_p6)  }
 0x414   : >> { %v2416_v50 = vrot.slane %v2399_v32, 4  ;;  %v2404_v15 = vpack.c.bf16 %v4626_v36, %v2379_v13  ;;  %1141 = sbr.rel (!%p1139_p6) target bundleno = 613 (0x265), region = 96  ;;  %4052 = vmatprep.subr.bf16.mxu0 (%p1139_p6), %v4438_v3  ;;  %v4439_v32 = vld [vmem:[#allocation8 + $0x88] sm:$0xff] (%p1139_p6)   ;;  %v4440_v13 = vld [vmem:[#allocation8 + $0x10] sm:$0xff] (%p1139_p6)   ;;  %v5934_v3 = vld [vmem:[#allocation2 + $0x50] sm:$0xff] (%p1139_p6) }
 0x415   : >> { %v2421_v53 = vsel %vm948_vm2, %v2418_v49, %v2420_v25  ;;  %v2403_v62 = vpack.c.bf16 %v4626_v36, %v2377_v19  ;;  %v5803_v41 = vld [vmem:[#allocation2 + $0x8] sm:$0xff] (%p1139_p6) }
 0x416   : >> { %2441 = vst.msk [vmem:[#allocation2 + $0x28] sm:$0xff] %vm290_vm10, %v2421_v53  ;;  %v2417_v56 = vsel %vm948_vm2, %v2414_v14, %v2416_v50  ;;  %v2419_v17 = vsel %vm948_vm2, %v2416_v50, %v2418_v49  ;;  %v2426_v5 = vrot.slane %v2404_v15, 4  ;;  %v5805_v2 = vld [vmem:[#allocation2 + $0x10] sm:$0xff] (%p1139_p6)  ;;  %2647 = vrot.lane.b32.xlu1 (%p1139_p6), %v5803_v41, %s4622_s6  ;;  %v2538_v63 = vshll.u32 (%p1139_p6), %v5803_v41, 16  ;;  %4115 = vmatpush3.bf16.msra.mxu1 (%p1139_p6), %v4439_v32  ;;  %v4441_v19 = vld [vmem:[#allocation8 + $0xd0] sm:$0xff] (%p1139_p6)  }
 0x417   : >> { %2439 = vst.msk [vmem:[#allocation2 + $0x18] sm:$0xff] %vm290_vm10, %v2417_v56  ;;  %2440 = vst.msk [vmem:[#allocation2 + $0x20] sm:$0xff] %vm290_vm10, %v2419_v17  ;;  %v2424_v0 = vrot.slane %v2403_v62, 4  ;;  %v2546_v51 = vshll.u32 (%p1139_p6), %v5805_v2, 16  ;;  %v2550_v33 = vshrl.u32 (%p1139_p6), %v5805_v2, 16  ;;  %v2542_v59 = vshrl.u32 (%p1139_p6), %v5803_v41, 16  ;;  %4053 = vmatpush3.bf16.msra.mxu0 (%p1139_p6), %v4440_v13  ;;  %4116 = vmatprep.subr.bf16.mxu1 (%p1139_p6), %v4441_v19 }
 0x418   : >> { %2445 = vst.msk [vmem:[#allocation2 + $0x48] sm:$0xf] %vm1135_vm14, %v2426_v5  ;;  %v2540_v35 = vrot.slane (%p1139_p6), %v2538_v63, 1  ;;  %v2632_v34 = vrot.slane (%p1139_p6), %v5805_v2, 1  ;;  %v2535_v14 = vrot.slane (%p1139_p6), %v2533_v39, 1  ;;  %v2630_v6 = vrot.slane (%p1139_p6), %v5803_v41, 1 }
 0x419   : >> { %v2425_v18 = vsel %vm948_vm2, %v2422_v27, %v2424_v0  ;;  %v2427_v46 = vsel %vm948_vm2, %v2424_v0, %v2426_v5  ;;  %v2548_v20 = vrot.slane (%p1139_p6), %v2546_v51, 1  ;;  %v5826_v36 = vld [vmem:[#allocation2 + $0x30] sm:$0xff] (%p1139_p6) }
 0x41a   : >> { %2443 = vst.msk [vmem:[#allocation2 + $0x38] sm:$0xff] %vm290_vm10, %v2425_v18  ;;  %2444 = vst.msk [vmem:[#allocation2 + $0x40] sm:$0xff] %vm290_vm10, %v2427_v46  ;;  %2649 = vrot.lane.b32.xlu1 (%p1139_p6), %v5805_v2, %s4622_s6  ;;  %v2544_v40 = vor.u32 (%p1139_p6), %v2542_v59, %v2540_v35  ;;  %v2536_v27 = vor.u32 (%p1139_p6), %v2535_v14, %v2531_v48  ;;  %v2578_v55 = vshll.u32 (%p1139_p6), %v5826_v36, 16  ;;  %v4442_v17 = vld [vmem:[#allocation8 + $0x58] sm:$0xff] (%p1139_p6)   ;;  %v4443_v46 = vld [vmem:[#allocation8 + $0x90] sm:$0xff] (%p1139_p6)   ;;  %v2640_v11 = vrot.slane (%p1139_p6), %v5826_v36, 1 }
 0x41b   : > { %v2552_v22 = vor.u32 %v2550_v33, %v2548_v20  ;;  %v5868_v29 = vsel %vm1328_vm0, %v2630_v6, %v2632_v34  ;;  %v4444_v51 = vld [vmem:[#allocation8 + $0x18] sm:$0xff]   ;;  %4054 = vmatprep.subr.bf16.mxu0 %v4442_v17  ;;  %4117 = vmatpush3.bf16.msra.mxu1 %v4443_v46  ;;  %v4446_v59 = vld [vmem:[#allocation8 + $0x60] sm:$0xff]  }
 0x41c   : > { %v5837_v60 = vsel %vm1229_vm15, %v2544_v40, %v2548_v20  ;;  %v2541_v26 = vsel %vm1229_vm15, %v2536_v27, %v2540_v35  ;;  %v2580_v57 = vrot.slane %v2578_v55, 1  ;;  %4055 = vmatpush3.bf16.msra.mxu0 %v4444_v51  ;;  %v4445_v63 = vld [vmem:[#allocation8 + $0xd8] sm:$0xff]   ;;  %v4449_v39 = vld [vmem:[#allocation8 + $0xe0] sm:$0xff]   ;;  %v4450_v40 = vld [vmem:[#allocation8 + $0x68] sm:$0xff]  }
 0x41d   : > { %v5822_v30 = vld [vmem:[#allocation2 + $0x28] sm:$0xff]  ;;  %4118 = vmatprep.subr.bf16.mxu1 %v4445_v63  ;;  %4056 = vmatprep.subr.bf16.mxu0 %v4446_v59  ;;  %v4455_v27 = vld [vmem:[#allocation8 + $0xa8] sm:$0xff]   ;;  %v5943_v19 = vld [vmem:[#allocation8 + $0x100] sm:$0xff]  }
 0x41e   : > { %v5807_v7 = vld [vmem:[#allocation2 + $0x18] sm:$0xff]  ;;  %v5815_v8 = vld [vmem:[#allocation2 + $0x20] sm:$0xff]  ;;  %v2570_v42 = vshll.u32 %v5822_v30, 16  ;;  %v2574_v1 = vshrl.u32 %v5822_v30, 16  ;;  %2603 = vrot.lane.b32.xlu1 %v5837_v60, %s4622_s6  ;;  %v2638_v53 = vrot.slane %v5822_v30, 1  ;;  %v4460_v32 = vld [vmem:[#allocation8 + $0x38] sm:$0xff]  }
 0x41f   : > { %v2554_v54 = vshll.u32 %v5807_v7, 16  ;;  %v2558_v45 = vshrl.u32 %v5807_v7, 16  ;;  %v2562_v4 = vshll.u32 %v5815_v8, 16  ;;  %v2634_v52 = vrot.slane %v5807_v7, 1  ;;  %v5902_v20 = vld [vmem:[#allocation2 + $0x48] sm:$0xff] }
 0x420   : > { %v2572_v28 = vrot.slane %v2570_v42, 1  ;;  %v2566_v61 = vshrl.u32 %v5815_v8, 16  ;;  %v2636_v15 = vrot.slane %v5815_v8, 1  ;;  %v2666_v14 = vshll.u32 %v5902_v20, 16  ;;  %v4452_v42 = vld [vmem:[#allocation8 + $0x28] sm:$0xff]   ;;  %v4461_v13 = vld [vmem:[#allocation8 + $0xf8] sm:$0xff]  }
 0x421   : > { %v2556_v38 = vrot.slane %v2554_v54, 1  ;;  %v2564_v21 = vrot.slane %v2562_v4, 1  ;;  %v5851_v25 = vsel %vm1328_vm0, %v2632_v34, %v2634_v52  ;;  %v5860_v31 = vld [vmem:[#allocation2 + $0x38] sm:$0xff]  ;;  %v5876_v56 = vld [vmem:[#allocation2 + $0x40] sm:$0xff]  ;;  %v2582_v4 = vshrl.u32 %v5826_v36, 16 }
 0x422   : > { %2677 = vrot.lane.b32.xlu1 %v5851_v25, %s4622_s6  ;;  %v2576_v24 = vor.u32 %v2574_v1, %v2572_v28  ;;  %v2586_v62 = vshll.u32 %v5860_v31, 16  ;;  %v2590_v0 = vshrl.u32 %v5860_v31, 16  ;;  %v2594_v18 = vshll.u32 %v5876_v56, 16  ;;  %v4448_v34 = vld [vmem:[#allocation8 + $0x20] sm:$0xff]   ;;  %v4454_v1 = vld [vmem:[#allocation8 + $0x70] sm:$0xff]  }
 0x423   : > { %v2560_v44 = vor.u32 %v2558_v45, %v2556_v38  ;;  %v5834_v58 = vsel %vm1229_vm15, %v2552_v22, %v2556_v38  ;;  %v2568_v49 = vor.u32 %v2566_v61, %v2564_v21  ;;  %v5890_v33 = vsel %vm1328_vm0, %v2636_v15, %v2638_v53  ;;  %v4447_v38 = vld [vmem:[#allocation8 + $0x98] sm:$0xff]   ;;  %4057 = vmatpush3.bf16.msra.mxu0 %v4448_v34 }
 0x424   : > { %2605 = vrot.lane.b32.xlu0 %v5834_v58, %s4622_s6  ;;  %v5871_v50 = vsel %vm1229_vm15, %v2576_v24, %v2580_v57  ;;  %v2588_v54 = vrot.slane %v2586_v62, 1  ;;  %v5899_v45 = vsel %vm1328_vm0, %v2634_v52, %v2636_v15  ;;  %4119 = vmatpush3.bf16.msra.mxu1 %v4447_v38  ;;  %v2642_v22 = vrot.slane %v5860_v31, 1  ;;  %v4458_v61 = vld [vmem:[#allocation8 + $0x78] sm:$0xff]   ;;  %v4459_v24 = vld [vmem:[#allocation8 + $0xb0] sm:$0xff]  }
 0x425   : > { %v5845_v43 = vsel %vm1229_vm15, %v2560_v44, %v2564_v21  ;;  %v5883_v5 = vsel %vm1229_vm15, %v2568_v49, %v2572_v28  ;;  %v2596_v21 = vrot.slane %v2594_v18, 1  ;;  %v2584_v44 = vor.u32 %v2582_v4, %v2580_v57  ;;  %4120 = vmatprep.subr.bf16.mxu1 %v4449_v39  ;;  %4058 = vmatprep.subr.bf16.mxu0 %v4450_v40  ;;  %v4462_v49 = vld [vmem:[#allocation8 + $0xb8] sm:$0xff]  }
 0x426   : > { %2651 = vrot.lane.b32.xlu1 %v5807_v7, %s4622_s6  ;;  %v2592_v35 = vor.u32 %v2590_v0, %v2588_v54  ;;  %v2598_v48 = vshrl.u32 %v5876_v56, 16  ;;  %v5923_v28 = vsel %vm1328_vm0, %v2640_v11, %v2642_v22  ;;  %v2668_v16 = vrot.slane %v2666_v14, 1 }
 0x427   : > { %4059 = vmatpush3.bf16.msra.mxu0 %v4452_v42  ;;  %v5918_v23 = vsel %vm1229_vm15, %v2584_v44, %v2588_v54  ;;  %v5930_v10 = vsel %vm1328_vm0, %v2638_v53, %v2640_v11  ;;  %v2694_v15 = vshll.u32 %v5934_v3, 16  ;;  %v2673_v53 = vrot.slane %v5902_v20, 1 }
 0x428   : > { %2607 = vrot.lane.b32.xlu0 %v5845_v43, %s4622_s6  ;;  %v5911_v52 = vsel %vm1229_vm15, %v2592_v35, %v2596_v21  ;;  %4121 = vmatpush3.bf16.msra.mxu1 %v4451_v12  ;;  %v2600_v55 = vor.u32 %v2598_v48, %v2596_v21  ;;  %v5951_v62 = vrot.slane %v5876_v56, 1  ;;  %v2670_v17 = vshrl.u32 %v5902_v20, 16 }
 0x429   : > { %4122 = vmatprep.subr.bf16.mxu1 %v4453_v47  ;;  %4060 = vmatprep.subr.bf16.mxu0 %v4454_v1  ;;  %v2698_v0 = vshrl.u32 %v5934_v3, 16  ;;  %v2696_v46 = vrot.slane %v2694_v15, 1  ;;  %v5980_v4 = vrot.slane %v5934_v3, 1  ;;  %v2629_v47 = vrot.slane %v5817_v37, 1 }
 0x42a   : > { %2611 = vrot.lane.b32.xlu1 %v5871_v50, %s4622_s6  ;;  %v5937_v57 = vsel %vm1229_vm15, %v2600_v55, %v2668_v16  ;;  %v2674_v18 = vsel %vm1328_vm0, %v5951_v62, %v2673_v53  ;;  %v5964_v51 = vsel %vm1328_vm0, %v2642_v22, %v5951_v62  ;;  %v5966_v54 = vor.u32 %v2670_v17, %v2668_v16 }
 0x42b   : > { %4061 = vmatpush3.bf16.msra.mxu0 %v4456_v9  ;;  %v2700_v63 = vor.u32 %v2698_v0, %v2696_v46  ;;  %v3017_v38 = vshrl.u32 %v2674_v18, 16  ;;  %v3020_v35 = vshll.u32 %v2674_v18, 16  ;;  %v2709_v21 = vsel %vm1328_vm0, %v2673_v53, %v5980_v4 }
 0x42c   : > { %2601 = vrot.lane.b32.xlu0 %v2541_v26, %s4622_s6  ;;  %4123 = vmatpush3.bf16.msra.mxu1 %v4455_v27  ;;  %v4457_v26 = vld [vmem:[#allocation8 + $0xf0] sm:$0xff]   ;;  %v2697_v59 = vsel %vm1229_vm15, %v5966_v54, %v2696_v46  ;;  %v3050_v22 = vshrl.u32 %v2709_v21, 16  ;;  %v3053_v40 = vshll.u32 %v2709_v21, 16  ;;  %v2631_v11 = vsel %vm1328_vm0, %v2629_v47, %v2630_v6 }
 0x42d   : > { %4124 = vmatprep.subr.bf16.mxu1 %v4457_v26  ;;  %4062 = vmatprep.subr.bf16.mxu0 %v4458_v61  ;;  %v3019_v34 = vrot.slane %v3017_v38, 3  ;;  %v3022_v39 = vrot.slane %v3020_v35, 4 }
 0x42e   : > { %2681 = vrot.lane.b32.xlu1 %v5890_v33, %s4622_s6  ;;  %v3052_v44 = vrot.slane %v3050_v22, 3  ;;  %v3055_v48 = vrot.slane %v3053_v40, 4 }
 0x42f   : > { %4063 = vmatpush3.bf16.msra.mxu0 %v4460_v32  ;;  %v5984_v12 = vor.u32 %v3022_v39, %v3019_v34 }
 0x430   : > { %2675 = vrot.lane.b32.xlu0 %v5868_v29, %s4622_s6  ;;  %4125 = vmatpush3.bf16.msra.mxu1 %v4459_v24  ;;  %v5986_v14 = vor.u32 %v3055_v48, %v3052_v44 }
 0x431   : > { %4126 = vmatprep.subr.bf16.mxu1 %v4461_v13  ;;  %4238 = vmatprep.subr.bf16.mxu0 %v5943_v19 }
 0x432   : > { %2655 = vrot.lane.b32.xlu1 %v5822_v30, %s4622_s6  ;;  %v5991_v42 = vsel %vm824_vm11, %v5984_v12, %v5986_v14 }
 0x434   : > { %2609 = vrot.lane.b32.xlu0 %v5883_v5, %s4622_s6  ;;  %4127 = vmatpush3.bf16.msra.mxu1 %v4462_v49 }
 0x435   : > { %4280 = vmatprep.subr.bf16.mxu1 %v5943_v19 }
 0x436   : > { %2615 = vrot.lane.b32.xlu1 %v5911_v52, %s4622_s6 }
 0x438   : > { %2679 = vrot.lane.b32.xlu0 %v5899_v45, %s4622_s6 }
 0x43a   : > { %2685 = vrot.lane.b32.xlu1 %v5923_v28, %s4622_s6 }
 0x43c   : > { %2653 = vrot.lane.b32.xlu0 %v5815_v8, %s4622_s6 }
 0x43e   : > { %2701 = vrot.lane.b32.xlu1 %v5937_v57, %s4622_s6 }
 0x440   : > { %2613 = vrot.lane.b32.xlu0 %v5918_v23, %s4622_s6 }
 0x442   : > { %2661 = vrot.lane.b32.xlu1 %v5876_v56, %s4622_s6 }
 0x444   : > { %2683 = vrot.lane.b32.xlu0 %v5930_v10, %s4622_s6 }
 0x446   : > { %2689 = vrot.lane.b32.xlu1 %v2674_v18, %s4622_s6 }
 0x448   : > { %2657 = vrot.lane.b32.xlu0 %v5826_v36, %s4622_s6 }
 0x44a   : > { %2705 = vrot.lane.b32.xlu1 %v2700_v63, %s4622_s6 }
 0x44c   : > { %2659 = vrot.lane.b32.xlu0 %v5860_v31, %s4622_s6 }
 0x44e   : > { %2691 = vrot.lane.b32.xlu1 %v2673_v53, %s4622_s6 }
 0x450   : > { %2687 = vrot.lane.b32.xlu0 %v5964_v51, %s4622_s6 }
 0x454   : > { %2703 = vrot.lane.b32.xlu0 %v2697_v59, %s4622_s6 }
 0x458   : > { %2663 = vrot.lane.b32.xlu0 %v5902_v20, %s4622_s6 }
 0x45c   : > { %2617 = vrot.lane.b32.xlu0 %v2600_v55, %s4622_s6 }
 0x488   : > { %v2648_v1 = vpop.permute.xlu1 %2647 }
 0x489   : > { %v2730_v27 = vsel %vm290_vm10, %v2631_v11, %v2648_v1 }
 0x48a   : > { %v2803_v55 = vshrl.u32 %v2730_v27, 16  ;;  %v2806_v16 = vshll.u32 %v2730_v27, 16 }
 0x48c   : > { %v2805_v9 = vrot.slane %v2803_v55, 3  ;;  %v2808_v26 = vrot.slane %v2806_v16, 4  ;;  %v2650_v61 = vpop.permute.xlu1 %2649 }
 0x48d   : > { %v2733_v24 = vsel %vm290_vm10, %v5868_v29, %v2650_v61 }
 0x48e   : > { %v2810_v32 = vshrl.u32 %v2733_v24, 16  ;;  %v2813_v13 = vshll.u32 %v2733_v24, 16  ;;  %v2809_v0 = vor.u32 %v2808_v26, %v2805_v9 }
 0x490   : > { %v2812_v15 = vrot.slane %v2810_v32, 3  ;;  %v2815_v53 = vrot.slane %v2813_v13, 4  ;;  %v2604_v6 = vpop.permute.xlu1 %2603 }
 0x491   : > { %v2713_v63 = vsel %vm290_vm10, %v5803_v41, %v2604_v6 }
 0x492   : > { %v2816_v59 = vor.u32 %v2815_v53, %v2812_v15  ;;  %v2795_v38 = vshrl.u32 %v2713_v63, 16  ;;  %v2798_v35 = vshll.u32 %v2713_v63, 16 }
 0x494   : > { %v2678_v22 = vpop.permute.xlu1 %2677  ;;  %v2817_v40 = vsel %vm824_vm11, %v2809_v0, %v2816_v59  ;;  %v2797_v55 = vrot.slane %v2795_v38, 3  ;;  %v2800_v16 = vrot.slane %v2798_v35, 4 }
 0x495   : > { %v2760_v48 = vsel %vm290_vm10, %v5834_v58, %v2678_v22  ;;  %3398 = vmatprep.mubr.bf16.mxu0 %v2817_v40  ;;  %v4464_v40 = vld [vmem:[#allocation8 + $0x108] sm:$0xff]  }
 0x496   : > { %v2606_v49 = vpop.permute.xlu0 %2605  ;;  %v2825_v47 = vshrl.u32 %v2760_v48, 16  ;;  %v2828_v1 = vshll.u32 %v2760_v48, 16  ;;  %v2801_v35 = vor.u32 %v2800_v16, %v2797_v55 }
 0x497   : > { %v2715_v17 = vsel %vm290_vm10, %v5805_v2, %v2606_v49 }
 0x498   : > { %v2833_v18 = vshrl.u32 %v2715_v17, 16  ;;  %v2836_v46 = vshll.u32 %v2715_v17, 16  ;;  %v2827_v13 = vrot.slane %v2825_v47, 3  ;;  %v2830_v53 = vrot.slane %v2828_v1, 4 }
 0x49a   : > { %v2608_v21 = vpop.permute.xlu0 %2607  ;;  %v2835_v29 = vrot.slane %v2833_v18, 3  ;;  %v2838_v34 = vrot.slane %v2836_v46, 4 }
 0x49b   : > { %v2717_v39 = vsel %vm290_vm10, %v5807_v7, %v2608_v21  ;;  %v2652_v7 = vpop.permute.xlu1 %2651 }
 0x49c   : > { %v2840_v2 = vshrl.u32 %v2717_v39, 16  ;;  %v2843_v44 = vshll.u32 %v2717_v39, 16  ;;  %v6011_v26 = vor.u32 %v2838_v34, %v2835_v29  ;;  %v2736_v32 = vsel %vm290_vm10, %v5851_v25, %v2652_v7  ;;  %v4465_v7 = vld [vmem:[#allocation8 + $0x110] sm:$0xff]  }
 0x49d   : > { %v2864_v49 = vshrl.u32 %v2736_v32, 16  ;;  %v2867_v15 = vshll.u32 %v2736_v32, 16 }
 0x49e   : > { %v2842_v41 = vrot.slane %v2840_v2, 3  ;;  %v2845_v11 = vrot.slane %v2843_v44, 4  ;;  %v2602_v27 = vpop.permute.xlu0 %2601 }
 0x49f   : > { %v2711_v9 = vsel %vm290_vm10, %v5817_v37, %v2602_v27  ;;  %v2866_v18 = vrot.slane %v2864_v49, 3  ;;  %v2869_v46 = vrot.slane %v2867_v15, 4  ;;  %v2612_v38 = vpop.permute.xlu1 %2611 }
 0x4a0   : > { %v2788_v61 = vshrl.u32 %v2711_v9, 16  ;;  %v2791_v24 = vshll.u32 %v2711_v9, 16  ;;  %v6015_v58 = vor.u32 %v2845_v11, %v2842_v41  ;;  %v2721_v34 = vsel %vm290_vm10, %v5822_v30, %v2612_v38 }
 0x4a1   : > { %v6027_v22 = vor.u32 %v2869_v46, %v2866_v18  ;;  %v2831_v41 = vor.u32 %v2830_v53, %v2827_v13  ;;  %v2915_v11 = vshll.u32 %v2721_v34, 16 }
 0x4a2   : > { %v2790_v17 = vrot.slane %v2788_v61, 3  ;;  %v2793_v6 = vrot.slane %v2791_v24, 4  ;;  %v2676_v0 = vpop.permute.xlu0 %2675  ;;  %v6020_v37 = vsel %vm824_vm11, %v6011_v26, %v6015_v58 }
 0x4a3   : > { %v2757_v63 = vsel %vm290_vm10, %v5837_v60, %v2676_v0  ;;  %3487 = vmatprep.mubr.bf16.mxu1 %v6020_v37  ;;  %v2912_v60 = vshrl.u32 %v2721_v34, 16  ;;  %v2871_v27 = vsel %vm824_vm11, %v2816_v59, %v6027_v22  ;;  %v2682_v30 = vpop.permute.xlu1 %2681  ;;  %v2917_v15 = vrot.slane %v2915_v11, 4 }
 0x4a4   : > { %v2818_v21 = vshrl.u32 %v2757_v63, 16  ;;  %v2821_v29 = vshll.u32 %v2757_v63, 16  ;;  %v2794_v39 = vor.u32 %v2793_v6, %v2790_v17  ;;  %v2766_v32 = vsel %vm290_vm10, %v5883_v5, %v2682_v30 }
 0x4a5   : > { %v2914_v49 = vrot.slane %v2912_v60, 3  ;;  %v2904_v5 = vshrl.u32 %v2766_v32, 16  ;;  %v2907_v46 = vshll.u32 %v2766_v32, 16 }
 0x4a6   : > { %v2820_v2 = vrot.slane %v2818_v21, 3  ;;  %v2823_v44 = vrot.slane %v2821_v29, 4  ;;  %v2610_v48 = vpop.permute.xlu0 %2609  ;;  %v2802_v47 = vsel %vm824_vm11, %v2794_v39, %v2801_v35  ;;  %v4466_v21 = vld [vmem:[#allocation8 + $0x118] sm:$0xff]   ;;  %v2863_v39 = vsel %vm824_vm11, %v2801_v35, %v6011_v26 }
 0x4a7   : > { %v2719_v1 = vsel %vm290_vm10, %v5815_v8, %v2610_v48  ;;  %3399 = vmatmul.mubr.bf16.vlgmr.msra.gmra.mrb[0].mxu0 %v2802_v47  ;;  %v2656_v53 = vpop.permute.xlu1 %2655  ;;  %v2918_v47 = vor.u32 %v2917_v15, %v2914_v49  ;;  %v2906_v26 = vrot.slane %v2904_v5, 3  ;;  %v2909_v35 = vrot.slane %v2907_v46, 4 }
 0x4a8   : > { %v2880_v55 = vshrl.u32 %v2719_v1, 16  ;;  %v2883_v16 = vshll.u32 %v2719_v1, 16  ;;  %3405 = vmatprep.mubr.bf16.mxu0 %v2871_v27  ;;  %v2824_v9 = vor.u32 %v2823_v44, %v2820_v2  ;;  %4239 = vmatpush3.bf16.msra.mxu0 %v5943_v19  ;;  %v2742_v18 = vsel %vm290_vm10, %v5890_v33, %v2656_v53 }
 0x4a9   : > { %4240 = vmatprep.subr.bf16.mxu0 %v4464_v40  ;;  %v2928_v63 = vshrl.u32 %v2742_v18, 16  ;;  %v2931_v38 = vshll.u32 %v2742_v18, 16 }
 0x4aa   : > { %v2882_v61 = vrot.slane %v2880_v55, 3  ;;  %v2885_v24 = vrot.slane %v2883_v16, 4  ;;  %v2680_v13 = vpop.permute.xlu0 %2679  ;;  %v2832_v8 = vsel %vm824_vm11, %v2824_v9, %v2831_v41 }
 0x4ab   : > { %v2763_v59 = vsel %vm290_vm10, %v5845_v43, %v2680_v13  ;;  %3488 = vmatmul.mubr.bf16.vlgmr.msra.gmra.mrb[0].mxu1 %v2832_v8  ;;  %v2930_v44 = vrot.slane %v2928_v63, 3  ;;  %v2933_v48 = vrot.slane %v2931_v38, 4  ;;  %v2616_v60 = vpop.permute.xlu1 %2615 }
 0x4ac   : > { %v2872_v17 = vshrl.u32 %v2763_v59, 16  ;;  %v2875_v6 = vshll.u32 %v2763_v59, 16  ;;  %4284 = vmatpush3.bf16.msra.mxu1 %v5943_v19  ;;  %v2886_v0 = vor.u32 %v2885_v24, %v2882_v61  ;;  %4241 = vmatpush3.bf16.msra.mxu0 %v4464_v40  ;;  %v2725_v8 = vsel %vm290_vm10, %v5860_v31, %v2616_v60 }
 0x4ad   : > { %4281 = vmatprep.subr.bf16.mxu1 %v4464_v40  ;;  %4242 = vmatprep.subr.bf16.mxu0 %v4465_v7  ;;  %v6053_v9 = vor.u32 %v2933_v48, %v2930_v44 }
 0x4ae   : > { %v2874_v29 = vrot.slane %v2872_v17, 3  ;;  %v2877_v43 = vrot.slane %v2875_v6, 4  ;;  %v2654_v34 = vpop.permute.xlu0 %2653  ;;  %v6047_v19 = vsel %vm824_vm11, %v6015_v58, %v2886_v0  ;;  %v6058_v24 = vsel %vm824_vm11, %v2886_v0, %v2918_v47 }
 0x4af   : > { %v2739_v2 = vsel %vm290_vm10, %v5899_v45, %v2654_v34  ;;  %3406 = vmatmul.mubr.bf16.gmra.mrb[4].mxu0 %v2863_v39  ;;  %3494 = vmatprep.mubr.bf16.mxu1 %v6047_v19  ;;  %v2976_v6 = vshrl.u32 %v2725_v8, 16  ;;  %v2979_v0 = vshll.u32 %v2725_v8, 16 }
 0x4b0   : > { %v2896_v11 = vshrl.u32 %v2739_v2, 16  ;;  %v2899_v1 = vshll.u32 %v2739_v2, 16  ;;  %v2878_v27 = vor.u32 %v2877_v43, %v2874_v29  ;;  %4285 = vmatpush3.bf16.msra.mxu1 %v4464_v40  ;;  %4243 = vmatpush3.bf16.msra.mxu0 %v4465_v7  ;;  %v2686_v40 = vpop.permute.xlu1 %2685 }
 0x4b1   : > { %4282 = vmatprep.subr.bf16.mxu1 %v4465_v7  ;;  %4244 = vmatprep.subr.bf16.mxu0 %v4466_v21  ;;  %v2772_v63 = vsel %vm290_vm10, %v5918_v23, %v2686_v40  ;;  %v2978_v39 = vrot.slane %v2976_v6, 3  ;;  %v2981_v2 = vrot.slane %v2979_v0, 4 }
 0x4b2   : > { %v2898_v58 = vrot.slane %v2896_v11, 3  ;;  %v2901_v30 = vrot.slane %v2899_v1, 4  ;;  %v2614_v55 = vpop.permute.xlu0 %2613  ;;  %v2879_v16 = vsel %vm824_vm11, %v2831_v41, %v2878_v27  ;;  %v2910_v41 = vor.u32 %v2909_v35, %v2906_v26 }
 0x4b3   : > { %v2723_v61 = vsel %vm290_vm10, %v5826_v36, %v2614_v55  ;;  %3495 = vmatmul.mubr.bf16.gmra.mrb[4].mxu1 %v2879_v16  ;;  %v2971_v48 = vshll.u32 %v2772_v63, 16 }
 0x4b4   : > { %v2944_v32 = vshrl.u32 %v2723_v61, 16  ;;  %v2947_v13 = vshll.u32 %v2723_v61, 16  ;;  %3501 = vmatprep.mubr.bf16.mxu1 %v6058_v24  ;;  %v2902_v49 = vor.u32 %v2901_v30, %v2898_v58  ;;  %4286 = vmatpush3.bf16.msra.mxu1 %v4465_v7  ;;  %v2702_v31 = vpop.permute.xlu1 %2701  ;;  %v6081_v58 = vor.u32 %v2981_v2, %v2978_v39 }
 0x4b5   : > { %4283 = vmatprep.subr.bf16.mxu1 %v4466_v21  ;;  %4245 = vmatpush3.bf16.msra.mxu0 %v4466_v21 }
 0x4b6   : > { %v2946_v15 = vrot.slane %v2944_v32, 3  ;;  %v2949_v59 = vrot.slane %v2947_v13, 4  ;;  %v2684_v36 = vpop.permute.xlu0 %2683  ;;  %v2903_v53 = vsel %vm824_vm11, %v6027_v22, %v2902_v49  ;;  %v2935_v17 = vsel %vm824_vm11, %v2902_v49, %v6053_v9 }
 0x4b7   : > { %v2769_v18 = vsel %vm290_vm10, %v5871_v50, %v2684_v36  ;;  %3412 = vmatprep.mubr.bf16.mxu0 %v2903_v53  ;;  %v2911_v22 = vsel %vm824_vm11, %v2878_v27, %v2910_v41  ;;  %v2783_v50 = vsel %vm290_vm10, %v5876_v56, %v2702_v31  ;;  %v2973_v32 = vrot.slane %v2971_v48, 4 }
 0x4b8   : > { %v2936_v7 = vshrl.u32 %v2769_v18, 16  ;;  %v2939_v5 = vshll.u32 %v2769_v18, 16  ;;  %3413 = vmatmul.mubr.bf16.gmra.mrb[8].mxu0 %v6020_v37  ;;  %v2950_v46 = vor.u32 %v2949_v59, %v2946_v15  ;;  %4287 = vmatpush3.bf16.msra.mxu1 %v4466_v21  ;;  %v2968_v21 = vshrl.u32 %v2772_v63, 16  ;;  %v2662_v35 = vpop.permute.xlu1 %2661 }
 0x4b9   : > { %3419 = vmatprep.mubr.bf16.mxu0 %v2935_v17  ;;  %v3008_v60 = vshrl.u32 %v2783_v50, 16  ;;  %v3011_v11 = vshll.u32 %v2783_v50, 16  ;;  %v2751_v49 = vsel %vm290_vm10, %v5964_v51, %v2662_v35  ;;  %v2851_v35 = vshll.u32 %v5851_v25, 16 }
 0x4ba   : > { %v2938_v38 = vrot.slane %v2936_v7, 3  ;;  %v2941_v29 = vrot.slane %v2939_v5, 4  ;;  %v2658_v43 = vpop.permute.xlu0 %2657  ;;  %v6074_v34 = vsel %vm824_vm11, %v2918_v47, %v2950_v46  ;;  %v2970_v55 = vrot.slane %v2968_v21, 3 }
 0x4bb   : > { %v2745_v37 = vsel %vm290_vm10, %v5930_v10, %v2658_v43  ;;  %3502 = vmatmul.mubr.bf16.gmra.mrb[8].mxu1 %v2911_v22  ;;  %v3010_v13 = vrot.slane %v3008_v60, 3  ;;  %v3013_v8 = vrot.slane %v3011_v11, 4  ;;  %v3025_v0 = vshrl.u32 %v2751_v49, 16 }
 0x4bc   : > { %v2960_v23 = vshrl.u32 %v2745_v37, 16  ;;  %v2963_v44 = vshll.u32 %v2745_v37, 16  ;;  %3508 = vmatprep.mubr.bf16.mxu1 %v6074_v34  ;;  %v2942_v26 = vor.u32 %v2941_v29, %v2938_v38  ;;  %v3028_v18 = vshll.u32 %v2751_v49, 16  ;;  %v2690_v31 = vpop.permute.xlu1 %2689 }
 0x4bd   : > { %v2974_v5 = vor.u32 %v2973_v32, %v2970_v55  ;;  %v3014_v38 = vor.u32 %v3013_v8, %v3010_v13  ;;  %v3027_v29 = vrot.slane %v3025_v0, 3  ;;  %v2778_v21 = vsel %vm290_vm10, %v5937_v57, %v2690_v31 }
 0x4be   : > { %v2962_v1 = vrot.slane %v2960_v23, 3  ;;  %v2965_v47 = vrot.slane %v2963_v44, 4  ;;  %v2660_v27 = vpop.permute.xlu0 %2659  ;;  %v2943_v17 = vsel %vm824_vm11, %v2910_v41, %v2942_v26  ;;  %v3030_v43 = vrot.slane %v3028_v18, 4 }
 0x4bf   : > { %v2748_v30 = vsel %vm290_vm10, %v5923_v28, %v2660_v27  ;;  %v2975_v39 = vsel %vm824_vm11, %v2942_v26, %v2974_v5  ;;  %v3015_v44 = vsel %vm824_vm11, %v6081_v58, %v3014_v38  ;;  %v3033_v26 = vshrl.u32 %v2778_v21, 16 }
 0x4c0   : > { %v2992_v16 = vshrl.u32 %v2748_v30, 16  ;;  %v2995_v61 = vshll.u32 %v2748_v30, 16  ;;  %3420 = vmatmul.mubr.bf16.gmra.mrb[12].mxu0 %v6047_v19  ;;  %v2966_v40 = vor.u32 %v2965_v47, %v2962_v1  ;;  %v6095_v19 = vsel %vm824_vm11, %v2950_v46, %v6081_v58  ;;  %v2706_v48 = vpop.permute.xlu1 %2705 }
 0x4c1   : > { %v3031_v27 = vor.u32 %v3030_v43, %v3027_v29  ;;  %v2848_v57 = vshrl.u32 %v5851_v25, 16  ;;  %v3036_v30 = vshll.u32 %v2778_v21, 16  ;;  %v2858_v13 = vshll.u32 %v5899_v45, 16 }
 0x4c2   : > { %v2994_v15 = vrot.slane %v2992_v16, 3  ;;  %v2997_v59 = vrot.slane %v2995_v61, 4  ;;  %v2688_v36 = vpop.permute.xlu0 %2687  ;;  %v2967_v53 = vsel %vm824_vm11, %v6053_v9, %v2966_v40  ;;  %v2888_v29 = vshrl.u32 %v5890_v33, 16 }
 0x4c3   : > { %v2775_v6 = vsel %vm290_vm10, %v5911_v52, %v2688_v36  ;;  %3426 = vmatprep.mubr.bf16.mxu0 %v2967_v53  ;;  %3509 = vmatmul.mubr.bf16.gmra.mrb[12].mxu1 %v2943_v17  ;;  %v2850_v36 = vrot.slane %v2848_v57, 3  ;;  %v2853_v53 = vrot.slane %v2851_v35, 4  ;;  %v3038_v17 = vrot.slane %v3036_v30, 4 }
 0x4c4   : > { %3515 = vmatprep.mubr.bf16.mxu1 %v6095_v19  ;;  %v2998_v7 = vor.u32 %v2997_v59, %v2994_v15  ;;  %v3000_v63 = vshrl.u32 %v2775_v6, 16  ;;  %v3003_v9 = vshll.u32 %v2775_v6, 16  ;;  %v2692_v25 = vpop.permute.xlu1 %2691  ;;  %v3035_v59 = vrot.slane %v3033_v26, 3 }
 0x4c5   : > { %v2854_v21 = vor.u32 %v2853_v53, %v2850_v36 }
 0x4c6   : > { %v2704_v22 = vpop.permute.xlu0 %2703  ;;  %v2999_v41 = vsel %vm824_vm11, %v2966_v40, %v2998_v7  ;;  %v3002_v2 = vrot.slane %v3000_v63, 3  ;;  %v3005_v37 = vrot.slane %v3003_v9, 4  ;;  %v3032_v15 = vsel %vm824_vm11, %v2998_v7, %v3031_v27 }
 0x4c7   : > { %v2785_v52 = vsel %vm290_vm10, %v5902_v20, %v2704_v22  ;;  %v2781_v63 = vsel %vm290_vm10, %v5966_v54, %v2692_v25  ;;  %v2860_v9 = vrot.slane %v2858_v13, 4  ;;  %v2952_v22 = vshrl.u32 %v5923_v28, 16 }
 0x4c8   : > { %v3041_v46 = vshrl.u32 %v2785_v52, 16  ;;  %v3044_v50 = vshll.u32 %v2785_v52, 16  ;;  %3427 = vmatmul.mubr.bf16.gmra.mrb[16].mxu0 %v6058_v24  ;;  %v2787_v24 = vsel %vm290_vm10, %v5934_v3, %v2706_v48  ;;  %v3006_v40 = vor.u32 %v3005_v37, %v3002_v2 }
 0x4c9   : > { %3433 = vmatprep.mubr.bf16.mxu0 %v2999_v41  ;;  %v3082_v55 = vshrl.u32 %v2787_v24, 16  ;;  %v3085_v16 = vshll.u32 %v2787_v24, 16  ;;  %v2955_v41 = vshll.u32 %v5923_v28, 16  ;;  %v2984_v52 = vshrl.u32 %v5964_v51, 16 }
 0x4ca   : > { %v2664_v23 = vpop.permute.xlu0 %2663  ;;  %v3043_v20 = vrot.slane %v3041_v46, 3  ;;  %v3046_v60 = vrot.slane %v3044_v50, 4  ;;  %v3007_v18 = vsel %vm824_vm11, %v2974_v5, %v3006_v40  ;;  %v2987_v5 = vshll.u32 %v5964_v51, 16 }
 0x4cb   : > { %v2754_v11 = vsel %vm290_vm10, %v5951_v62, %v2664_v23  ;;  %3516 = vmatmul.mubr.bf16.gmra.mrb[16].mxu1 %v2975_v39  ;;  %v2855_v62 = vshrl.u32 %v5899_v45, 16  ;;  %v3084_v6 = vrot.slane %v3082_v55, 3  ;;  %v3087_v0 = vrot.slane %v3085_v16, 4 }
 0x4cc   : > { %v3066_v1 = vshrl.u32 %v2754_v11, 16  ;;  %v3069_v47 = vshll.u32 %v2754_v11, 16  ;;  %3522 = vmatprep.mubr.bf16.mxu1 %v3015_v44  ;;  %v3047_v32 = vor.u32 %v3046_v60, %v3043_v20  ;;  %v3074_v43 = vshrl.u32 %v2781_v63, 16 }
 0x4cd   : > { %v2857_v7 = vrot.slane %v2855_v62, 3  ;;  %v3077_v46 = vshll.u32 %v2781_v63, 16  ;;  %v3039_v54 = vor.u32 %v3038_v17, %v3035_v59  ;;  %v2891_v50 = vshll.u32 %v5890_v33, 16 }
 0x4ce   : > { %v2618_v61 = vpop.permute.xlu0 %2617  ;;  %v3068_v3 = vrot.slane %v3066_v1, 3  ;;  %v3071_v8 = vrot.slane %v3069_v47, 4  ;;  %v3088_v2 = vor.u32 %v3087_v0, %v3084_v6  ;;  %v2954_v23 = vrot.slane %v2952_v22, 3 }
 0x4cf   : > { %v2727_v49 = vsel %vm290_vm10, %v5876_v56, %v2618_v61  ;;  %v3048_v56 = vsel %vm824_vm11, %v3014_v38, %v3047_v32  ;;  %v2861_v28 = vor.u32 %v2860_v9, %v2857_v7  ;;  %v2957_v44 = vrot.slane %v2955_v41, 4 }
 0x4d0   : > { %3434 = vmatmul.mubr.bf16.gmra.mrb[20].mxu0 %v6074_v34  ;;  %v3058_v45 = vshrl.u32 %v2727_v49, 16  ;;  %v3061_v31 = vshll.u32 %v2727_v49, 16  ;;  %v3072_v34 = vor.u32 %v3071_v8, %v3068_v3  ;;  %v2986_v51 = vrot.slane %v2984_v52, 3 }
 0x4d1   : > { %3440 = vmatprep.mubr.bf16.mxu0 %v3032_v15  ;;  %v2989_v48 = vrot.slane %v2987_v5, 4  ;;  %v2920_v20 = vshrl.u32 %v5930_v10, 16  ;;  %v3076_v60 = vrot.slane %v3074_v43, 3  ;;  %v3079_v11 = vrot.slane %v3077_v46, 4 }
 0x4d2   : > { %v3060_v38 = vrot.slane %v3058_v45, 3  ;;  %v3063_v39 = vrot.slane %v3061_v31, 4  ;;  %v3073_v37 = vsel %vm824_vm11, %v3031_v27, %v3072_v34  ;;  %v3040_v33 = vsel %vm824_vm11, %v3006_v40, %v3039_v54 }
 0x4d3   : > { %3523 = vmatmul.mubr.bf16.gmra.mrb[20].mxu1 %v3007_v18  ;;  %v2923_v24 = vshll.u32 %v5930_v10, 16  ;;  %v2890_v47 = vrot.slane %v2888_v29, 3  ;;  %v2893_v27 = vrot.slane %v2891_v50, 4  ;;  %v2958_v26 = vor.u32 %v2957_v44, %v2954_v23 }
 0x4d4   : > { %3529 = vmatprep.mubr.bf16.mxu1 %v3048_v56  ;;  %v3064_v1 = vor.u32 %v3063_v39, %v3060_v38  ;;  %v2990_v57 = vor.u32 %v2989_v48, %v2986_v51  ;;  %v3080_v35 = vor.u32 %v3079_v11, %v3076_v60  ;;  %v2862_v30 = vsel %vm824_vm11, %v2854_v21, %v2861_v28 }
 0x4d5   : > { %v2922_v55 = vrot.slane %v2920_v20, 3  ;;  %v2925_v16 = vrot.slane %v2923_v24, 4  ;;  %v2894_v10 = vor.u32 %v2893_v27, %v2890_v47  ;;  %v3091_v13 = vshrl.u32 %v5980_v4, 16 }
 0x4d6   : > { %v3065_v61 = vsel %vm824_vm11, %v6081_v58, %v3064_v1  ;;  %v2991_v40 = vsel %vm824_vm11, %v2958_v26, %v2990_v57  ;;  %v3094_v3 = vshll.u32 %v5980_v4, 16  ;;  %v3024_v49 = vsel %vm824_vm11, %v2990_v57, %v5984_v12 }
 0x4d7   : > { %v2926_v62 = vor.u32 %v2925_v16, %v2922_v55  ;;  %v2895_v8 = vsel %vm824_vm11, %v2861_v28, %v2894_v10  ;;  %v3093_v15 = vrot.slane %v3091_v13, 3 }
 0x4d8   : > { %3441 = vmatmul.mubr.bf16.gmra.mrb[24].mxu0 %v6095_v19  ;;  %v3089_v19 = vsel %vm824_vm11, %v3047_v32, %v3088_v2  ;;  %v3081_v32 = vsel %vm824_vm11, %v3039_v54, %v3080_v35  ;;  %v3096_v25 = vrot.slane %v3094_v3, 4 }
 0x4d9   : > { %3447 = vmatprep.mubr.bf16.mxu0 %v3073_v37  ;;  %v2927_v58 = vsel %vm824_vm11, %v2894_v10, %v2926_v62  ;;  %v2959_v4 = vsel %vm824_vm11, %v2926_v62, %v2958_v26 }
 0x4da   : > { %v3097_v59 = vor.u32 %v3096_v25, %v3093_v15 }
 0x4db   : > { %3530 = vmatmul.mubr.bf16.gmra.mrb[24].mxu1 %v3040_v33 }
 0x4dc   : > { %3536 = vmatprep.mubr.bf16.mxu1 %v3089_v19  ;;  %v3098_v36 = vsel %vm824_vm11, %v5986_v14, %v3097_v59 }
 0x4e0   : > { %3448 = vmatmul.mubr.bf16.gmra.mrb[28].mxu0 %v3065_v61 }
 0x4e1   : > { %4246 = vmatprep.mubr.msk.bf16.mxu0 %vm290_vm10, %v2862_v30 }
 0x4e3   : > { %3537 = vmatmul.mubr.bf16.gmra.mrb[28].mxu1 %v3081_v32 }
 0x4e4   : > { %4254 = vmatprep.mubr.msk.bf16.mxu1 %vm290_vm10, %v2991_v40 }
 0x4e8   : > { %4247 = vmatmul.mubr.msk.bf16.vlgmr.msra.gmra.mrb[32].mxu0 %vm290_vm10, %v2895_v8 }
 0x4e9   : > { %4250 = vmatprep.mubr.msk.bf16.mxu0 %vm290_vm10, %v2927_v58 }
 0x4eb   : > { %4255 = vmatmul.mubr.msk.bf16.vlgmr.msra.gmra.mrb[32].mxu1 %vm290_vm10, %v3024_v49 }
 0x4ec   : > { %4258 = vmatprep.mubr.msk.bf16.mxu1 %vm290_vm10, %v5991_v42 }
 0x4f0   : > { %4251 = vmatmul.mubr.msk.bf16.gmra.mrb[36].mxu0 %vm290_vm10, %v2959_v4 }
 0x4f3   : > { %4259 = vmatmul.mubr.msk.bf16.gmra.mrb[36].mxu1 %vm290_vm10, %v3098_v36 }
 0x57a   : > { %v4064_v12 = vpop.f32.mrb[0].mxu0 }
 0x57b   : > { %v4065_v53 = vpop.f32.mrb[1].mxu0 }
 0x57c   : > { %v4066_v17 = vadd.f32 %v4065_v53, %v4064_v12  ;;  %v4067_v6 = vpop.f32.mrb[2].mxu0 }
 0x57d   : > { %v4068_v0 = vpop.f32.mrb[3].mxu0 }
 0x57e   : > { %v4128_v18 = vpop.f32.mrb[0].mxu1 }
 0x57f   : > { %v4129_v45 = vpop.f32.mrb[1].mxu1 }
 0x580   : > { %v4130_v31 = vadd.f32 %v4129_v45, %v4128_v18  ;;  %v4131_v63 = vpop.f32.mrb[2].mxu1 }
 0x581   : > { %v4132_v42 = vpop.f32.mrb[3].mxu1 }
 0x582   : > { %v4070_v56 = vpop.f32.mrb[4].mxu0  ;;  %v6158_v34 = vadd.f32 %v4130_v31, %v4066_v17 }
 0x583   : > { %v4071_v7 = vpop.f32.mrb[5].mxu0 }
 0x584   : > { %v4072_v9 = vadd.f32 %v4071_v7, %v4070_v56  ;;  %v4073_v22 = vpop.f32.mrb[6].mxu0 }
 0x585   : > { %v4074_v41 = vpop.f32.mrb[7].mxu0 }
 0x586   : > { %v4134_v14 = vpop.f32.mrb[4].mxu1 }
 0x587   : > { %v4135_v52 = vpop.f32.mrb[5].mxu1 }
 0x588   : > { %v4136_v5 = vadd.f32 %v4135_v52, %v4134_v14  ;;  %v4137_v29 = vpop.f32.mrb[6].mxu1 }
 0x589   : > { %v4138_v43 = vpop.f32.mrb[7].mxu1 }
 0x58a   : > { %v6160_v46 = vadd.f32 %v4136_v5, %v4072_v9 }
 0x58b   : > { %v4076_v54 = vpop.f32.mrb[8].mxu0 }
 0x58c   : > { %v4077_v50 = vpop.f32.mrb[9].mxu0 }
 0x58d   : > { %v4078_v38 = vadd.f32 %v4077_v50, %v4076_v54  ;;  %v4079_v39 = vpop.f32.mrb[10].mxu0 }
 0x58e   : > { %v4080_v2 = vpop.f32.mrb[11].mxu0  ;;  %v4140_v37 = vpop.f32.mrb[8].mxu1 }
 0x58f   : > { %v4141_v21 = vpop.f32.mrb[9].mxu1 }
 0x590   : > { %v4142_v28 = vadd.f32 %v4141_v21, %v4140_v37  ;;  %v4143_v23 = vpop.f32.mrb[10].mxu1 }
 0x591   : > { %v4144_v44 = vpop.f32.mrb[11].mxu1 }
 0x592   : > { %v6162_v51 = vadd.f32 %v4142_v28, %v4078_v38 }
 0x593   : > { %v4082_v48 = vpop.f32.mrb[12].mxu0 }
 0x594   : > { %v4083_v20 = vpop.f32.mrb[13].mxu0 }
 0x595   : > { %v4084_v60 = vadd.f32 %v4083_v20, %v4082_v48  ;;  %v4085_v11 = vpop.f32.mrb[14].mxu0 }
 0x596   : > { %v4086_v33 = vpop.f32.mrb[15].mxu0  ;;  %v4146_v24 = vpop.f32.mrb[12].mxu1 }
 0x597   : > { %v4147_v19 = vpop.f32.mrb[13].mxu1 }
 0x598   : > { %v4148_v1 = vadd.f32 %v4147_v19, %v4146_v24  ;;  %v4149_v47 = vpop.f32.mrb[14].mxu1 }
 0x599   : > { %v4150_v27 = vpop.f32.mrb[15].mxu1 }
 0x59a   : > { %v6164_v26 = vadd.f32 %v4148_v1, %v4084_v60 }
 0x59b   : > { %v4088_v57 = vpop.f32.mrb[16].mxu0 }
 0x59c   : > { %v4089_v35 = vpop.f32.mrb[17].mxu0 }
 0x59d   : > { %v4090_v30 = vadd.f32 %v4089_v35, %v4088_v57  ;;  %v4091_v55 = vpop.f32.mrb[18].mxu0 }
 0x59e   : > { %v4092_v16 = vpop.f32.mrb[19].mxu0  ;;  %v4152_v61 = vpop.f32.mrb[16].mxu1 }
 0x59f   : > { %v4153_v10 = vpop.f32.mrb[17].mxu1 }
 0x5a0   : > { %v4154_v40 = vadd.f32 %v4153_v10, %v4152_v61  ;;  %v4155_v32 = vpop.f32.mrb[18].mxu1 }
 0x5a1   : > { %v4156_v62 = vpop.f32.mrb[19].mxu1 }
 0x5a2   : > { %v3518_v13 = vadd.f32 %v4154_v40, %v4090_v30 }
 0x5a3   : > { %v4094_v3 = vpop.f32.mrb[20].mxu0 }
 0x5a4   : > { %v4095_v8 = vpop.f32.mrb[21].mxu0 }
 0x5a5   : > { %v4096_v58 = vadd.f32 %v4095_v8, %v4094_v3  ;;  %v4097_v49 = vpop.f32.mrb[22].mxu0 }
 0x5a6   : > { %v4098_v15 = vpop.f32.mrb[23].mxu0  ;;  %v4158_v25 = vpop.f32.mrb[20].mxu1 }
 0x5a7   : > { %v4159_v59 = vpop.f32.mrb[21].mxu1 }
 0x5a8   : > { %v4160_v4 = vadd.f32 %v4159_v59, %v4158_v25  ;;  %v4161_v36 = vpop.f32.mrb[22].mxu1 }
 0x5a9   : > { %v4162_v12 = vpop.f32.mrb[23].mxu1 }
 0x5aa   : > { %v3525_v53 = vadd.f32 %v4160_v4, %v4096_v58 }
 0x5ab   : > { %v4100_v17 = vpop.f32.mrb[24].mxu0 }
 0x5ac   : > { %v4101_v6 = vpop.f32.mrb[25].mxu0 }
 0x5ad   : > { %v4102_v0 = vadd.f32 %v4101_v6, %v4100_v17  ;;  %v4103_v18 = vpop.f32.mrb[26].mxu0 }
 0x5ae   : > { %v4104_v45 = vpop.f32.mrb[27].mxu0  ;;  %v4164_v31 = vpop.f32.mrb[24].mxu1 }
 0x5af   : > { %v4165_v63 = vpop.f32.mrb[25].mxu1 }
 0x5b0   : > { %v4166_v42 = vadd.f32 %v4165_v63, %v4164_v31  ;;  %v4167_v56 = vpop.f32.mrb[26].mxu1 }
 0x5b1   : > { %v4168_v7 = vpop.f32.mrb[27].mxu1 }
 0x5b2   : > { %v3532_v9 = vadd.f32 %v4166_v42, %v4102_v0 }
 0x5b3   : > { %v4106_v22 = vpop.f32.mrb[28].mxu0 }
 0x5b4   : > { %v4107_v41 = vpop.f32.mrb[29].mxu0 }
 0x5b5   : > { %v4108_v14 = vadd.f32 %v4107_v41, %v4106_v22  ;;  %v4109_v52 = vpop.f32.mrb[30].mxu0 }
 0x5b6   : > { %v4110_v5 = vpop.f32.mrb[31].mxu0  ;;  %v4170_v29 = vpop.f32.mrb[28].mxu1 }
 0x5b7   : > { %v4171_v43 = vpop.f32.mrb[29].mxu1 }
 0x5b8   : > { %v4172_v54 = vadd.f32 %v4171_v43, %v4170_v29  ;;  %v4173_v50 = vpop.f32.mrb[30].mxu1 }
 0x5b9   : > { %v4174_v38 = vpop.f32.mrb[31].mxu1 }
 0x5ba   : > { %v3539_v39 = vadd.f32 %v4172_v54, %v4108_v14 }
 0x5bb   : > { %v4248_v2 = vpop.f32.mrb[32].mxu0 }
 0x5bc   : > { %v3586_v37 = vadd.f32 %v4248_v2, %v6160_v46  ;;  %v3578_v21 = vpop.f32.mrb[33].mxu0 }
 0x5bd   : > { %v3579_v28 = vadd.f32 %v3578_v21, %v6158_v34  ;;  %v4249_v23 = vpop.f32.mrb[34].mxu0 }
 0x5be   : > { %3635 = vst.msk [vmem:[%s4808_s13 + $0x8] sm:$0xff] %vm3633_vm1, %v3586_v37  ;;  %v3581_v44 = vpop.f32.mrb[35].mxu0  ;;  %v4256_v48 = vpop.f32.mrb[32].mxu1 }
 0x5bf   : > { %3634 = vst.msk [vmem:[%s4808_s13] sm:$0xff] %vm3633_vm1, %v3579_v28  ;;  %v3614_v20 = vadd.f32 %v4256_v48, %v3525_v53  ;;  %v3606_v60 = vpop.f32.mrb[33].mxu1 }
 0x5c0   : > { %v3607_v11 = vadd.f32 %v3606_v60, %v3518_v13  ;;  %v4257_v33 = vpop.f32.mrb[34].mxu1 }
 0x5c1   : > { %3639 = vst.msk [vmem:[%s4808_s13 + $0x28] sm:$0xff] %vm3633_vm1, %v3614_v20  ;;  %v3609_v46 = vpop.f32.mrb[35].mxu1 }
 0x5c2   : > { %3638 = vst.msk [vmem:[%s4808_s13 + $0x20] sm:$0xff] %vm3633_vm1, %v3607_v11 }
 0x5c3   : > { %v4252_v34 = vpop.f32.mrb[36].mxu0 }
 0x5c4   : > { %v3600_v24 = vadd.f32 %v4252_v34, %v6164_v26  ;;  %v3592_v19 = vpop.f32.mrb[37].mxu0 }
 0x5c5   : > { %v3593_v1 = vadd.f32 %v3592_v19, %v6162_v51  ;;  %v4253_v47 = vpop.f32.mrb[38].mxu0 }
 0x5c6   : > { %3637 = vst.msk [vmem:[%s4808_s13 + $0x18] sm:$0xff] %vm3633_vm1, %v3600_v24  ;;  %v3595_v27 = vpop.f32.mrb[39].mxu0  ;;  %v4260_v57 = vpop.f32.mrb[36].mxu1 }
 0x5c7   : > { %3636 = vst.msk [vmem:[%s4808_s13 + $0x10] sm:$0xff] %vm3633_vm1, %v3593_v1  ;;  %v3628_v35 = vadd.f32 %v4260_v57, %v3539_v39  ;;  %v3620_v30 = vpop.f32.mrb[37].mxu1 }
 0x5c8   : > { %v3621_v55 = vadd.f32 %v3620_v30, %v3532_v9  ;;  %v4261_v16 = vpop.f32.mrb[38].mxu1 }
 0x5c9   : > { %3641 = vst.msk [vmem:[%s4808_s13 + $0x38] sm:$0xff] %vm3633_vm1, %v3628_v35  ;;  %v3623_v61 = vpop.f32.mrb[39].mxu1 }
 0x5ca   : > { %3640 = vst.msk [vmem:[%s4808_s13 + $0x30] sm:$0xff] %vm3633_vm1, %v3621_v55 }
 0x5cb PF: > { %s18_s18 = sadd.s32 1, %s4601_s18  }
 0x5cc   : > { %p15_p8 = scmp.ge.s32.totalorder %s18_s18, 4  }
 0x5ce   :  { %17 = sbr.rel (!%p15_p8) target bundleno = 3 (0x3), region = 107 }
 0x5d5   :  { %3663 = vsyncpa [#allocation4], 1 }
 0x5d6   :  { %3665 = vsyncpa [#allocation4 + $0x1], 1 }
 0x5d7   :  { %3666 = vsyncpa [#allocation6], 1 }
 0x5d8   :  { %3667 = vsyncpa [#allocation9], 1 }

</bundles_post_ra>
